<compile_context>
chip_gen: v5e
topology: v5e:2x2
jax: 0.10.0
libtpu: 0.0.40
codegen_flags: <defaults>
</compile_context>

<pallas_src>
import functools

import jax
import jax.numpy as jnp
from jax.experimental import pallas as pl
from jax.experimental.pallas import tpu as pltpu


IN_F = 784          # input features (28*28); kept unpadded (full-extent block dim)
OUT_F = 10          # true number of classes
OUT_PAD = 128       # lane-dense output width (full vst stores)
LAYER_DIMS = [(784, 512), (512, 512), (512, 256), (256, 256), (256, 128), (128, 10)]
# Shapes actually executed inside the kernel (layer-6 N padded to 128).
PADDED_DIMS = [(784, 512), (512, 512), (512, 256), (256, 256), (256, 128), (128, OUT_PAD)]


def _round_up(x, m):
    return ((x + m - 1) // m) * m


def _choose_tm(batch, tm_max=1024):
    """Batch-tile size: multiple of 16 (bf16 packing), >=2 tiles for moderate
    batches (dual-TC on v7x), capped at tm_max (v7x 64 MiB VMEM)."""
    b16 = _round_up(batch, 16)
    if b16 <= 256:
        return b16                                   # single tile, minimal batch pad
    return min(tm_max, _round_up(pl.cdiv(b16, 2), 128))


# ----------------------------------------------------------------------------
# Kernel: fused 6-layer MLP + log_softmax over one (TM, 784) batch tile.
# w1..w5 are bf16 (in, out); w6 is f32 (128, 128-padded); biases are (1, out) f32.
# ----------------------------------------------------------------------------
def mlp_logsoftmax_kernel(
    x_ref,
    w1_ref, b1_ref,
    w2_ref, b2_ref,
    w3_ref, b3_ref,
    w4_ref, b4_ref,
    w5_ref, b5_ref,
    w6_ref, b6_ref,
    o_ref,
):
    # Six stacked linear layers (no nonlinearity, matching the reference).
    # Layers 1-5: bf16 MXU operands, f32 accumulation + bias add.
    h = jnp.dot(x_ref[...], w1_ref[...], preferred_element_type=jnp.float32) + b1_ref[...]
    h = jnp.dot(h.astype(jnp.bfloat16), w2_ref[...], preferred_element_type=jnp.float32) + b2_ref[...]
    h = jnp.dot(h.astype(jnp.bfloat16), w3_ref[...], preferred_element_type=jnp.float32) + b3_ref[...]
    h = jnp.dot(h.astype(jnp.bfloat16), w4_ref[...], preferred_element_type=jnp.float32) + b4_ref[...]
    h = jnp.dot(h.astype(jnp.bfloat16), w5_ref[...], preferred_element_type=jnp.float32) + b5_ref[...]
    # Layer 6 in f32 (128x128 tile, negligible MXU work) for better accuracy.
    logits = jnp.dot(h, w6_ref[...], preferred_element_type=jnp.float32) + b6_ref[...]

    # Mask the padded class lanes so they do not perturb the normalizer.
    col = jax.lax.broadcasted_iota(jnp.int32, logits.shape, dimension=1)
    logits = jnp.where(col < OUT_F, logits, jnp.float32(-1e30))

    # log_softmax along the class dimension (f32 throughout).
    m = jnp.max(logits, axis=-1, keepdims=True)
    shifted = logits - m
    lse = jnp.log(jnp.sum(jnp.exp(shifted), axis=-1, keepdims=True))
    o_ref[...] = (shifted - lse).astype(o_ref.dtype)


# ----------------------------------------------------------------------------
# Wrapper: flatten NCHW input, cast once to bf16, tile the batch.
# ----------------------------------------------------------------------------
@functools.partial(jax.jit, static_argnames=("tm_max",))
def linear_mnist_forward(x_nchw, params, tm_max=1024):
    B = x_nchw.shape[0]
    # torch.flatten(x, 1) + single cast to bf16 (no f32 pad intermediate).
    x = x_nchw.reshape(B, -1).astype(jnp.bfloat16)           # (B, 784)

    tm = _choose_tm(B, tm_max)
    b_pad = _round_up(B, tm)
    if b_pad != B:
        x = jnp.pad(x, ((0, b_pad - B), (0, 0)))

    # PyTorch nn.Linear stores weight as (out, in); transpose once so the
    # kernel does x @ W directly.  Only layer 6's N dim is padded (10 -> 128).
    kernel_args = [x]
    in_specs = [pl.BlockSpec((tm, IN_F), lambda i: (i, 0))]   # 784 = full trailing dim
    n_layers = len(params)
    for li, (w, b) in enumerate(params):
        wt = jnp.asarray(w, jnp.float32).T                    # (in, out)
        bb = jnp.asarray(b, jnp.float32)[None, :]             # (1, out)
        if li == n_layers - 1:
            wt = jnp.pad(wt, ((0, 0), (0, OUT_PAD - OUT_F)))  # keep f32
            bb = jnp.pad(bb, ((0, 0), (0, OUT_PAD - OUT_F)))
        else:
            wt = wt.astype(jnp.bfloat16)
        kernel_args.append(wt)
        kernel_args.append(bb)
        # Constant index maps: weights/biases DMA'd once, VMEM-resident.
        in_specs.append(pl.BlockSpec(wt.shape, lambda i: (0, 0)))
        in_specs.append(pl.BlockSpec(bb.shape, lambda i: (0, 0)))

    grid = (b_pad // tm,)

    # VMEM budget from actual footprint (not a flat 48 MiB): weights/biases
    # double-buffered, 2x x tile, 2x out tile, generous f32 temporaries slack.
    weight_bytes = sum(int(a.size) * a.dtype.itemsize for a in kernel_args[1:])
    budget = (
        2 * weight_bytes
        + 2 * tm * IN_F * 2          # x tiles (bf16)
        + 2 * tm * OUT_PAD * 4       # out tiles (f32)
        + 8 * tm * 512 * 4           # inter-layer f32 temporaries + slack
    )
    vmem_limit = int(min(36 * 1024 * 1024, max(16 * 1024 * 1024, budget)))

    flops = 2 * b_pad * sum(fi * fo for fi, fo in PADDED_DIMS)
    bytes_accessed = (
        sum(int(a.size) * a.dtype.itemsize for a in kernel_args)
        + b_pad * OUT_PAD * 4
    )
    cost = pl.CostEstimate(
        flops=flops,
        transcendentals=b_pad * (OUT_PAD + 1),
        bytes_accessed=bytes_accessed,
    )

    out = pl.pallas_call(
        mlp_logsoftmax_kernel,
        out_shape=jax.ShapeDtypeStruct((b_pad, OUT_PAD), jnp.float32),
        grid=grid,
        in_specs=in_specs,
        out_specs=pl.BlockSpec((tm, OUT_PAD), lambda i: (i, 0)),
        compiler_params=pltpu.CompilerParams(
            dimension_semantics=("parallel",),
            vmem_limit_bytes=vmem_limit,
        ),
        cost_estimate=cost,
    )(*kernel_args)

    return out[:B, :OUT_F]


# ----------------------------------------------------------------------------
# Pure-JAX reference (f32) for a correctness check.
# ----------------------------------------------------------------------------
def linear_mnist_reference(x_nchw, params):
    B = x_nchw.shape[0]
    h = x_nchw.reshape(B, -1).astype(jnp.float32)
    for (w, b) in params:
        h = h @ jnp.asarray(w, jnp.float32).T + jnp.asarray(b, jnp.float32)
    return jax.nn.log_softmax(h, axis=-1)


# ----------------------------------------------------------------------------
# Deterministic parameter init (matches nn.Linear shapes; synthetic values)
# ----------------------------------------------------------------------------
def init_params(key):
    params = []
    for (fan_in, fan_out) in LAYER_DIMS:
        key, kw, kb = jax.random.split(key, 3)
        bound = 1.0 / jnp.sqrt(fan_in)
        w = jax.random.uniform(kw, (fan_out, fan_in), jnp.float32, -bound, bound)
        b = jax.random.uniform(kb, (fan_out,), jnp.float32, -bound, bound)
        params.append((w, b))
    return params


if __name__ == "__main__":
    key = jax.random.PRNGKey(0)
    key, kx = jax.random.split(key)

    # Small MNIST-like batch: NCHW (B=2, C=1, H=28, W=28) -> flattens to 784.
    x = jax.random.normal(kx, (2, 1, 28, 28), dtype=jnp.float32)
    params = init_params(key)

    out = linear_mnist_forward(x, params)
    out = jax.block_until_ready(out)

    # Sanity checks: shape, valid log_softmax rows, and closeness to f32
    # reference (loose tolerance: layers 1-5 run in bf16 with f32 accumulation).
    assert out.shape == (2, 10)
    row_sums = jnp.exp(out).sum(axis=-1)
    assert jnp.allclose(row_sums, jnp.ones_like(row_sums), atol=1e-4)
    ref = linear_mnist_reference(x, params)
    assert jnp.allclose(out, ref, atol=5e-2, rtol=5e-2)

    print("KERNEL_OK")
</pallas_src>

<mosaic_0001>
module attributes {stable_mosaic.version = 11 : i64} {
  func.func @mlp_logsoftmax_kernel(%arg0: i32, %arg1: memref<16x784xbf16, #tpu.memory_space<vmem>>, %arg2: memref<784x512xbf16, #tpu.memory_space<vmem>>, %arg3: memref<1x512xf32, #tpu.memory_space<vmem>>, %arg4: memref<512x512xbf16, #tpu.memory_space<vmem>>, %arg5: memref<1x512xf32, #tpu.memory_space<vmem>>, %arg6: memref<512x256xbf16, #tpu.memory_space<vmem>>, %arg7: memref<1x256xf32, #tpu.memory_space<vmem>>, %arg8: memref<256x256xbf16, #tpu.memory_space<vmem>>, %arg9: memref<1x256xf32, #tpu.memory_space<vmem>>, %arg10: memref<256x128xbf16, #tpu.memory_space<vmem>>, %arg11: memref<1x128xf32, #tpu.memory_space<vmem>>, %arg12: memref<128x128xf32, #tpu.memory_space<vmem>>, %arg13: memref<1x128xf32, #tpu.memory_space<vmem>>, %arg14: memref<16x128xf32, #tpu.memory_space<vmem>>) attributes {dimension_semantics = [#tpu.dimension_semantics<parallel>], iteration_bounds = array<i64: 1>, scalar_prefetch = 0 : i64, scratch_operands = 0 : i64, tpu.core_type = #tpu.core_type<tc>, window_params = [{transform_indices = @transform_0, window_bounds = array<i64: 16, 784>}, {pipeline_mode = #tpu.pipeline_mode<synchronous>, transform_indices = @transform_1, window_bounds = array<i64: 784, 512>}, {pipeline_mode = #tpu.pipeline_mode<synchronous>, transform_indices = @transform_2, window_bounds = array<i64: 1, 512>}, {pipeline_mode = #tpu.pipeline_mode<synchronous>, transform_indices = @transform_3, window_bounds = array<i64: 512, 512>}, {pipeline_mode = #tpu.pipeline_mode<synchronous>, transform_indices = @transform_4, window_bounds = array<i64: 1, 512>}, {pipeline_mode = #tpu.pipeline_mode<synchronous>, transform_indices = @transform_5, window_bounds = array<i64: 512, 256>}, {pipeline_mode = #tpu.pipeline_mode<synchronous>, transform_indices = @transform_6, window_bounds = array<i64: 1, 256>}, {pipeline_mode = #tpu.pipeline_mode<synchronous>, transform_indices = @transform_7, window_bounds = array<i64: 256, 256>}, {pipeline_mode = #tpu.pipeline_mode<synchronous>, transform_indices = @transform_8, window_bounds = array<i64: 1, 256>}, {pipeline_mode = #tpu.pipeline_mode<synchronous>, transform_indices = @transform_9, window_bounds = array<i64: 256, 128>}, {pipeline_mode = #tpu.pipeline_mode<synchronous>, transform_indices = @transform_10, window_bounds = array<i64: 1, 128>}, {pipeline_mode = #tpu.pipeline_mode<synchronous>, transform_indices = @transform_11, window_bounds = array<i64: 128, 128>}, {pipeline_mode = #tpu.pipeline_mode<synchronous>, transform_indices = @transform_12, window_bounds = array<i64: 1, 128>}, {transform_indices = @transform_13, window_bounds = array<i64: 16, 128>}]} {
    %c0 = arith.constant 0 : index
    %c0_0 = arith.constant 0 : index
    %0 = vector.load %arg1[%c0, %c0_0] : memref<16x784xbf16, #tpu.memory_space<vmem>>, vector<16x784xbf16>
    %c0_1 = arith.constant 0 : index
    %c0_2 = arith.constant 0 : index
    %1 = vector.load %arg2[%c0_1, %c0_2] : memref<784x512xbf16, #tpu.memory_space<vmem>>, vector<784x512xbf16>
    %cst = arith.constant dense<0.000000e+00> : vector<16x512xf32>
    %2 = tpu.matmul %0, %1, %cst {dimension_numbers = #tpu.dot_dimension_numbers<[1], [0], [0], [1], [0, 0, 1, 1], [], []>} : vector<16x784xbf16>, vector<784x512xbf16>, vector<16x512xf32> -> vector<16x512xf32>
    %c0_3 = arith.constant 0 : index
    %c0_4 = arith.constant 0 : index
    %3 = vector.load %arg3[%c0_3, %c0_4] : memref<1x512xf32, #tpu.memory_space<vmem>>, vector<1x512xf32>
    %4 = vector.broadcast %3 : vector<1x512xf32> to vector<16x512xf32>
    %5 = arith.addf %2, %4 : vector<16x512xf32>
    %6 = arith.truncf %5 : vector<16x512xf32> to vector<16x512xbf16>
    %c0_5 = arith.constant 0 : index
    %c0_6 = arith.constant 0 : index
    %7 = vector.load %arg4[%c0_5, %c0_6] : memref<512x512xbf16, #tpu.memory_space<vmem>>, vector<512x512xbf16>
    %cst_7 = arith.constant dense<0.000000e+00> : vector<16x512xf32>
    %8 = tpu.matmul %6, %7, %cst_7 {dimension_numbers = #tpu.dot_dimension_numbers<[1], [0], [0], [1], [0, 0, 1, 1], [], []>} : vector<16x512xbf16>, vector<512x512xbf16>, vector<16x512xf32> -> vector<16x512xf32>
    %c0_8 = arith.constant 0 : index
    %c0_9 = arith.constant 0 : index
    %9 = vector.load %arg5[%c0_8, %c0_9] : memref<1x512xf32, #tpu.memory_space<vmem>>, vector<1x512xf32>
    %10 = vector.broadcast %9 : vector<1x512xf32> to vector<16x512xf32>
    %11 = arith.addf %8, %10 : vector<16x512xf32>
    %12 = arith.truncf %11 : vector<16x512xf32> to vector<16x512xbf16>
    %c0_10 = arith.constant 0 : index
    %c0_11 = arith.constant 0 : index
    %13 = vector.load %arg6[%c0_10, %c0_11] : memref<512x256xbf16, #tpu.memory_space<vmem>>, vector<512x256xbf16>
    %cst_12 = arith.constant dense<0.000000e+00> : vector<16x256xf32>
    %14 = tpu.matmul %12, %13, %cst_12 {dimension_numbers = #tpu.dot_dimension_numbers<[1], [0], [0], [1], [0, 0, 1, 1], [], []>} : vector<16x512xbf16>, vector<512x256xbf16>, vector<16x256xf32> -> vector<16x256xf32>
    %c0_13 = arith.constant 0 : index
    %c0_14 = arith.constant 0 : index
    %15 = vector.load %arg7[%c0_13, %c0_14] : memref<1x256xf32, #tpu.memory_space<vmem>>, vector<1x256xf32>
    %16 = vector.broadcast %15 : vector<1x256xf32> to vector<16x256xf32>
    %17 = arith.addf %14, %16 : vector<16x256xf32>
    %18 = arith.truncf %17 : vector<16x256xf32> to vector<16x256xbf16>
    %c0_15 = arith.constant 0 : index
    %c0_16 = arith.constant 0 : index
    %19 = vector.load %arg8[%c0_15, %c0_16] : memref<256x256xbf16, #tpu.memory_space<vmem>>, vector<256x256xbf16>
    %cst_17 = arith.constant dense<0.000000e+00> : vector<16x256xf32>
    %20 = tpu.matmul %18, %19, %cst_17 {dimension_numbers = #tpu.dot_dimension_numbers<[1], [0], [0], [1], [0, 0, 1, 1], [], []>} : vector<16x256xbf16>, vector<256x256xbf16>, vector<16x256xf32> -> vector<16x256xf32>
    %c0_18 = arith.constant 0 : index
    %c0_19 = arith.constant 0 : index
    %21 = vector.load %arg9[%c0_18, %c0_19] : memref<1x256xf32, #tpu.memory_space<vmem>>, vector<1x256xf32>
    %22 = vector.broadcast %21 : vector<1x256xf32> to vector<16x256xf32>
    %23 = arith.addf %20, %22 : vector<16x256xf32>
    %24 = arith.truncf %23 : vector<16x256xf32> to vector<16x256xbf16>
    %c0_20 = arith.constant 0 : index
    %c0_21 = arith.constant 0 : index
    %25 = vector.load %arg10[%c0_20, %c0_21] : memref<256x128xbf16, #tpu.memory_space<vmem>>, vector<256x128xbf16>
    %cst_22 = arith.constant dense<0.000000e+00> : vector<16x128xf32>
    %26 = tpu.matmul %24, %25, %cst_22 {dimension_numbers = #tpu.dot_dimension_numbers<[1], [0], [0], [1], [0, 0, 1, 1], [], []>} : vector<16x256xbf16>, vector<256x128xbf16>, vector<16x128xf32> -> vector<16x128xf32>
    %c0_23 = arith.constant 0 : index
    %c0_24 = arith.constant 0 : index
    %27 = vector.load %arg11[%c0_23, %c0_24] : memref<1x128xf32, #tpu.memory_space<vmem>>, vector<1x128xf32>
    %28 = vector.broadcast %27 : vector<1x128xf32> to vector<16x128xf32>
    %29 = arith.addf %26, %28 : vector<16x128xf32>
    %c0_25 = arith.constant 0 : index
    %c0_26 = arith.constant 0 : index
    %30 = vector.load %arg12[%c0_25, %c0_26] : memref<128x128xf32, #tpu.memory_space<vmem>>, vector<128x128xf32>
    %cst_27 = arith.constant dense<0.000000e+00> : vector<16x128xf32>
    %31 = tpu.matmul %29, %30, %cst_27 {dimension_numbers = #tpu.dot_dimension_numbers<[1], [0], [0], [1], [0, 0, 1, 1], [], []>} : vector<16x128xf32>, vector<128x128xf32>, vector<16x128xf32> -> vector<16x128xf32>
    %c0_28 = arith.constant 0 : index
    %c0_29 = arith.constant 0 : index
    %32 = vector.load %arg13[%c0_28, %c0_29] : memref<1x128xf32, #tpu.memory_space<vmem>>, vector<1x128xf32>
    %33 = vector.broadcast %32 : vector<1x128xf32> to vector<16x128xf32>
    %34 = arith.addf %31, %33 : vector<16x128xf32>
    %35 = tpu.iota {dimensions = array<i32: 1>} : vector<16x128xi32>
    %c10_i32 = arith.constant 10 : i32
    %36 = vector.broadcast %c10_i32 : i32 to vector<16x128xi32>
    %37 = arith.cmpi slt, %35, %36 : vector<16x128xi32>
    %cst_30 = arith.constant -1.000000e+30 : f32
    %38 = vector.broadcast %cst_30 : f32 to vector<16x128xf32>
    %39 = arith.select %37, %34, %38 : vector<16x128xi1>, vector<16x128xf32>
    %cst_31 = arith.constant dense<0xFF800000> : vector<16xf32>
    %40 = vector.multi_reduction <maximumf>, %39, %cst_31 [1] : vector<16x128xf32> to vector<16xf32>
    %41 = vector.shape_cast %40 : vector<16xf32> to vector<16x1xf32>
    %42 = vector.broadcast %41 : vector<16x1xf32> to vector<16x128xf32>
    %43 = arith.subf %39, %42 : vector<16x128xf32>
    %44 = math.exp %43 : vector<16x128xf32>
    %cst_32 = arith.constant dense<0.000000e+00> : vector<16xf32>
    %45 = vector.multi_reduction <add>, %44, %cst_32 [1] : vector<16x128xf32> to vector<16xf32>
    %46 = vector.shape_cast %45 : vector<16xf32> to vector<16x1xf32>
    %47 = math.log %46 : vector<16x1xf32>
    %48 = vector.broadcast %47 : vector<16x1xf32> to vector<16x128xf32>
    %49 = arith.subf %43, %48 : vector<16x128xf32>
    %c0_33 = arith.constant 0 : index
    %c0_34 = arith.constant 0 : index
    %50 = vector.load %arg14[%c0_33, %c0_34] : memref<16x128xf32, #tpu.memory_space<vmem>>, vector<16x128xf32>
    tpu.vector_store %arg14[%c0_33, %c0_34], %49 {strides = array<i32>} : memref<16x128xf32, #tpu.memory_space<vmem>>, vector<16x128xf32>,
    return
  }
  func.func @transform_0(%arg0: i32) -> (i32, i32) {
    %c0_i32 = arith.constant 0 : i32
    %c0_i32_0 = arith.constant 0 : i32
    return %arg0, %c0_i32 : i32, i32
  }
  func.func @transform_1(%arg0: i32) -> (i32, i32) {
    %c0_i32 = arith.constant 0 : i32
    %c0_i32_0 = arith.constant 0 : i32
    %c0_i32_1 = arith.constant 0 : i32
    return %c0_i32, %c0_i32_0 : i32, i32
  }
  func.func @transform_2(%arg0: i32) -> (i32, i32) {
    %c0_i32 = arith.constant 0 : i32
    %c0_i32_0 = arith.constant 0 : i32
    %c0_i32_1 = arith.constant 0 : i32
    return %c0_i32, %c0_i32_0 : i32, i32
  }
  func.func @transform_3(%arg0: i32) -> (i32, i32) {
    %c0_i32 = arith.constant 0 : i32
    %c0_i32_0 = arith.constant 0 : i32
    %c0_i32_1 = arith.constant 0 : i32
    return %c0_i32, %c0_i32_0 : i32, i32
  }
  func.func @transform_4(%arg0: i32) -> (i32, i32) {
    %c0_i32 = arith.constant 0 : i32
    %c0_i32_0 = arith.constant 0 : i32
    %c0_i32_1 = arith.constant 0 : i32
    return %c0_i32, %c0_i32_0 : i32, i32
  }
  func.func @transform_5(%arg0: i32) -> (i32, i32) {
    %c0_i32 = arith.constant 0 : i32
    %c0_i32_0 = arith.constant 0 : i32
    %c0_i32_1 = arith.constant 0 : i32
    return %c0_i32, %c0_i32_0 : i32, i32
  }
  func.func @transform_6(%arg0: i32) -> (i32, i32) {
    %c0_i32 = arith.constant 0 : i32
    %c0_i32_0 = arith.constant 0 : i32
    %c0_i32_1 = arith.constant 0 : i32
    return %c0_i32, %c0_i32_0 : i32, i32
  }
  func.func @transform_7(%arg0: i32) -> (i32, i32) {
    %c0_i32 = arith.constant 0 : i32
    %c0_i32_0 = arith.constant 0 : i32
    %c0_i32_1 = arith.constant 0 : i32
    return %c0_i32, %c0_i32_0 : i32, i32
  }
  func.func @transform_8(%arg0: i32) -> (i32, i32) {
    %c0_i32 = arith.constant 0 : i32
    %c0_i32_0 = arith.constant 0 : i32
    %c0_i32_1 = arith.constant 0 : i32
    return %c0_i32, %c0_i32_0 : i32, i32
  }
  func.func @transform_9(%arg0: i32) -> (i32, i32) {
    %c0_i32 = arith.constant 0 : i32
    %c0_i32_0 = arith.constant 0 : i32
    %c0_i32_1 = arith.constant 0 : i32
    return %c0_i32, %c0_i32_0 : i32, i32
  }
  func.func @transform_10(%arg0: i32) -> (i32, i32) {
    %c0_i32 = arith.constant 0 : i32
    %c0_i32_0 = arith.constant 0 : i32
    %c0_i32_1 = arith.constant 0 : i32
    return %c0_i32, %c0_i32_0 : i32, i32
  }
  func.func @transform_11(%arg0: i32) -> (i32, i32) {
    %c0_i32 = arith.constant 0 : i32
    %c0_i32_0 = arith.constant 0 : i32
    %c0_i32_1 = arith.constant 0 : i32
    return %c0_i32, %c0_i32_0 : i32, i32
  }
  func.func @transform_12(%arg0: i32) -> (i32, i32) {
    %c0_i32 = arith.constant 0 : i32
    %c0_i32_0 = arith.constant 0 : i32
    %c0_i32_1 = arith.constant 0 : i32
    return %c0_i32, %c0_i32_0 : i32, i32
  }
  func.func @transform_13(%arg0: i32) -> (i32, i32) {
    %c0_i32 = arith.constant 0 : i32
    %c0_i32_0 = arith.constant 0 : i32
    return %arg0, %c0_i32 : i32, i32
  }
}

</mosaic_0001>

<bundles_post_ra>
// kernel: linear_mnist_forward.1
= control target key start
LH: loop header
LB: loop body
LE: loop exit
PB: predicated region body
PF: predicated region fallthrough
CT: control target
= control target key end

     0   :  { %vm1274_vm0 = vcmask 130048   ;;  %s8770_s1 = inlined_call_operand.vmem [shape: bf16[784,512], index: 1, kind: input, shape index: {}]   ;;  %s8771_s0 = inlined_call_operand.vmem [shape: bf16[16,784], index: 0, kind: input, shape index: {}]   ;;  %s8772_s3 = inlined_call_operand.vmem [shape: bf16[512,512], index: 3, kind: input, shape index: {}]   ;;  %s8773_s2 = inlined_call_operand.vmem [shape: f32[1,512], index: 2, kind: input, shape index: {}]   ;;  %s8774_s5 = inlined_call_operand.vmem [shape: bf16[512,256], index: 5, kind: input, shape index: {}]   ;;  %s8775_s4 = inlined_call_operand.vmem [shape: f32[1,512], index: 4, kind: input, shape index: {}]   ;;  %s8776_s7 = inlined_call_operand.vmem [shape: bf16[256,256], index: 7, kind: input, shape index: {}]   ;;  %s8777_s6 = inlined_call_operand.vmem [shape: f32[1,256], index: 6, kind: input, shape index: {}]   ;;  %s8778_s9 = inlined_call_operand.vmem [shape: bf16[256,128], index: 9, kind: input, shape index: {}]   ;;  %s8779_s11 = inlined_call_operand.vmem [shape: f32[128,128], index: 11, kind: input, shape index: {}]   ;;  %s8780_s8 = inlined_call_operand.vmem [shape: f32[1,256], index: 8, kind: input, shape index: {}]   ;;  %s8781_s10 = inlined_call_operand.vmem [shape: f32[1,128], index: 10, kind: input, shape index: {}]   ;;  %s8782_s12 = inlined_call_operand.vmem [shape: f32[1,128], index: 12, kind: input, shape index: {}]   ;;  %s8783_s13 = inlined_call_operand.vmem [shape: f32[16,128], index: 13, kind: output, shape index: {}]  }
   0x1   :  { %v3816_v0 = vld [vmem:[%s8770_s1 + $0xe0] sm:$0xf]  ;;  %v5487_v1 = vld [vmem:[%s8770_s1 + $0xec] sm:$0xf0] }
   0x2   :  { %v3944_v2 = vld [vmem:[%s8770_s1 + $0x1e0] sm:$0xf]  ;;  %v3817_v3 = vor.u32 %v5487_v1, %v3816_v0  ;;  %v5519_v4 = vld [vmem:[%s8770_s1 + $0x1ec] sm:$0xf0] }
   0x3   :  { %v4072_v5 = vld [vmem:[%s8770_s1 + $0x2e0] sm:$0xf]  ;;  %v5551_v6 = vld [vmem:[%s8770_s1 + $0x2ec] sm:$0xf0]  ;;  %v3945_v7 = vor.u32 %v5519_v4, %v3944_v2 }
   0x4   :  { %v4073_v8 = vor.u32 %v5551_v6, %v4072_v5  ;;  %v4200_v9 = vld [vmem:[%s8770_s1 + $0x3e0] sm:$0xf]  ;;  %v5583_v10 = vld [vmem:[%s8770_s1 + $0x3ec] sm:$0xf0]  ;;  %1278 = vmatpush.bf16.msra.mxu0 %v3817_v3 }
   0x5   :  { %v3800_v11 = vld [vmem:[%s8770_s1 + $0xc0] sm:$0xf]  ;;  %v4201_v12 = vor.u32 %v5583_v10, %v4200_v9  ;;  %v5483_v13 = vld [vmem:[%s8770_s1 + $0xcc] sm:$0xf0]  ;;  %1292 = vmatpush.bf16.msra.mxu1 %v3945_v7 }
   0x6   :  { %v3928_v14 = vld [vmem:[%s8770_s1 + $0x1c0] sm:$0xf]  ;;  %v5515_v15 = vld [vmem:[%s8770_s1 + $0x1cc] sm:$0xf0]  ;;  %1306 = vmatpush.bf16.msra.mxu2 %v4073_v8  ;;  %v3801_v16 = vor.u32 %v5483_v13, %v3800_v11 }
   0x7   :  { %v3929_v17 = vor.u32 %v5515_v15, %v3928_v14  ;;  %v4056_v18 = vld [vmem:[%s8770_s1 + $0x2c0] sm:$0xf]  ;;  %v5547_v19 = vld [vmem:[%s8770_s1 + $0x2cc] sm:$0xf0]  ;;  %1320 = vmatpush.bf16.msra.mxu3 %v4201_v12 }
   0x8   :  { %v4184_v20 = vld [vmem:[%s8770_s1 + $0x3c0] sm:$0xf]  ;;  %v4057_v21 = vor.u32 %v5547_v19, %v4056_v18  ;;  %v5579_v22 = vld [vmem:[%s8770_s1 + $0x3cc] sm:$0xf0]  ;;  %1279 = vmatpush.bf16.msra.mxu0 %v3801_v16 }
   0x9   :  { %v3784_v23 = vld [vmem:[%s8770_s1 + $0xa0] sm:$0xf]  ;;  %v5479_v24 = vld [vmem:[%s8770_s1 + $0xac] sm:$0xf0]  ;;  %v4185_v25 = vor.u32 %v5579_v22, %v4184_v20  ;;  %1293 = vmatpush.bf16.msra.mxu1 %v3929_v17 }
   0xa   :  { %v3912_v26 = vld [vmem:[%s8770_s1 + $0x1a0] sm:$0xf]  ;;  %v5511_v27 = vld [vmem:[%s8770_s1 + $0x1ac] sm:$0xf0]  ;;  %v3785_v29 = vor.u32 %v5479_v24, %v3784_v23  ;;  %1307 = vmatpush.bf16.msra.mxu2 %v4057_v21 }
   0xb   :  { %v4040_v28 = vld [vmem:[%s8770_s1 + $0x2a0] sm:$0xf]  ;;  %v5543_v30 = vld [vmem:[%s8770_s1 + $0x2ac] sm:$0xf0]  ;;  %v3913_v33 = vor.u32 %v5511_v27, %v3912_v26  ;;  %1321 = vmatpush.bf16.msra.mxu3 %v4185_v25 }
   0xc   :  { %v4168_v31 = vld [vmem:[%s8770_s1 + $0x3a0] sm:$0xf]  ;;  %v5575_v32 = vld [vmem:[%s8770_s1 + $0x3ac] sm:$0xf0]  ;;  %v4041_v34 = vor.u32 %v5543_v30, %v4040_v28  ;;  %1280 = vmatpush.bf16.msra.mxu0 %v3785_v29 }
   0xd   :  { %v3768_v35 = vld [vmem:[%s8770_s1 + $0x80] sm:$0xf]  ;;  %v5475_v36 = vld [vmem:[%s8770_s1 + $0x8c] sm:$0xf0]  ;;  %v4169_v38 = vor.u32 %v5575_v32, %v4168_v31  ;;  %1294 = vmatpush.bf16.msra.mxu1 %v3913_v33  ;;  %v5485_v32 = vld [vmem:[%s8770_s1 + $0xe4] sm:$0xf] }
   0xe   :  { %v3896_v37 = vld [vmem:[%s8770_s1 + $0x180] sm:$0xf]  ;;  %v5507_v39 = vld [vmem:[%s8770_s1 + $0x18c] sm:$0xf0]  ;;  %v3769_v44 = vor.u32 %v5475_v36, %v3768_v35  ;;  %1308 = vmatpush.bf16.msra.mxu2 %v4041_v34  ;;  %v3818_v33 = vld [vmem:[%s8770_s1 + $0xf0] sm:$0xf0] }
   0xf   :  { %v4024_v40 = vld [vmem:[%s8770_s1 + $0x280] sm:$0xf]  ;;  %v5539_v41 = vld [vmem:[%s8770_s1 + $0x28c] sm:$0xf0]  ;;  %v3897_v45 = vor.u32 %v5507_v39, %v3896_v37  ;;  %1322 = vmatpush.bf16.msra.mxu3 %v4169_v38  ;;  %v3684_v34 = vld [vmem:[%s8771_s0 + $0x8] sm:$0xf] }
  0x10   :  { %v4152_v42 = vld [vmem:[%s8770_s1 + $0x380] sm:$0xf]  ;;  %v5571_v43 = vld [vmem:[%s8770_s1 + $0x38c] sm:$0xf0]  ;;  %v4025_v46 = vor.u32 %v5539_v41, %v4024_v40  ;;  %1281 = vmatpush.bf16.msra.mxu0 %v3769_v44  ;;  %v5454_v36 = vld [vmem:[%s8771_s0 + $0x20] sm:$0xf0] }
  0x11   :  { %v3752_v47 = vld [vmem:[%s8770_s1 + $0x60] sm:$0xf]  ;;  %v5471_v48 = vld [vmem:[%s8770_s1 + $0x6c] sm:$0xf0]  ;;  %v4153_v50 = vor.u32 %v5571_v43, %v4152_v42  ;;  %1295 = vmatpush.bf16.msra.mxu1 %v3897_v45  ;;  %v5517_v41 = vld [vmem:[%s8770_s1 + $0x1e4] sm:$0xf] }
  0x12   :  { %v3880_v49 = vld [vmem:[%s8770_s1 + $0x160] sm:$0xf]  ;;  %v5503_v51 = vld [vmem:[%s8770_s1 + $0x16c] sm:$0xf0]  ;;  %v3753_v56 = vor.u32 %v5471_v48, %v3752_v47  ;;  %1309 = vmatpush.bf16.msra.mxu2 %v4025_v46  ;;  %v5453_v43 = vld [vmem:[%s8771_s0 + $0x18] sm:$0xf0] }
  0x13   :  { %v4008_v52 = vld [vmem:[%s8770_s1 + $0x260] sm:$0xf]  ;;  %v5535_v53 = vld [vmem:[%s8770_s1 + $0x26c] sm:$0xf0]  ;;  %v3881_v57 = vor.u32 %v5503_v51, %v3880_v49  ;;  %1323 = vmatpush.bf16.msra.mxu3 %v4153_v50  ;;  %v3946_v46 = vld [vmem:[%s8770_s1 + $0x1f0] sm:$0xf0]  ;;  %v3821_v50 = vor.u32 %v5485_v32, %v3818_v33 }
  0x14   :  { %v4136_v54 = vld [vmem:[%s8770_s1 + $0x360] sm:$0xf]  ;;  %v5567_v55 = vld [vmem:[%s8770_s1 + $0x36c] sm:$0xf0]  ;;  %v4009_v58 = vor.u32 %v5535_v53, %v4008_v52  ;;  %1282 = vmatpush.bf16.msra.mxu0 %v3753_v56  ;;  %v5451_v47 = vld [vmem:[%s8771_s0 + $0xc] sm:$0xf] }
  0x15   :  { %v3736_v59 = vld [vmem:[%s8770_s1 + $0x40] sm:$0xf]  ;;  %v5467_v60 = vld [vmem:[%s8770_s1 + $0x4c] sm:$0xf0]  ;;  %v4137_v62 = vor.u32 %v5567_v55, %v4136_v54  ;;  %1296 = vmatpush.bf16.msra.mxu1 %v3881_v57  ;;  %v3686_v48 = vld [vmem:[%s8771_s0 + $0x24] sm:$0xf0]  ;;  %v6222_v54 = vor.u32 %v5454_v36, %v3684_v34 }
  0x16   :  { %v3864_v61 = vld [vmem:[%s8770_s1 + $0x140] sm:$0xf]  ;;  %v5499_v63 = vld [vmem:[%s8770_s1 + $0x14c] sm:$0xf0]  ;;  %v3737_v4 = vor.u32 %v5467_v60, %v3736_v59  ;;  %1310 = vmatpush.bf16.msra.mxu2 %v4009_v58  ;;  %v5481_v57 = vld [vmem:[%s8770_s1 + $0xc4] sm:$0xf]  ;;  %v6235_v60 = vor.u32 %v5451_v47, %v3686_v48 }
  0x17   :  { %v3992_v0 = vld [vmem:[%s8770_s1 + $0x240] sm:$0xf]  ;;  %v5531_v1 = vld [vmem:[%s8770_s1 + $0x24c] sm:$0xf0]  ;;  %v3865_v6 = vor.u32 %v5499_v63, %v3864_v61  ;;  %1324 = vmatpush.bf16.msra.mxu3 %v4137_v62  ;;  %v3802_v58 = vld [vmem:[%s8770_s1 + $0xd0] sm:$0xf0]  ;;  %v3949_v63 = vor.u32 %v5517_v41, %v3946_v46 }
  0x18   :  { %v4120_v2 = vld [vmem:[%s8770_s1 + $0x340] sm:$0xf]  ;;  %v5563_v3 = vld [vmem:[%s8770_s1 + $0x34c] sm:$0xf0]  ;;  %v3993_v7 = vor.u32 %v5531_v1, %v3992_v0  ;;  %1283 = vmatpush.bf16.msra.mxu0 %v3737_v4  ;;  %v5450_v61 = vld [vmem:[%s8771_s0 + $0x4] sm:$0xf]  ;;  %v3805_v4 = vor.u32 %v5481_v57, %v3802_v58 }
  0x19   :  { %v3720_v5 = vld [vmem:[%s8770_s1 + $0x20] sm:$0xf]  ;;  %v5463_v8 = vld [vmem:[%s8770_s1 + $0x2c] sm:$0xf0]  ;;  %v4121_v11 = vor.u32 %v5563_v3, %v4120_v2  ;;  %1297 = vmatpush.bf16.msra.mxu1 %v3865_v6  ;;  %v5513_v1 = vld [vmem:[%s8770_s1 + $0x1c4] sm:$0xf] }
  0x1a   :  { %v3848_v9 = vld [vmem:[%s8770_s1 + $0x120] sm:$0xf]  ;;  %v5495_v10 = vld [vmem:[%s8770_s1 + $0x12c] sm:$0xf0]  ;;  %v3721_v18 = vor.u32 %v5463_v8, %v3720_v5  ;;  %1311 = vmatpush.bf16.msra.mxu2 %v3993_v7  ;;  %v3930_v2 = vld [vmem:[%s8770_s1 + $0x1d0] sm:$0xf0] }
  0x1b   :  { %v3976_v12 = vld [vmem:[%s8770_s1 + $0x220] sm:$0xf]  ;;  %v5527_v13 = vld [vmem:[%s8770_s1 + $0x22c] sm:$0xf0]  ;;  %v3849_v23 = vor.u32 %v5495_v10, %v3848_v9  ;;  %1325 = vmatpush.bf16.msra.mxu3 %v4121_v11  ;;  %v5477_v10 = vld [vmem:[%s8770_s1 + $0xa4] sm:$0xf] }
  0x1c   :  { %v4104_v14 = vld [vmem:[%s8770_s1 + $0x320] sm:$0xf]  ;;  %v5559_v15 = vld [vmem:[%s8770_s1 + $0x32c] sm:$0xf0]  ;;  %v3977_v24 = vor.u32 %v5527_v13, %v3976_v12  ;;  %1284 = vmatpush.bf16.msra.mxu0 %v3721_v18  ;;  %v3786_v11 = vld [vmem:[%s8770_s1 + $0xb0] sm:$0xf0]  ;;  %v3933_v12 = vor.u32 %v5513_v1, %v3930_v2 }
  0x1d   :  { %v3704_v16 = vld [vmem:[%s8770_s1] sm:$0xf]  ;;  %v5459_v17 = vld [vmem:[%s8770_s1 + $0xc] sm:$0xf0]  ;;  %v4105_v28 = vor.u32 %v5559_v15, %v4104_v14  ;;  %1298 = vmatpush.bf16.msra.mxu1 %v3849_v23  ;;  %v5509_v14 = vld [vmem:[%s8770_s1 + $0x1a4] sm:$0xf] }
  0x1e   :  { %v3832_v19 = vld [vmem:[%s8770_s1 + $0x100] sm:$0xf]  ;;  %v5491_v20 = vld [vmem:[%s8770_s1 + $0x10c] sm:$0xf0]  ;;  %v3705_v35 = vor.u32 %v5459_v17, %v3704_v16  ;;  %1312 = vmatpush.bf16.msra.mxu2 %v3977_v24  ;;  %v3914_v15 = vld [vmem:[%s8770_s1 + $0x1b0] sm:$0xf0]  ;;  %v3789_v17 = vor.u32 %v5477_v10, %v3786_v11 }
  0x1f   :  { %v3960_v21 = vld [vmem:[%s8770_s1 + $0x200] sm:$0xf]  ;;  %v5523_v22 = vld [vmem:[%s8770_s1 + $0x20c] sm:$0xf0]  ;;  %v3833_v39 = vor.u32 %v5491_v20, %v3832_v19  ;;  %1326 = vmatpush.bf16.msra.mxu3 %v4105_v28  ;;  %v3770_v23 = vld [vmem:[%s8770_s1 + $0x90] sm:$0xf0]  ;;  %v3917_v24 = vor.u32 %v5509_v14, %v3914_v15 }
  0x20   :  { %v4088_v25 = vld [vmem:[%s8770_s1 + $0x300] sm:$0xf]  ;;  %v5555_v26 = vld [vmem:[%s8770_s1 + $0x30c] sm:$0xf0]  ;;  %v3961_v40 = vor.u32 %v5523_v22, %v3960_v21  ;;  %1285 = vmatpush.bf16.msra.mxu0 %v3705_v35  ;;  %v5473_v22 = vld [vmem:[%s8770_s1 + $0x84] sm:$0xf] }
  0x21   :  { %v4328_v27 = vld [vmem:[%s8770_s1 + $0x4e0] sm:$0xf]  ;;  %v5615_v29 = vld [vmem:[%s8770_s1 + $0x4ec] sm:$0xf0]  ;;  %v4089_v44 = vor.u32 %v5555_v26, %v4088_v25  ;;  %1299 = vmatpush.bf16.msra.mxu1 %v3833_v39  ;;  %v5505_v26 = vld [vmem:[%s8770_s1 + $0x184] sm:$0xf] }
  0x22   :  { %v4456_v30 = vld [vmem:[%s8770_s1 + $0x5e0] sm:$0xf]  ;;  %v5647_v31 = vld [vmem:[%s8770_s1 + $0x5ec] sm:$0xf0]  ;;  %v4329_v45 = vor.u32 %v5615_v29, %v4328_v27  ;;  %1313 = vmatpush.bf16.msra.mxu2 %v3961_v40  ;;  %v3898_v27 = vld [vmem:[%s8770_s1 + $0x190] sm:$0xf0]  ;;  %v3773_v29 = vor.u32 %v5473_v22, %v3770_v23 }
  0x23   :  { %v4472_v37 = vld [vmem:[%s8770_s1 + $0x600] sm:$0xf]  ;;  %v5651_v38 = vld [vmem:[%s8770_s1 + $0x60c] sm:$0xf0]  ;;  %v4457_v49 = vor.u32 %v5647_v31, %v4456_v30  ;;  %1327 = vmatpush.bf16.msra.mxu3 %v4089_v44  ;;  %v5469_v34 = vld [vmem:[%s8770_s1 + $0x64] sm:$0xf] }
  0x24   :  { %v3676_v42 = vld [vmem:[%s8771_s0] sm:$0xf]  ;;  %v5611_v52 = vld [vmem:[%s8770_s1 + $0x4cc] sm:$0xf0]  ;;  %v4473_v59 = vor.u32 %v5651_v38, %v4472_v37  ;;  %1334 = vmatpush.bf16.msrb.mxu0 %v4329_v45  ;;  %v3754_v35 = vld [vmem:[%s8770_s1 + $0x70] sm:$0xf0]  ;;  %v3901_v38 = vor.u32 %v5505_v26, %v3898_v27 }
  0x25   :  { %v4312_v51 = vld [vmem:[%s8770_s1 + $0x4c0] sm:$0xf]  ;;  %v6224_v55 = vor.u32 %v5453_v43, %v3676_v42  ;;  %v5643_v56 = vld [vmem:[%s8770_s1 + $0x5cc] sm:$0xf0]  ;;  %1348 = vmatpush.bf16.msrb.mxu1 %v4457_v49  ;;  %1314 = vmatmul.bf16.vlgmr.msra.gmra.mxu2 %v6222_v54  ;;  %v3700_v36 = vld [vmem:[%s8771_s0 + $0x18] sm:$0xf]  ;;  %v3757_v43 = vor.u32 %v5469_v34, %v3754_v35 }
  0x26   :  { %v4440_v53 = vld [vmem:[%s8770_s1 + $0x5c0] sm:$0xf]  ;;  %v4313_v0 = vor.u32 %v5611_v52, %v4312_v51  ;;  %v5607_v6 = vld [vmem:[%s8770_s1 + $0x4ac] sm:$0xf0]  ;;  %1369 = vmatpush.bf16.msrb.mxu2 %v4473_v59  ;;  %1328 = vmatmul.bf16.vlgmr.msra.gmra.mxu3 %v6235_v60  ;;  %v5456_v37 = vld [vmem:[%s8771_s0 + $0x30] sm:$0xf0] }
  0x27   :  { %v3678_v62 = vld [vmem:[%s8771_s0 + $0x1c] sm:$0xf0]  ;;  %1376 = vmatpush.bf16.msrb.mxu3 %v3821_v50  ;;  %v4441_v3 = vor.u32 %v5643_v56, %v4440_v53  ;;  %1286 = vmatmul.bf16.vlgmr.msra.gmra.mxu0 %v6224_v55  ;;  %v5639_v9 = vld [vmem:[%s8770_s1 + $0x5ac] sm:$0xf0]  ;;  %v5501_v40 = vld [vmem:[%s8770_s1 + $0x164] sm:$0xf]  ;;  %v6351_v50 = vor.u32 %v5456_v37, %v3700_v36 }
  0x28   :  { %v4296_v5 = vld [vmem:[%s8770_s1 + $0x4a0] sm:$0xf]  ;;  %v6260_v8 = vor.u32 %v5450_v61, %v3678_v62  ;;  %1335 = vmatpush.bf16.msrb.mxu0 %v4313_v0  ;;  %v5603_v19 = vld [vmem:[%s8770_s1 + $0x48c] sm:$0xf0]  ;;  %v3882_v41 = vld [vmem:[%s8770_s1 + $0x170] sm:$0xf0] }
  0x29   :  { %v4424_v7 = vld [vmem:[%s8770_s1 + $0x5a0] sm:$0xf]  ;;  %v4297_v13 = vor.u32 %v5607_v6, %v4296_v5  ;;  %1349 = vmatpush.bf16.msrb.mxu1 %v4441_v3  ;;  %v5635_v21 = vld [vmem:[%s8770_s1 + $0x58c] sm:$0xf0]  ;;  %v5465_v48 = vld [vmem:[%s8770_s1 + $0x44] sm:$0xf]  ;;  %v3885_v51 = vor.u32 %v5501_v40, %v3882_v41 }
  0x2a   :  { %1390 = vmatpush.bf16.msra.mxu2 %v3949_v63  ;;  %v4425_v16 = vor.u32 %v5639_v9, %v4424_v7  ;;  %v4280_v18 = vld [vmem:[%s8770_s1 + $0x480] sm:$0xf]  ;;  %1300 = vmatmul.bf16.vlgmr.msra.gmra.mxu1 %v6260_v8  ;;  %v5599_v31 = vld [vmem:[%s8770_s1 + $0x46c] sm:$0xf0]  ;;  %v3738_v49 = vld [vmem:[%s8770_s1 + $0x50] sm:$0xf0] }
  0x2b   :  { %1377 = vmatpush.bf16.msrb.mxu3 %v3805_v4  ;;  %v4408_v20 = vld [vmem:[%s8770_s1 + $0x580] sm:$0xf]  ;;  %v4281_v25 = vor.u32 %v5603_v19, %v4280_v18  ;;  %v5631_v33 = vld [vmem:[%s8770_s1 + $0x56c] sm:$0xf0]  ;;  %v5497_v53 = vld [vmem:[%s8770_s1 + $0x144] sm:$0xf]  ;;  %v3741_v58 = vor.u32 %v5465_v48, %v3738_v49 }
  0x2c   :  { %1336 = vmatpush.bf16.msrb.mxu0 %v4297_v13  ;;  %v4409_v28 = vor.u32 %v5635_v21, %v4408_v20  ;;  %v4264_v30 = vld [vmem:[%s8770_s1 + $0x460] sm:$0xf]  ;;  %v5595_v45 = vld [vmem:[%s8770_s1 + $0x44c] sm:$0xf0]  ;;  %v3866_v56 = vld [vmem:[%s8770_s1 + $0x150] sm:$0xf0] }
  0x2d   :  { %1350 = vmatpush.bf16.msrb.mxu1 %v4425_v16  ;;  %v4392_v32 = vld [vmem:[%s8770_s1 + $0x560] sm:$0xf]  ;;  %v4265_v39 = vor.u32 %v5599_v31, %v4264_v30  ;;  %v5627_v47 = vld [vmem:[%s8770_s1 + $0x54c] sm:$0xf0]  ;;  %v5461_v0 = vld [vmem:[%s8770_s1 + $0x24] sm:$0xf]  ;;  %v3869_v4 = vor.u32 %v5497_v53, %v3866_v56 }
  0x2e   :  { %1391 = vmatpush.bf16.msra.mxu2 %v3933_v12  ;;  %v4393_v42 = vor.u32 %v5631_v33, %v4392_v32  ;;  %v4248_v44 = vld [vmem:[%s8770_s1 + $0x440] sm:$0xf]  ;;  %v5591_v61 = vld [vmem:[%s8770_s1 + $0x42c] sm:$0xf0]  ;;  %v3722_v1 = vld [vmem:[%s8770_s1 + $0x30] sm:$0xf0] }
  0x2f   :  { %1378 = vmatpush.bf16.msrb.mxu3 %v3789_v17  ;;  %v4376_v46 = vld [vmem:[%s8770_s1 + $0x540] sm:$0xf]  ;;  %v4249_v52 = vor.u32 %v5595_v45, %v4248_v44  ;;  %v5623_v63 = vld [vmem:[%s8770_s1 + $0x52c] sm:$0xf0]  ;;  %v5493_v2 = vld [vmem:[%s8770_s1 + $0x124] sm:$0xf]  ;;  %v3725_v11 = vor.u32 %v5461_v0, %v3722_v1 }
  0x30   :  { %1337 = vmatpush.bf16.msrb.mxu0 %v4281_v25  ;;  %v4377_v57 = vor.u32 %v5627_v47, %v4376_v46  ;;  %v4232_v59 = vld [vmem:[%s8770_s1 + $0x420] sm:$0xf]  ;;  %v3850_v3 = vld [vmem:[%s8770_s1 + $0x130] sm:$0xf0]  ;;  %v5587_v7 = vld [vmem:[%s8770_s1 + $0x40c] sm:$0xf0] }
  0x31   :  { %1351 = vmatpush.bf16.msrb.mxu1 %v4409_v28  ;;  %v4360_v62 = vld [vmem:[%s8770_s1 + $0x520] sm:$0xf]  ;;  %v4233_v5 = vor.u32 %v5591_v61, %v4232_v59  ;;  %v5619_v12 = vld [vmem:[%s8770_s1 + $0x50c] sm:$0xf0]  ;;  %v5457_v13 = vld [vmem:[%s8770_s1 + $0x4] sm:$0xf]  ;;  %v3853_v21 = vor.u32 %v5493_v2, %v3850_v3 }
  0x32   :  { %1392 = vmatpush.bf16.msra.mxu2 %v3917_v24  ;;  %v4216_v6 = vld [vmem:[%s8770_s1 + $0x400] sm:$0xf]  ;;  %v4361_v10 = vor.u32 %v5623_v63, %v4360_v62  ;;  %v3706_v14 = vld [vmem:[%s8770_s1 + $0x10] sm:$0xf0]  ;;  %v5549_v15 = vld [vmem:[%s8770_s1 + $0x2e4] sm:$0xf] }
  0x33   :  { %1379 = vmatpush.bf16.msrb.mxu3 %v3773_v29  ;;  %v4344_v9 = vld [vmem:[%s8770_s1 + $0x500] sm:$0xf]  ;;  %v4074_v16 = vld [vmem:[%s8770_s1 + $0x2f0] sm:$0xf0]  ;;  %v5581_v17 = vld [vmem:[%s8770_s1 + $0x3e4] sm:$0xf]  ;;  %v4217_v22 = vor.u32 %v5587_v7, %v4216_v6  ;;  %v3709_v27 = vor.u32 %v5457_v13, %v3706_v14 }
  0x34   :  { %1338 = vmatpush.bf16.msrb.mxu0 %v4265_v39  ;;  %v4202_v18 = vld [vmem:[%s8770_s1 + $0x3f0] sm:$0xf0]  ;;  %v5613_v19 = vld [vmem:[%s8770_s1 + $0x4e4] sm:$0xf]  ;;  %v3692_v23 = vld [vmem:[%s8771_s0 + $0x10] sm:$0xf]  ;;  %v4345_v26 = vor.u32 %v5619_v12, %v4344_v9  ;;  %v4077_v31 = vor.u32 %v5549_v15, %v4074_v16 }
  0x35   :  { %1352 = vmatpush.bf16.msrb.mxu1 %v4393_v42  ;;  %4486 = vmatmul.msk.bf16.vlgmr.msrb.gmra.mxu2 %vm1274_vm0, %v6351_v50  ;;  %v4330_v20 = vld [vmem:[%s8770_s1 + $0x4f0] sm:$0xf0]  ;;  %v5455_v24 = vld [vmem:[%s8771_s0 + $0x28] sm:$0xf0]  ;;  %v5489_v25 = vld [vmem:[%s8770_s1 + $0x104] sm:$0xf]  ;;  %v4205_v32 = vor.u32 %v5581_v17, %v4202_v18 }
  0x36   :  { %1393 = vmatpush.bf16.msra.mxu2 %v3901_v38  ;;  %v3834_v28 = vld [vmem:[%s8770_s1 + $0x110] sm:$0xf0]  ;;  %v3694_v30 = vld [vmem:[%s8771_s0 + $0x2c] sm:$0xf0]  ;;  %v5645_v33 = vld [vmem:[%s8770_s1 + $0x5e4] sm:$0xf]  ;;  %v4333_v36 = vor.u32 %v5613_v19, %v4330_v20  ;;  %v6448_v37 = vor.u32 %v5455_v24, %v3692_v23 }
  0x37   :  { %1380 = vmatpush.bf16.msrb.mxu3 %v3757_v43  ;;  %v5452_v29 = vld [vmem:[%s8771_s0 + $0x14] sm:$0xf]  ;;  %v5545_v35 = vld [vmem:[%s8770_s1 + $0x2c4] sm:$0xf]  ;;  %v3837_v41 = vor.u32 %v5489_v25, %v3834_v28 }
  0x38   :  { %1339 = vmatpush.bf16.msrb.mxu0 %v4249_v52  ;;  %v4458_v34 = vld [vmem:[%s8770_s1 + $0x5f0] sm:$0xf0]  ;;  %v5577_v39 = vld [vmem:[%s8770_s1 + $0x3c4] sm:$0xf]  ;;  %v6459_v42 = vor.u32 %v5452_v29, %v3694_v30 }
  0x39   :  { %1353 = vmatpush.bf16.msrb.mxu1 %v4377_v57  ;;  %v4058_v38 = vld [vmem:[%s8770_s1 + $0x2d0] sm:$0xf0]  ;;  %v5609_v43 = vld [vmem:[%s8770_s1 + $0x4c4] sm:$0xf]  ;;  %v4461_v45 = vor.u32 %v5645_v33, %v4458_v34 }
  0x3a   :  { %1394 = vmatpush.bf16.msra.mxu2 %v3885_v51  ;;  %v4186_v40 = vld [vmem:[%s8770_s1 + $0x3d0] sm:$0xf0]  ;;  %v4061_v46 = vor.u32 %v5545_v35, %v4058_v38  ;;  %v5641_v48 = vld [vmem:[%s8770_s1 + $0x5c4] sm:$0xf] }
  0x3b   :  { %1381 = vmatpush.bf16.msrb.mxu3 %v3741_v58  ;;  %v4314_v44 = vld [vmem:[%s8770_s1 + $0x4d0] sm:$0xf0]  ;;  %v4189_v47 = vor.u32 %v5577_v39, %v4186_v40  ;;  %v5541_v51 = vld [vmem:[%s8770_s1 + $0x2a4] sm:$0xf] }
  0x3c   :  { %1340 = vmatpush.bf16.msrb.mxu0 %v4233_v5  ;;  %v4442_v49 = vld [vmem:[%s8770_s1 + $0x5d0] sm:$0xf0]  ;;  %v4317_v52 = vor.u32 %v5609_v43, %v4314_v44  ;;  %v5573_v56 = vld [vmem:[%s8770_s1 + $0x3a4] sm:$0xf] }
  0x3d   :  { %1354 = vmatpush.bf16.msrb.mxu1 %v4361_v10  ;;  %v4042_v53 = vld [vmem:[%s8770_s1 + $0x2b0] sm:$0xf0]  ;;  %v5605_v58 = vld [vmem:[%s8770_s1 + $0x4a4] sm:$0xf]  ;;  %v4445_v61 = vor.u32 %v5641_v48, %v4442_v49 }
  0x3e   :  { %1395 = vmatpush.bf16.msra.mxu2 %v3869_v4  ;;  %v4170_v57 = vld [vmem:[%s8770_s1 + $0x3b0] sm:$0xf0]  ;;  %v4045_v62 = vor.u32 %v5541_v51, %v4042_v53  ;;  %v5637_v0 = vld [vmem:[%s8770_s1 + $0x5a4] sm:$0xf] }
  0x3f   :  { %1382 = vmatpush.bf16.msrb.mxu3 %v3725_v11  ;;  %v4298_v59 = vld [vmem:[%s8770_s1 + $0x4b0] sm:$0xf0]  ;;  %v4173_v63 = vor.u32 %v5573_v56, %v4170_v57  ;;  %v5537_v2 = vld [vmem:[%s8770_s1 + $0x284] sm:$0xf] }
  0x40   :  { %1341 = vmatpush.bf16.msrb.mxu0 %v4217_v22  ;;  %v4426_v1 = vld [vmem:[%s8770_s1 + $0x5b0] sm:$0xf0]  ;;  %v4301_v3 = vor.u32 %v5605_v58, %v4298_v59  ;;  %v5569_v5 = vld [vmem:[%s8770_s1 + $0x384] sm:$0xf] }
  0x41   :  { %1355 = vmatpush.bf16.msrb.mxu1 %v4345_v26  ;;  %v4026_v4 = vld [vmem:[%s8770_s1 + $0x290] sm:$0xf0]  ;;  %v5601_v7 = vld [vmem:[%s8770_s1 + $0x484] sm:$0xf]  ;;  %v4429_v10 = vor.u32 %v5637_v0, %v4426_v1  ;;  %v3824_v0 = vld [vmem:[%s8770_s1 + $0xe8] sm:$0xf] }
  0x42   :  { %1396 = vmatpush.bf16.msra.mxu2 %v3853_v21  ;;  %v4154_v6 = vld [vmem:[%s8770_s1 + $0x390] sm:$0xf0]  ;;  %v4029_v11 = vor.u32 %v5537_v2, %v4026_v4  ;;  %v5633_v13 = vld [vmem:[%s8770_s1 + $0x584] sm:$0xf]  ;;  %v5488_v1 = vld [vmem:[%s8770_s1 + $0xf4] sm:$0xf0] }
  0x43   :  { %1383 = vmatpush.bf16.msrb.mxu3 %v3709_v27  ;;  %1342 = vmatmul.bf16.vlgmr.msrb.gmra.mxu0 %v6448_v37  ;;  %v4282_v9 = vld [vmem:[%s8770_s1 + $0x490] sm:$0xf0]  ;;  %v4157_v12 = vor.u32 %v5569_v5, %v4154_v6  ;;  %v5533_v15 = vld [vmem:[%s8770_s1 + $0x264] sm:$0xf]  ;;  %v3952_v2 = vld [vmem:[%s8770_s1 + $0x1e8] sm:$0xf] }
  0x44   :  { %1404 = vmatpush.bf16.msra.mxu0 %v4077_v31  ;;  %1356 = vmatmul.bf16.vlgmr.msrb.gmra.mxu1 %v6459_v42  ;;  %v4410_v14 = vld [vmem:[%s8770_s1 + $0x590] sm:$0xf0]  ;;  %v4285_v16 = vor.u32 %v5601_v7, %v4282_v9  ;;  %v5565_v18 = vld [vmem:[%s8770_s1 + $0x364] sm:$0xf]  ;;  %v5520_v4 = vld [vmem:[%s8770_s1 + $0x1f4] sm:$0xf0] }
  0x45   :  { %1418 = vmatpush.bf16.msra.mxu1 %v4205_v32  ;;  %v4010_v17 = vld [vmem:[%s8770_s1 + $0x270] sm:$0xf0]  ;;  %v5597_v20 = vld [vmem:[%s8770_s1 + $0x464] sm:$0xf]  ;;  %v4413_v22 = vor.u32 %v5633_v13, %v4410_v14  ;;  %v3825_v13 = vor.u32 %v5488_v1, %v3824_v0  ;;  %v4080_v14 = vld [vmem:[%s8770_s1 + $0x2e8] sm:$0xf] }
  0x46   :  { %1397 = vmatpush.bf16.msra.mxu2 %v3837_v41  ;;  %1384 = vmatmul.bf16.vlgmr.msrb.gmra.mxu3 %v6224_v55  ;;  %v4138_v19 = vld [vmem:[%s8770_s1 + $0x370] sm:$0xf0]  ;;  %v4013_v23 = vor.u32 %v5533_v15, %v4010_v17  ;;  %v5629_v25 = vld [vmem:[%s8770_s1 + $0x564] sm:$0xf]  ;;  %v5552_v15 = vld [vmem:[%s8770_s1 + $0x2f4] sm:$0xf0]  ;;  %v3953_v17 = vor.u32 %v5520_v4, %v3952_v2 }
  0x47   :  { %1432 = vmatpush.bf16.msra.mxu3 %v4333_v36  ;;  %v4266_v21 = vld [vmem:[%s8770_s1 + $0x470] sm:$0xf0]  ;;  %v4141_v24 = vor.u32 %v5565_v18, %v4138_v19  ;;  %v5529_v27 = vld [vmem:[%s8770_s1 + $0x244] sm:$0xf]  ;;  %v5584_v19 = vld [vmem:[%s8770_s1 + $0x3f4] sm:$0xf0] }
  0x48   :  { %1405 = vmatpush.bf16.msra.mxu0 %v4061_v46  ;;  %v4394_v26 = vld [vmem:[%s8770_s1 + $0x570] sm:$0xf0]  ;;  %v4269_v28 = vor.u32 %v5597_v20, %v4266_v21  ;;  %v5561_v30 = vld [vmem:[%s8770_s1 + $0x344] sm:$0xf]  ;;  %v3808_v20 = vld [vmem:[%s8770_s1 + $0xc8] sm:$0xf] }
  0x49   :  { %1419 = vmatpush.bf16.msra.mxu1 %v4189_v47  ;;  %1398 = vmatmul.bf16.vlgmr.msra.gmra.mxu2 %v6260_v8  ;;  %v3994_v29 = vld [vmem:[%s8770_s1 + $0x250] sm:$0xf0]  ;;  %v5593_v32 = vld [vmem:[%s8770_s1 + $0x444] sm:$0xf]  ;;  %v4397_v34 = vor.u32 %v5629_v25, %v4394_v26  ;;  %v5484_v21 = vld [vmem:[%s8770_s1 + $0xd4] sm:$0xf0]  ;;  %v4081_v25 = vor.u32 %v5552_v15, %v4080_v14 }
  0x4a   :  { %1446 = vmatpush.bf16.msrb.mxu2 %v4461_v45  ;;  %v4122_v31 = vld [vmem:[%s8770_s1 + $0x350] sm:$0xf0]  ;;  %v3997_v35 = vor.u32 %v5529_v27, %v3994_v29  ;;  %v5625_v38 = vld [vmem:[%s8770_s1 + $0x544] sm:$0xf]  ;;  %v3809_v27 = vor.u32 %v5484_v21, %v3808_v20  ;;  %v5548_v29 = vld [vmem:[%s8770_s1 + $0x2d4] sm:$0xf0] }
  0x4b   :  { %1433 = vmatpush.bf16.msra.mxu3 %v4317_v52  ;;  %v4250_v33 = vld [vmem:[%s8770_s1 + $0x450] sm:$0xf0]  ;;  %v4125_v36 = vor.u32 %v5561_v30, %v4122_v31  ;;  %v5525_v40 = vld [vmem:[%s8770_s1 + $0x224] sm:$0xf]  ;;  %v4192_v30 = vld [vmem:[%s8770_s1 + $0x3c8] sm:$0xf] }
  0x4c   :  { %1406 = vmatpush.bf16.msra.mxu0 %v4045_v62  ;;  %v4378_v39 = vld [vmem:[%s8770_s1 + $0x550] sm:$0xf0]  ;;  %v4253_v41 = vor.u32 %v5593_v32, %v4250_v33  ;;  %v5557_v44 = vld [vmem:[%s8770_s1 + $0x324] sm:$0xf]  ;;  %v5580_v32 = vld [vmem:[%s8770_s1 + $0x3d4] sm:$0xf0] }
  0x4d   :  { %1420 = vmatpush.bf16.msra.mxu1 %v4173_v63  ;;  %v3978_v43 = vld [vmem:[%s8770_s1 + $0x230] sm:$0xf0]  ;;  %v5589_v46 = vld [vmem:[%s8770_s1 + $0x424] sm:$0xf]  ;;  %v4381_v48 = vor.u32 %v5625_v38, %v4378_v39  ;;  %v3792_v33 = vld [vmem:[%s8770_s1 + $0xa8] sm:$0xf]  ;;  %v4193_v39 = vor.u32 %v5580_v32, %v4192_v30 }
  0x4e   :  { %1447 = vmatpush.bf16.msrb.mxu2 %v4445_v61  ;;  %v4106_v45 = vld [vmem:[%s8770_s1 + $0x330] sm:$0xf0]  ;;  %v5621_v49 = vld [vmem:[%s8770_s1 + $0x524] sm:$0xf]  ;;  %v3981_v52 = vor.u32 %v5525_v40, %v3978_v43  ;;  %v5544_v43 = vld [vmem:[%s8770_s1 + $0x2b4] sm:$0xf0] }
  0x4f   :  { %1434 = vmatpush.bf16.msra.mxu3 %v4301_v3  ;;  %v4234_v47 = vld [vmem:[%s8770_s1 + $0x430] sm:$0xf0]  ;;  %v4109_v53 = vor.u32 %v5557_v44, %v4106_v45  ;;  %v5521_v56 = vld [vmem:[%s8770_s1 + $0x204] sm:$0xf]  ;;  %v4176_v44 = vld [vmem:[%s8770_s1 + $0x3a8] sm:$0xf] }
  0x50   :  { %1407 = vmatpush.bf16.msra.mxu0 %v4029_v11  ;;  %v4362_v51 = vld [vmem:[%s8770_s1 + $0x530] sm:$0xf0]  ;;  %v5553_v58 = vld [vmem:[%s8770_s1 + $0x304] sm:$0xf]  ;;  %v4237_v59 = vor.u32 %v5589_v46, %v4234_v47  ;;  %v5576_v46 = vld [vmem:[%s8770_s1 + $0x3b4] sm:$0xf0] }
  0x51   :  { %1421 = vmatpush.bf16.msra.mxu1 %v4157_v12  ;;  %v3962_v57 = vld [vmem:[%s8770_s1 + $0x210] sm:$0xf0]  ;;  %v5585_v62 = vld [vmem:[%s8770_s1 + $0x404] sm:$0xf]  ;;  %v4365_v3 = vor.u32 %v5621_v49, %v4362_v51  ;;  %v3776_v47 = vld [vmem:[%s8770_s1 + $0x88] sm:$0xf] }
  0x52   :  { %1448 = vmatpush.bf16.msrb.mxu2 %v4429_v10  ;;  %v4090_v61 = vld [vmem:[%s8770_s1 + $0x310] sm:$0xf0]  ;;  %v5649_v5 = vld [vmem:[%s8770_s1 + $0x604] sm:$0xf]  ;;  %v3965_v7 = vor.u32 %v5521_v56, %v3962_v57  ;;  %v3904_v49 = vld [vmem:[%s8770_s1 + $0x188] sm:$0xf] }
  0x53   :  { %1435 = vmatpush.bf16.msra.mxu3 %v4285_v16  ;;  %v4218_v63 = vld [vmem:[%s8770_s1 + $0x410] sm:$0xf0]  ;;  %v4093_v9 = vor.u32 %v5553_v58, %v4090_v61  ;;  %v5617_v10 = vld [vmem:[%s8770_s1 + $0x504] sm:$0xf]  ;;  %v4208_v16 = vld [vmem:[%s8770_s1 + $0x3e8] sm:$0xf] }
  0x54   :  { %1408 = vmatpush.bf16.msra.mxu0 %v4013_v23  ;;  %v4474_v6 = vld [vmem:[%s8770_s1 + $0x610] sm:$0xf0]  ;;  %v4221_v12 = vor.u32 %v5585_v62, %v4218_v63  ;;  %v3936_v23 = vld [vmem:[%s8770_s1 + $0x1c8] sm:$0xf]  ;;  %v4209_v26 = vor.u32 %v5584_v19, %v4208_v16  ;;  %v5508_v51 = vld [vmem:[%s8770_s1 + $0x194] sm:$0xf0] }
  0x55   :  { %1422 = vmatpush.bf16.msra.mxu1 %v4141_v24  ;;  %v4346_v11 = vld [vmem:[%s8770_s1 + $0x510] sm:$0xf0]  ;;  %v4477_v18 = vor.u32 %v5649_v5, %v4474_v6  ;;  %v5516_v24 = vld [vmem:[%s8770_s1 + $0x1d4] sm:$0xf0]  ;;  %v4032_v57 = vld [vmem:[%s8770_s1 + $0x288] sm:$0xf]  ;;  %v3905_v61 = vor.u32 %v5508_v51, %v3904_v49 }
  0x56   :  { %1449 = vmatpush.bf16.msrb.mxu2 %v4413_v22  ;;  %v4349_v22 = vor.u32 %v5617_v10, %v4346_v11  ;;  %v3937_v31 = vor.u32 %v5516_v24, %v3936_v23  ;;  %v5540_v58 = vld [vmem:[%s8770_s1 + $0x294] sm:$0xf0]  ;;  %v3760_v63 = vld [vmem:[%s8770_s1 + $0x68] sm:$0xf] }
  0x57   :  { %1436 = vmatpush.bf16.msra.mxu3 %v4269_v28  ;;  %v4064_v28 = vld [vmem:[%s8770_s1 + $0x2c8] sm:$0xf]  ;;  %v5572_v62 = vld [vmem:[%s8770_s1 + $0x394] sm:$0xf0] }
  0x58   :  { %1409 = vmatpush.bf16.msra.mxu0 %v3997_v35  ;;  %v3920_v35 = vld [vmem:[%s8770_s1 + $0x1a8] sm:$0xf]  ;;  %v4065_v38 = vor.u32 %v5548_v29, %v4064_v28  ;;  %v5472_v0 = vld [vmem:[%s8770_s1 + $0x74] sm:$0xf0] }
  0x59   :  { %1423 = vmatpush.bf16.msra.mxu1 %v4125_v36  ;;  %v5512_v36 = vld [vmem:[%s8770_s1 + $0x1b4] sm:$0xf0]  ;;  %v3888_v1 = vld [vmem:[%s8770_s1 + $0x168] sm:$0xf]  ;;  %v3761_v5 = vor.u32 %v5472_v0, %v3760_v63 }
  0x5a   :  { %1450 = vmatpush.bf16.msrb.mxu2 %v4397_v34  ;;  %v5480_v34 = vld [vmem:[%s8770_s1 + $0xb4] sm:$0xf0]  ;;  %v3921_v45 = vor.u32 %v5512_v36, %v3920_v35  ;;  %v4016_v6 = vld [vmem:[%s8770_s1 + $0x268] sm:$0xf] }
  0x5b   :  { %1437 = vmatpush.bf16.msra.mxu3 %v4253_v41  ;;  %v3793_v40 = vor.u32 %v5480_v34, %v3792_v33  ;;  %v4048_v41 = vld [vmem:[%s8770_s1 + $0x2a8] sm:$0xf]  ;;  %v5504_v2 = vld [vmem:[%s8770_s1 + $0x174] sm:$0xf0] }
  0x5c   :  { %1410 = vmatpush.bf16.msra.mxu0 %v3981_v52  ;;  %v4049_v52 = vor.u32 %v5544_v43, %v4048_v41  ;;  %v3889_v10 = vor.u32 %v5504_v2, %v3888_v1  ;;  %v5568_v11 = vld [vmem:[%s8770_s1 + $0x374] sm:$0xf0]  ;;  %v3872_v14 = vld [vmem:[%s8770_s1 + $0x148] sm:$0xf] }
  0x5d   :  { %1424 = vmatpush.bf16.msra.mxu1 %v4109_v53  ;;  %v4177_v53 = vor.u32 %v5576_v46, %v4176_v44  ;;  %v5500_v15 = vld [vmem:[%s8770_s1 + $0x154] sm:$0xf0]  ;;  %v4000_v19 = vld [vmem:[%s8770_s1 + $0x248] sm:$0xf] }
  0x5e   :  { %1451 = vmatpush.bf16.msrb.mxu2 %v4381_v48  ;;  %v5476_v48 = vld [vmem:[%s8770_s1 + $0x94] sm:$0xf0]  ;;  %v4128_v21 = vld [vmem:[%s8770_s1 + $0x348] sm:$0xf] }
  0x5f   :  { %1438 = vmatpush.bf16.msra.mxu3 %v4237_v59  ;;  %v3777_v56 = vor.u32 %v5476_v48, %v3776_v47  ;;  %v4160_v59 = vld [vmem:[%s8770_s1 + $0x388] sm:$0xf]  ;;  %v5532_v20 = vld [vmem:[%s8770_s1 + $0x254] sm:$0xf0] }
  0x60   :  { %1411 = vmatpush.bf16.msra.mxu0 %v3965_v7  ;;  %v4161_v4 = vor.u32 %v5572_v62, %v4160_v59  ;;  %v5536_v7 = vld [vmem:[%s8770_s1 + $0x274] sm:$0xf0]  ;;  %v3728_v24 = vld [vmem:[%s8770_s1 + $0x28] sm:$0xf]  ;;  %v4001_v28 = vor.u32 %v5532_v20, %v4000_v19  ;;  %v3826_v59 = vld [vmem:[%s8770_s1 + $0xf8] sm:$0xf0] }
  0x61   :  { %1425 = vmatpush.bf16.msra.mxu1 %v4093_v9  ;;  %v4144_v9 = vld [vmem:[%s8770_s1 + $0x368] sm:$0xf]  ;;  %v4017_v16 = vor.u32 %v5536_v7, %v4016_v6  ;;  %v5564_v23 = vld [vmem:[%s8770_s1 + $0x354] sm:$0xf0] }
  0x62   :  { %1452 = vmatpush.bf16.msrb.mxu2 %v4365_v3  ;;  %v4033_v3 = vor.u32 %v5540_v58, %v4032_v57  ;;  %v3984_v29 = vld [vmem:[%s8770_s1 + $0x228] sm:$0xf]  ;;  %v4129_v30 = vor.u32 %v5564_v23, %v4128_v21  ;;  %v5528_v32 = vld [vmem:[%s8770_s1 + $0x234] sm:$0xf0]  ;;  %v5486_v58 = vld [vmem:[%s8770_s1 + $0xec] sm:$0xf] }
  0x63   :  { %1439 = vmatpush.bf16.msra.mxu3 %v4221_v12  ;;  %1412 = vmatmul.bf16.vlgmr.msra.gmra.mxu0 %v6222_v54  ;;  %v3744_v12 = vld [vmem:[%s8770_s1 + $0x48] sm:$0xf]  ;;  %v5560_v34 = vld [vmem:[%s8770_s1 + $0x334] sm:$0xf0]  ;;  %v3985_v44 = vor.u32 %v5528_v32, %v3984_v29  ;;  %v3829_v6 = vor.u32 %v5486_v58, %v3826_v59  ;;  %v3938_v23 = vld [vmem:[%s8770_s1 + $0x1d8] sm:$0xf0] }
  0x64   :  { %1467 = vmatpush.bf16.msrb.mxu0 %v4477_v18  ;;  %1426 = vmatmul.bf16.vlgmr.msra.gmra.mxu1 %v6235_v60  ;;  %v4112_v33 = vld [vmem:[%s8770_s1 + $0x328] sm:$0xf]  ;;  %v5616_v43 = vld [vmem:[%s8770_s1 + $0x4f4] sm:$0xf0] }
  0x65   :  { %1474 = vmatpush.bf16.msrb.mxu1 %v3825_v13  ;;  %v5468_v13 = vld [vmem:[%s8770_s1 + $0x54] sm:$0xf0]  ;;  %v3712_v36 = vld [vmem:[%s8770_s1 + $0x8] sm:$0xf]  ;;  %v4113_v47 = vor.u32 %v5560_v34, %v4112_v33  ;;  %v5510_v34 = vld [vmem:[%s8770_s1 + $0x1ac] sm:$0xf] }
  0x66   :  { %1453 = vmatpush.bf16.msrb.mxu2 %v4349_v22  ;;  %1440 = vmatmul.bf16.vlgmr.msra.gmra.mxu3 %v6448_v37  ;;  %v3745_v18 = vor.u32 %v5468_v13, %v3744_v12  ;;  %v3873_v22 = vor.u32 %v5500_v15, %v3872_v14  ;;  %v4336_v41 = vld [vmem:[%s8770_s1 + $0x4e8] sm:$0xf]  ;;  %v5648_v46 = vld [vmem:[%s8770_s1 + $0x5f4] sm:$0xf0]  ;;  %v3810_v14 = vld [vmem:[%s8770_s1 + $0xd8] sm:$0xf0] }
  0x67   :  { %1488 = vmatpush.bf16.msrb.mxu3 %v3953_v17  ;;  %v4145_v17 = vor.u32 %v5568_v11, %v4144_v9  ;;  %v3968_v49 = vld [vmem:[%s8770_s1 + $0x208] sm:$0xf]  ;;  %v5524_v51 = vld [vmem:[%s8770_s1 + $0x214] sm:$0xf0]  ;;  %v5518_v9 = vld [vmem:[%s8770_s1 + $0x1ec] sm:$0xf] }
  0x68   :  { %1502 = vmatpush.bf16.msra.mxu0 %v4081_v25  ;;  %v5464_v25 = vld [vmem:[%s8770_s1 + $0x34] sm:$0xf0]  ;;  %v4320_v62 = vld [vmem:[%s8770_s1 + $0x4c8] sm:$0xf]  ;;  %v3969_v1 = vor.u32 %v5524_v51, %v3968_v49  ;;  %v5482_v11 = vld [vmem:[%s8770_s1 + $0xcc] sm:$0xf] }
  0x69   :  { %1475 = vmatpush.bf16.msrb.mxu1 %v3809_v27  ;;  %1454 = vmatmul.bf16.vlgmr.msrb.gmra.mxu2 %v6459_v42  ;;  %v5496_v27 = vld [vmem:[%s8770_s1 + $0x134] sm:$0xf0]  ;;  %v4448_v0 = vld [vmem:[%s8770_s1 + $0x5c8] sm:$0xf]  ;;  %v3813_v20 = vor.u32 %v5482_v11, %v3810_v14  ;;  %v3906_v49 = vld [vmem:[%s8770_s1 + $0x198] sm:$0xf0] }
  0x6a   :  { %1516 = vmatpush.bf16.msra.mxu2 %v4209_v26  ;;  %v3856_v26 = vld [vmem:[%s8770_s1 + $0x128] sm:$0xf]  ;;  %v5556_v57 = vld [vmem:[%s8770_s1 + $0x314] sm:$0xf0]  ;;  %v5470_v51 = vld [vmem:[%s8770_s1 + $0x6c] sm:$0xf] }
  0x6b   :  { %1489 = vmatpush.bf16.msrb.mxu3 %v3937_v31  ;;  %v3729_v31 = vor.u32 %v5464_v25, %v3728_v24  ;;  %v3857_v35 = vor.u32 %v5496_v27, %v3856_v26  ;;  %v5612_v63 = vld [vmem:[%s8770_s1 + $0x4d4] sm:$0xf0]  ;;  %v4304_v15 = vld [vmem:[%s8770_s1 + $0x4a8] sm:$0xf]  ;;  %v5478_v24 = vld [vmem:[%s8770_s1 + $0xac] sm:$0xf] }
  0x6c   :  { %1503 = vmatpush.bf16.msra.mxu0 %v4065_v38  ;;  %v5460_v38 = vld [vmem:[%s8770_s1 + $0x14] sm:$0xf0]  ;;  %v4321_v7 = vor.u32 %v5612_v63, %v4320_v62  ;;  %v3794_v26 = vld [vmem:[%s8770_s1 + $0xb8] sm:$0xf0]  ;;  %v4288_v27 = vld [vmem:[%s8770_s1 + $0x488] sm:$0xf] }
  0x6d   :  { %1476 = vmatpush.bf16.msrb.mxu1 %v3793_v40  ;;  %v5492_v40 = vld [vmem:[%s8770_s1 + $0x114] sm:$0xf0]  ;;  %v3713_v48 = vor.u32 %v5460_v38, %v3712_v36  ;;  %v4416_v29 = vld [vmem:[%s8770_s1 + $0x588] sm:$0xf]  ;;  %v3797_v32 = vor.u32 %v5478_v24, %v3794_v26  ;;  %v5474_v36 = vld [vmem:[%s8770_s1 + $0x8c] sm:$0xf] }
  0x6e   :  { %1517 = vmatpush.bf16.msra.mxu2 %v4193_v39  ;;  %v3840_v39 = vld [vmem:[%s8770_s1 + $0x108] sm:$0xf]  ;;  %v5644_v2 = vld [vmem:[%s8770_s1 + $0x5d4] sm:$0xf0]  ;;  %v5498_v11 = vld [vmem:[%s8770_s1 + $0x14c] sm:$0xf] }
  0x6f   :  { %1490 = vmatpush.bf16.msrb.mxu3 %v3921_v45  ;;  %v4464_v45 = vld [vmem:[%s8770_s1 + $0x5e8] sm:$0xf]  ;;  %v4449_v12 = vor.u32 %v5644_v2, %v4448_v0  ;;  %v5628_v59 = vld [vmem:[%s8770_s1 + $0x554] sm:$0xf0]  ;;  %v5502_v0 = vld [vmem:[%s8770_s1 + $0x16c] sm:$0xf] }
  0x70   :  { %1504 = vmatpush.bf16.msra.mxu0 %v4049_v52  ;;  %v4096_v52 = vld [vmem:[%s8770_s1 + $0x308] sm:$0xf]  ;;  %v5466_v2 = vld [vmem:[%s8770_s1 + $0x4c] sm:$0xf]  ;;  %v3874_v14 = vld [vmem:[%s8770_s1 + $0x158] sm:$0xf0] }
  0x71   :  { %1477 = vmatpush.bf16.msrb.mxu1 %v3777_v56  ;;  %v4337_v56 = vor.u32 %v5616_v43, %v4336_v41  ;;  %v5600_v41 = vld [vmem:[%s8770_s1 + $0x474] sm:$0xf0]  ;;  %v4400_v43 = vld [vmem:[%s8770_s1 + $0x568] sm:$0xf]  ;;  %v3877_v24 = vor.u32 %v5498_v11, %v3874_v14  ;;  %v4210_v26 = vld [vmem:[%s8770_s1 + $0x3f8] sm:$0xf0] }
  0x72   :  { %1518 = vmatpush.bf16.msra.mxu2 %v4177_v53  ;;  %v3841_v53 = vor.u32 %v5492_v40, %v3840_v39  ;;  %v3778_v39 = vld [vmem:[%s8770_s1 + $0x98] sm:$0xf0]  ;;  %v4272_v40 = vld [vmem:[%s8770_s1 + $0x468] sm:$0xf]  ;;  %v5570_v11 = vld [vmem:[%s8770_s1 + $0x38c] sm:$0xf] }
  0x73   :  { %1491 = vmatpush.bf16.msrb.mxu3 %v3905_v61  ;;  %4487 = vmatmul.msk.bf16.vlgmr.msrb.gmra.mxu0 %vm1274_vm0, %v6351_v50  ;;  %v4465_v61 = vor.u32 %v5648_v46, %v4464_v45  ;;  %v3781_v46 = vor.u32 %v5474_v36, %v3778_v39  ;;  %v4384_v58 = vld [vmem:[%s8770_s1 + $0x548] sm:$0xf]  ;;  %v5546_v39 = vld [vmem:[%s8770_s1 + $0x2cc] sm:$0xf] }
  0x74   :  { %1505 = vmatpush.bf16.msra.mxu0 %v4033_v3  ;;  %v4480_v3 = vld [vmem:[%s8770_s1 + $0x608] sm:$0xf] }
  0x75   :  { %1478 = vmatpush.bf16.msrb.mxu1 %v3761_v5  ;;  %v4097_v5 = vor.u32 %v5556_v57, %v4096_v52  ;;  %v5596_v57 = vld [vmem:[%s8770_s1 + $0x454] sm:$0xf0] }
  0x76   :  { %1519 = vmatpush.bf16.msra.mxu2 %v4161_v4  ;;  %v5652_v4 = vld [vmem:[%s8770_s1 + $0x614] sm:$0xf0] }
  0x77   :  { %1492 = vmatpush.bf16.msrb.mxu3 %v3889_v10  ;;  %v3954_v10 = vld [vmem:[%s8770_s1 + $0x1f8] sm:$0xf0]  ;;  %v4481_v13 = vor.u32 %v5652_v4, %v4480_v3  ;;  %v4385_v3 = vor.u32 %v5628_v59, %v4384_v58  ;;  %v5542_v58 = vld [vmem:[%s8770_s1 + $0x2ac] sm:$0xf] }
  0x78   :  { %1506 = vmatpush.bf16.msra.mxu0 %v4017_v16  ;;  %v5608_v16 = vld [vmem:[%s8770_s1 + $0x4b4] sm:$0xf0]  ;;  %v3957_v19 = vor.u32 %v5518_v9, %v3954_v10  ;;  %v3746_v4 = vld [vmem:[%s8770_s1 + $0x58] sm:$0xf0] }
  0x79   :  { %1479 = vmatpush.bf16.msrb.mxu1 %v3745_v18  ;;  %v5640_v18 = vld [vmem:[%s8770_s1 + $0x5b4] sm:$0xf0]  ;;  %v4305_v21 = vor.u32 %v5608_v16, %v4304_v15  ;;  %v5462_v15 = vld [vmem:[%s8770_s1 + $0x2c] sm:$0xf]  ;;  %v3730_v16 = vld [vmem:[%s8770_s1 + $0x38] sm:$0xf0] }
  0x7a   :  { %1520 = vmatpush.bf16.msra.mxu2 %v4145_v17  ;;  %v4432_v17 = vld [vmem:[%s8770_s1 + $0x5a8] sm:$0xf]  ;;  %v5624_v9 = vld [vmem:[%s8770_s1 + $0x534] sm:$0xf0]  ;;  %v4050_v59 = vld [vmem:[%s8770_s1 + $0x2b8] sm:$0xf0] }
  0x7b   :  { %1493 = vmatpush.bf16.msrb.mxu3 %v3873_v22  ;;  %v5514_v22 = vld [vmem:[%s8770_s1 + $0x1cc] sm:$0xf]  ;;  %v4433_v25 = vor.u32 %v5640_v18, %v4432_v17  ;;  %v4224_v18 = vld [vmem:[%s8770_s1 + $0x408] sm:$0xf] }
  0x7c   :  { %1507 = vmatpush.bf16.msra.mxu0 %v4001_v28  ;;  %v5604_v28 = vld [vmem:[%s8770_s1 + $0x494] sm:$0xf0] }
  0x7d   :  { %1480 = vmatpush.bf16.msrb.mxu1 %v3729_v31  ;;  %v3941_v31 = vor.u32 %v5514_v22, %v3938_v23  ;;  %v4289_v33 = vor.u32 %v5604_v28, %v4288_v27  ;;  %v5550_v22 = vld [vmem:[%s8770_s1 + $0x2ec] sm:$0xf]  ;;  %v4082_v23 = vld [vmem:[%s8770_s1 + $0x2f8] sm:$0xf0]  ;;  %v3733_v27 = vor.u32 %v5462_v15, %v3730_v16 }
  0x7e   :  { %1521 = vmatpush.bf16.msra.mxu2 %v4129_v30  ;;  %v5636_v30 = vld [vmem:[%s8770_s1 + $0x594] sm:$0xf0]  ;;  %v5638_v16 = vld [vmem:[%s8770_s1 + $0x5ac] sm:$0xf] }
  0x7f   :  { %1494 = vmatpush.bf16.msrb.mxu3 %v3857_v35  ;;  %v3922_v35 = vld [vmem:[%s8770_s1 + $0x1b8] sm:$0xf0]  ;;  %v4417_v38 = vor.u32 %v5636_v30, %v4416_v29  ;;  %v5494_v29 = vld [vmem:[%s8770_s1 + $0x12c] sm:$0xf] }
  0x80   :  { %1508 = vmatpush.bf16.msra.mxu0 %v3985_v44  ;;  %v5632_v44 = vld [vmem:[%s8770_s1 + $0x574] sm:$0xf0]  ;;  %v3925_v45 = vor.u32 %v5510_v34, %v3922_v35  ;;  %v3858_v30 = vld [vmem:[%s8770_s1 + $0x138] sm:$0xf0]  ;;  %v5614_v35 = vld [vmem:[%s8770_s1 + $0x4ec] sm:$0xf] }
  0x81   :  { %1481 = vmatpush.bf16.msrb.mxu1 %v3713_v48  ;;  %v5506_v48 = vld [vmem:[%s8770_s1 + $0x18c] sm:$0xf]  ;;  %v4401_v52 = vor.u32 %v5632_v44, %v4400_v43  ;;  %v3714_v34 = vld [vmem:[%s8770_s1 + $0x18] sm:$0xf0] }
  0x82   :  { %1522 = vmatpush.bf16.msra.mxu2 %v4113_v47  ;;  %v4273_v47 = vor.u32 %v5600_v41, %v4272_v40  ;;  %v4066_v40 = vld [vmem:[%s8770_s1 + $0x2d8] sm:$0xf0]  ;;  %v3861_v41 = vor.u32 %v5494_v29, %v3858_v30  ;;  %v5578_v43 = vld [vmem:[%s8770_s1 + $0x3cc] sm:$0xf] }
  0x83   :  { %1495 = vmatpush.bf16.msrb.mxu3 %v3841_v53  ;;  %v3762_v53 = vld [vmem:[%s8770_s1 + $0x78] sm:$0xf0] }
  0x84   :  { %1509 = vmatpush.bf16.msra.mxu0 %v3969_v1  ;;  %1482 = vmatmul.bf16.vlgmr.msrb.gmra.mxu1 %v6224_v55  ;;  %v3765_v62 = vor.u32 %v5470_v51, %v3762_v53  ;;  %v3890_v1 = vld [vmem:[%s8770_s1 + $0x178] sm:$0xf0]  ;;  %v5646_v51 = vld [vmem:[%s8770_s1 + $0x5ec] sm:$0xf] }
  0x85   :  { %1530 = vmatpush.bf16.msra.mxu1 %v4337_v56  ;;  %v4256_v56 = vld [vmem:[%s8770_s1 + $0x448] sm:$0xf]  ;;  %v3893_v10 = vor.u32 %v5502_v0, %v3890_v1  ;;  %v4194_v44 = vld [vmem:[%s8770_s1 + $0x3d8] sm:$0xf0]  ;;  %v5610_v53 = vld [vmem:[%s8770_s1 + $0x4cc] sm:$0xf] }
  0x86   :  { %1496 = vmatmul.bf16.vlgmr.msrb.gmra.mxu3 %v6260_v8  ;;  %1523 = vmatpush.bf16.msra.mxu2 %v4097_v5  ;;  %v4257_v63 = vor.u32 %v5596_v57, %v4256_v56  ;;  %v4240_v5 = vld [vmem:[%s8770_s1 + $0x428] sm:$0xf]  ;;  %v4197_v56 = vor.u32 %v5578_v43, %v4194_v44  ;;  %v4322_v57 = vld [vmem:[%s8770_s1 + $0x4d8] sm:$0xf0] }
  0x87   :  { %1544 = vmatpush.bf16.msra.mxu3 %v4465_v61  ;;  %1510 = vmatmul.bf16.vlgmr.msra.gmra.mxu0 %v6222_v54  ;;  %v3909_v61 = vor.u32 %v5506_v48, %v3906_v49  ;;  %v4069_v49 = vor.u32 %v5546_v39, %v4066_v40  ;;  %v4325_v1 = vor.u32 %v5610_v53, %v4322_v57  ;;  %v4274_v30 = vld [vmem:[%s8770_s1 + $0x478] sm:$0xf0]  ;;  %v5630_v39 = vld [vmem:[%s8770_s1 + $0x56c] sm:$0xf] }
  0x88   :  { %1565 = vmatpush.bf16.msrb.mxu0 %v4481_v13  ;;  %v4402_v40 = vld [vmem:[%s8770_s1 + $0x578] sm:$0xf0]  ;;  %v5590_v57 = vld [vmem:[%s8770_s1 + $0x42c] sm:$0xf] }
  0x89   :  { %1531 = vmatpush.bf16.msra.mxu1 %v4321_v7  ;;  %1524 = vmatmul.bf16.vlgmr.msra.gmra.mxu2 %v6235_v60  ;;  %v4368_v7 = vld [vmem:[%s8770_s1 + $0x528] sm:$0xf]  ;;  %v4258_v44 = vld [vmem:[%s8770_s1 + $0x458] sm:$0xf0] }
  0x8a   :  { %1572 = vmatpush.bf16.msrb.mxu2 %v3829_v6  ;;  %v5592_v6 = vld [vmem:[%s8770_s1 + $0x434] sm:$0xf0]  ;;  %v4369_v17 = vor.u32 %v5624_v9, %v4368_v7  ;;  %v4306_v7 = vld [vmem:[%s8770_s1 + $0x4b8] sm:$0xf0]  ;;  %v5538_v9 = vld [vmem:[%s8770_s1 + $0x28c] sm:$0xf] }
  0x8b   :  { %1545 = vmatpush.bf16.msra.mxu3 %v4449_v12  ;;  %v3749_v12 = vor.u32 %v5466_v2, %v3746_v4  ;;  %v4241_v13 = vor.u32 %v5592_v6, %v4240_v5  ;;  %v4053_v2 = vor.u32 %v5542_v58, %v4050_v59  ;;  %v4450_v4 = vld [vmem:[%s8770_s1 + $0x5d8] sm:$0xf0]  ;;  %v5606_v5 = vld [vmem:[%s8770_s1 + $0x4ac] sm:$0xf] }
  0x8c   :  { %1586 = vmatpush.bf16.msra.mxu0 %v3957_v19  ;;  %v5588_v19 = vld [vmem:[%s8770_s1 + $0x414] sm:$0xf0]  ;;  %v4309_v14 = vor.u32 %v5606_v5, %v4306_v7  ;;  %v4242_v58 = vld [vmem:[%s8770_s1 + $0x438] sm:$0xf0]  ;;  %v4604_v7 = vld [vmem:[%s8772_s3 + $0xe0] sm:$0xf] }
  0x8d   :  { %1532 = vmatpush.bf16.msra.mxu1 %v4305_v21  ;;  %v5620_v21 = vld [vmem:[%s8770_s1 + $0x514] sm:$0xf0]  ;;  %v4225_v28 = vor.u32 %v5588_v19, %v4224_v18  ;;  %v5602_v18 = vld [vmem:[%s8770_s1 + $0x48c] sm:$0xf]  ;;  %v4290_v19 = vld [vmem:[%s8770_s1 + $0x498] sm:$0xf0] }
  0x8e   :  { %1573 = vmatpush.bf16.msrb.mxu2 %v3813_v20  ;;  %v4352_v20 = vld [vmem:[%s8770_s1 + $0x508] sm:$0xf] }
  0x8f   :  { %1546 = vmatpush.bf16.msra.mxu3 %v4433_v25  ;;  %v5582_v25 = vld [vmem:[%s8770_s1 + $0x3ec] sm:$0xf] }
  0x90   :  { %1587 = vmatpush.bf16.msra.mxu0 %v3941_v31  ;;  %v4353_v31 = vor.u32 %v5620_v21, %v4352_v20  ;;  %v4213_v36 = vor.u32 %v5582_v25, %v4210_v26  ;;  %v5534_v20 = vld [vmem:[%s8770_s1 + $0x26c] sm:$0xf]  ;;  %v4018_v21 = vld [vmem:[%s8770_s1 + $0x278] sm:$0xf0]  ;;  %v4293_v25 = vor.u32 %v5602_v18, %v4290_v19  ;;  %v5715_v19 = vld [vmem:[%s8772_s3 + $0x1ec] sm:$0xf0] }
  0x91   :  { %1533 = vmatpush.bf16.msra.mxu1 %v4289_v33  ;;  %v5458_v33 = vld [vmem:[%s8770_s1 + $0xc] sm:$0xf]  ;;  %v4021_v26 = vor.u32 %v5534_v20, %v4018_v21  ;;  %v4588_v21 = vld [vmem:[%s8772_s3 + $0xc0] sm:$0xf] }
  0x92   :  { %1574 = vmatpush.bf16.msrb.mxu2 %v3797_v32  ;;  %v4085_v32 = vor.u32 %v5550_v22, %v4082_v23  ;;  %v5566_v22 = vld [vmem:[%s8770_s1 + $0x36c] sm:$0xf]  ;;  %v4146_v23 = vld [vmem:[%s8770_s1 + $0x378] sm:$0xf0] }
  0x93   :  { %1547 = vmatpush.bf16.msra.mxu3 %v4417_v38  ;;  %v4338_v38 = vld [vmem:[%s8770_s1 + $0x4f8] sm:$0xf0]  ;;  %v4149_v29 = vor.u32 %v5566_v22, %v4146_v23  ;;  %v5679_v22 = vld [vmem:[%s8772_s3 + $0xcc] sm:$0xf0]  ;;  %v7252_v23 = vld [vmem:[%s8773_s2] sm:$0xf] }
  0x94   :  { %1588 = vmatpush.bf16.msra.mxu0 %v3925_v45  ;;  %v3717_v45 = vor.u32 %v5458_v33, %v3714_v34  ;;  %v4341_v48 = vor.u32 %v5614_v35, %v4338_v38  ;;  %v5562_v33 = vld [vmem:[%s8770_s1 + $0x34c] sm:$0xf]  ;;  %v4130_v34 = vld [vmem:[%s8770_s1 + $0x358] sm:$0xf0] }
  0x95   :  { %1534 = vmatpush.bf16.msra.mxu1 %v4273_v47  ;;  %v3842_v47 = vld [vmem:[%s8770_s1 + $0x118] sm:$0xf0]  ;;  %v4133_v43 = vor.u32 %v5562_v33, %v4130_v34  ;;  %v4572_v33 = vld [vmem:[%s8772_s3 + $0xa0] sm:$0xf]  ;;  %v5675_v34 = vld [vmem:[%s8772_s3 + $0xac] sm:$0xf0] }
  0x96   :  { %1575 = vmatpush.bf16.msrb.mxu2 %v3781_v46  ;;  %v5490_v46 = vld [vmem:[%s8770_s1 + $0x10c] sm:$0xf] }
  0x97   :  { %1548 = vmatpush.bf16.msra.mxu3 %v4401_v52  ;;  %4488 = vmatmul.msk.bf16.vlgmr.msrb.gmra.mxu0 %vm1274_vm0, %v6351_v50  ;;  %v4466_v52 = vld [vmem:[%s8770_s1 + $0x5f8] sm:$0xf0] }
  0x98   :  { %1589 = vmatpush.bf16.msra.mxu0 %v3909_v61  ;;  %v3845_v61 = vor.u32 %v5490_v46, %v3842_v47  ;;  %v4469_v0 = vor.u32 %v5646_v51, %v4466_v52  ;;  %v3986_v46 = vld [vmem:[%s8770_s1 + $0x238] sm:$0xf0]  ;;  %v5558_v47 = vld [vmem:[%s8770_s1 + $0x32c] sm:$0xf] }
  0x99   :  { %1535 = vmatpush.bf16.msra.mxu1 %v4257_v63  ;;  %v4178_v63 = vld [vmem:[%s8770_s1 + $0x3b8] sm:$0xf0]  ;;  %v5626_v51 = vld [vmem:[%s8770_s1 + $0x54c] sm:$0xf] }
  0x9a   :  { %1576 = vmatpush.bf16.msrb.mxu2 %v3765_v62  ;;  %v5574_v62 = vld [vmem:[%s8770_s1 + $0x3ac] sm:$0xf] }
  0x9b   :  { %1549 = vmatpush.bf16.msra.mxu3 %v4385_v3  ;;  %v5642_v3 = vld [vmem:[%s8770_s1 + $0x5cc] sm:$0xf]  ;;  %v4181_v6 = vor.u32 %v5574_v62, %v4178_v63  ;;  %v3970_v63 = vld [vmem:[%s8770_s1 + $0x218] sm:$0xf0] }
  0x9c   :  { %1590 = vmatpush.bf16.msra.mxu0 %v3893_v10  ;;  %v4034_v10 = vld [vmem:[%s8770_s1 + $0x298] sm:$0xf0]  ;;  %v5522_v62 = vld [vmem:[%s8770_s1 + $0x20c] sm:$0xf] }
  0x9d   :  { %1536 = vmatpush.bf16.msra.mxu1 %v4241_v13  ;;  %v4453_v13 = vor.u32 %v5642_v3, %v4450_v4  ;;  %v4037_v15 = vor.u32 %v5538_v9, %v4034_v10  ;;  %v5650_v3 = vld [vmem:[%s8770_s1 + $0x60c] sm:$0xf]  ;;  %v4482_v4 = vld [vmem:[%s8770_s1 + $0x618] sm:$0xf0]  ;;  %v5683_v9 = vld [vmem:[%s8772_s3 + $0xec] sm:$0xf0]  ;;  %v4245_v10 = vor.u32 %v5590_v57, %v4242_v58 }
  0x9e   :  { %1577 = vmatpush.bf16.msrb.mxu2 %v3749_v12  ;;  %v4162_v12 = vld [vmem:[%s8770_s1 + $0x398] sm:$0xf0]  ;;  %v4605_v18 = vor.u32 %v5683_v9, %v4604_v7  ;;  %v4652_v9 = vld [vmem:[%s8772_s3 + $0x140] sm:$0xf] }
  0x9f   :  { %1550 = vmatpush.bf16.msra.mxu3 %v4369_v17  ;;  %v4434_v17 = vld [vmem:[%s8770_s1 + $0x5b8] sm:$0xf0] }
  0xa0   :  { %1591 = vmatpush.bf16.msra.mxu0 %v3877_v24  ;;  %v4437_v24 = vor.u32 %v5638_v16, %v4434_v17  ;;  %v4226_v16 = vld [vmem:[%s8770_s1 + $0x418] sm:$0xf0]  ;;  %v4485_v17 = vor.u32 %v5650_v3, %v4482_v4  ;;  %v5663_v3 = vld [vmem:[%s8772_s3 + $0x4c] sm:$0xf0] }
  0xa1   :  { %1537 = vmatpush.bf16.msra.mxu1 %v4225_v28  ;;  %v5598_v28 = vld [vmem:[%s8770_s1 + $0x46c] sm:$0xf] }
  0xa2   :  { %1578 = vmatpush.bf16.msrb.mxu2 %v3733_v27  ;;  %v5634_v27 = vld [vmem:[%s8770_s1 + $0x58c] sm:$0xf] }
  0xa3   :  { %1551 = vmatpush.bf16.msra.mxu3 %v4353_v31  ;;  %v5530_v31 = vld [vmem:[%s8770_s1 + $0x24c] sm:$0xf] }
  0xa4   :  { %1592 = vmatpush.bf16.msra.mxu0 %v3861_v41  ;;  %1538 = vmatmul.bf16.vlgmr.msra.gmra.mxu1 %v6448_v37  ;;  %v5594_v41 = vld [vmem:[%s8770_s1 + $0x44c] sm:$0xf]  ;;  %v7195_v59 = vpop.f32.mrf.mxu0 }
  0xa5   :  { %1600 = vmatpush.bf16.msrb.mxu1 %v4085_v32  ;;  %v4002_v32 = vld [vmem:[%s8770_s1 + $0x258] sm:$0xf0]  ;;  %v4261_v52 = vor.u32 %v5594_v41, %v4258_v44  ;;  %v4700_v41 = vld [vmem:[%s8772_s3 + $0x1a0] sm:$0xf] }
  0xa6   :  { %1552 = vmatmul.bf16.vlgmr.msra.gmra.mxu3 %v6459_v42  ;;  %1579 = vmatpush.bf16.msrb.mxu2 %v3717_v45  ;;  %v4005_v38 = vor.u32 %v5530_v31, %v4002_v32  ;;  %v5526_v45 = vld [vmem:[%s8770_s1 + $0x22c] sm:$0xf] }
  0xa7   :  { %1614 = vmatpush.bf16.msrb.mxu3 %v4213_v36  ;;  %v4277_v36 = vor.u32 %v5598_v28, %v4274_v30  ;;  %v3989_v53 = vor.u32 %v5526_v45, %v3986_v46  ;;  %v4716_v28 = vld [vmem:[%s8772_s3 + $0x1c0] sm:$0xf]  ;;  %v251_v30 = vperm.slane %v7252_v23, 0  ;;  %v5671_v45 = vld [vmem:[%s8772_s3 + $0x8c] sm:$0xf0] }
  0xa8   :  { %1593 = vmatpush.bf16.msra.mxu0 %v3845_v61  ;;  %v7217_v5 = vpop.f32.mrf.mxu2 }
  0xa9   :  { %1601 = vmatpush.bf16.msrb.mxu1 %v4069_v49  ;;  %1580 = vmatmul.bf16.vlgmr.msrb.gmra.mxu2 %v6224_v55  ;;  %v4165_v55 = vor.u32 %v5570_v11, %v4162_v12  ;;  %v4405_v49 = vor.u32 %v5630_v39, %v4402_v40  ;;  %v3973_v11 = vor.u32 %v5522_v62, %v3970_v63  ;;  %v5622_v12 = vld [vmem:[%s8770_s1 + $0x52c] sm:$0xf]  ;;  %v4668_v62 = vld [vmem:[%s8772_s3 + $0x160] sm:$0xf]  ;;  %v5699_v63 = vld [vmem:[%s8772_s3 + $0x16c] sm:$0xf0] }
  0xaa   :  { %1628 = vmatpush.bf16.msra.mxu2 %v4341_v48  ;;  %v4114_v48 = vld [vmem:[%s8770_s1 + $0x338] sm:$0xf0]  ;;  %v1288_v44 = vadd.f32 %v7195_v59, %v251_v30  ;;  %v4669_v4 = vor.u32 %v5699_v63, %v4668_v62  ;;  %v5739_v62 = vld [vmem:[%s8772_s3 + $0x2ac] sm:$0xf0] }
  0xab   :  { %1615 = vmatpush.bf16.msrb.mxu3 %v4197_v56  ;;  %1594 = vmatmul.bf16.vlgmr.msra.gmra.mxu0 %v6260_v8  ;;  %v4418_v8 = vld [vmem:[%s8770_s1 + $0x598] sm:$0xf0]  ;;  %v4117_v61 = vor.u32 %v5558_v47, %v4114_v48 }
  0xac   :  { %1642 = vmatpush.bf16.msrb.mxu0 %v4469_v0  ;;  %v4421_v35 = vor.u32 %v5634_v27, %v4418_v8  ;;  %v4386_v56 = vld [vmem:[%s8770_s1 + $0x558] sm:$0xf0]  ;;  %v5554_v0 = vld [vmem:[%s8770_s1 + $0x30c] sm:$0xf]  ;;  %v4589_v8 = vor.u32 %v5679_v22, %v4588_v21  ;;  %v1289_v31 = vpop.f32.mrf.mxu0  ;;  %v4492_v21 = vld [vmem:[%s8772_s3] sm:$0xf] }
  0xad   :  { %1602 = vmatpush.bf16.msrb.mxu1 %v4053_v2  ;;  %v4098_v2 = vld [vmem:[%s8770_s1 + $0x318] sm:$0xf0]  ;;  %v1290_v40 = vadd.f32 %v1289_v31, %v251_v30  ;;  %v5655_v22 = vld [vmem:[%s8772_s3 + $0xc] sm:$0xf0] }
  0xae   :  { %1629 = vmatpush.bf16.msra.mxu2 %v4325_v1  ;;  %v7206_v1 = vpop.f32.mrf.mxu1 }
  0xaf   :  { %1616 = vmatpush.bf16.msrb.mxu3 %v4181_v6  ;;  %v4389_v6 = vor.u32 %v5626_v51, %v4386_v56  ;;  %v1302_v51 = vadd.f32 %v7206_v1, %v1288_v44 }
  0xb0   :  { %1643 = vmatpush.bf16.msrb.mxu0 %v4453_v13  ;;  %v4370_v13 = vld [vmem:[%s8770_s1 + $0x538] sm:$0xf0] }
  0xb1   :  { %1603 = vmatpush.bf16.msrb.mxu1 %v4037_v15  ;;  %v5586_v15 = vld [vmem:[%s8770_s1 + $0x40c] sm:$0xf]  ;;  %v4373_v20 = vor.u32 %v5622_v12, %v4370_v13  ;;  %v4508_v12 = vld [vmem:[%s8772_s3 + $0x20] sm:$0xf]  ;;  %v5659_v13 = vld [vmem:[%s8772_s3 + $0x2c] sm:$0xf0] }
  0xb2   :  { %1630 = vmatpush.bf16.msra.mxu2 %v4309_v14  ;;  %v4101_v14 = vor.u32 %v5554_v0, %v4098_v2  ;;  %v1316_v0 = vadd.f32 %v7217_v5, %v1302_v51  ;;  %v4524_v2 = vld [vmem:[%s8772_s3 + $0x40] sm:$0xf]  ;;  %v5695_v5 = vld [vmem:[%s8772_s3 + $0x14c] sm:$0xf0] }
  0xb3   :  { %1617 = vmatpush.bf16.msrb.mxu3 %v4165_v55  ;;  %v4732_v55 = vld [vmem:[%s8772_s3 + $0x1e0] sm:$0xf]  ;;  %v4525_v7 = vor.u32 %v5663_v3, %v4524_v2  ;;  %v5743_v51 = vld [vmem:[%s8772_s3 + $0x2cc] sm:$0xf0] }
  0xb4   :  { %1644 = vmatpush.bf16.msrb.mxu0 %v4437_v24  ;;  %v4229_v24 = vor.u32 %v5586_v15, %v4226_v16  ;;  %v4733_v27 = vor.u32 %v5715_v19, %v4732_v55  ;;  %v5691_v55 = vld [vmem:[%s8772_s3 + $0x12c] sm:$0xf0] }
  0xb5   :  { %1604 = vmatpush.bf16.msrb.mxu1 %v4021_v26  ;;  %v4354_v26 = vld [vmem:[%s8770_s1 + $0x518] sm:$0xf0] }
  0xb6   :  { %1631 = vmatpush.bf16.msra.mxu2 %v4293_v25  ;;  %v5618_v25 = vld [vmem:[%s8770_s1 + $0x50c] sm:$0xf] }
  0xb7   :  { %1618 = vmatpush.bf16.msrb.mxu3 %v4149_v29  ;;  %v5711_v29 = vld [vmem:[%s8772_s3 + $0x1cc] sm:$0xf0]  ;;  %v4357_v32 = vor.u32 %v5618_v25, %v4354_v26  ;;  %v4606_v25 = vld [vmem:[%s8772_s3 + $0xf0] sm:$0xf0] }
  0xb8   :  { %1645 = vmatpush.bf16.msrb.mxu0 %v4421_v35  ;;  %v1303_v35 = vpop.f32.mrf.mxu1  ;;  %v4717_v39 = vor.u32 %v5711_v29, %v4716_v28  ;;  %v4620_v28 = vld [vmem:[%s8772_s3 + $0x100] sm:$0xf]  ;;  %v5687_v29 = vld [vmem:[%s8772_s3 + $0x10c] sm:$0xf0] }
  0xb9   :  { %1605 = vmatpush.bf16.msrb.mxu1 %v4005_v38  ;;  %v1317_v38 = vpop.f32.mrf.mxu2  ;;  %v1304_v47 = vadd.f32 %v1303_v35, %v1290_v40 }
  0xba   :  { %1632 = vmatpush.bf16.msra.mxu2 %v4277_v36  ;;  %v1329_v36 = vpop.f32.mrf.mxu3 }
  0xbb   :  { %1619 = vmatpush.bf16.msrb.mxu3 %v4133_v43  ;;  %v5707_v43 = vld [vmem:[%s8772_s3 + $0x1ac] sm:$0xf0]  ;;  %v1318_v59 = vadd.f32 %v1317_v38, %v1304_v47  ;;  %v4860_v38 = vld [vmem:[%s8772_s3 + $0x2e0] sm:$0xf]  ;;  %v5709_v47 = vld [vmem:[%s8772_s3 + $0x1c4] sm:$0xf] }
  0xbc   :  { %1646 = vmatpush.bf16.msrb.mxu0 %v4405_v49  ;;  %v4701_v46 = vor.u32 %v5707_v43, %v4700_v41  ;;  %v5703_v49 = vld [vmem:[%s8772_s3 + $0x18c] sm:$0xf0] }
  0xbd   :  { %1606 = vmatpush.bf16.msrb.mxu1 %v3989_v53  ;;  %v4540_v53 = vld [vmem:[%s8772_s3 + $0x60] sm:$0xf] }
  0xbe   :  { %1633 = vmatpush.bf16.msra.mxu2 %v4261_v52 }
  0xbf   :  { %1620 = vmatpush.bf16.msrb.mxu3 %v4117_v61 }
  0xc0   :  { %1647 = vmatpush.bf16.msrb.mxu0 %v4389_v6  ;;  %v1343_v52 = vpop.f32.mrf.mxu0 }
  0xc1   :  { %1607 = vmatpush.bf16.msrb.mxu1 %v3973_v11  ;;  %v1357_v56 = vpop.f32.mrf.mxu1  ;;  %v1371_v57 = vpop.f32.mrf.mxu2 }
  0xc2   :  { %1634 = vmatpush.bf16.msra.mxu2 %v4245_v10  ;;  %v1331_v1 = vpop.f32.mrf.mxu3  ;;  %v1330_v10 = vadd.f32 %v1329_v36, %v1316_v0  ;;  %v4590_v36 = vld [vmem:[%s8772_s3 + $0xd0] sm:$0xf0]  ;;  %v252_v0 = vperm.slane %v7252_v23, 1 }
  0xc3   :  { %1621 = vmatpush.bf16.msrb.mxu3 %v4101_v14  ;;  %v1332_v6 = vadd.f32 %v1331_v1, %v1318_v59  ;;  %v4558_v59 = vld [vmem:[%s8772_s3 + $0x90] sm:$0xf0] }
  0xc4   :  { %1648 = vmatpush.bf16.msrb.mxu0 %v4373_v20  ;;  %1608 = vmatmul.bf16.vlgmr.msrb.gmra.mxu1 %v6222_v54  ;;  %v4573_v54 = vor.u32 %v5675_v34, %v4572_v33  ;;  %v1344_v16 = vadd.f32 %v1343_v52, %v1330_v10  ;;  %v5713_v33 = vld [vmem:[%s8772_s3 + $0x1e4] sm:$0xf]  ;;  %v4734_v34 = vld [vmem:[%s8772_s3 + $0x1f0] sm:$0xf0]  ;;  %v5735_v10 = vld [vmem:[%s8772_s3 + $0x28c] sm:$0xf0] }
  0xc5   :  { %1663 = vmatpush.bf16.msra.mxu1 %v4485_v17  ;;  %v4653_v17 = vor.u32 %v5695_v5, %v4652_v9  ;;  %v4737_v43 = vor.u32 %v5713_v33, %v4734_v34  ;;  %v4542_v9 = vld [vmem:[%s8772_s3 + $0x70] sm:$0xf0]  ;;  %v4812_v5 = vld [vmem:[%s8772_s3 + $0x280] sm:$0xf]  ;;  %v5727_v34 = vld [vmem:[%s8772_s3 + $0x24c] sm:$0xf0] }
  0xc6   :  { %1622 = vmatmul.bf16.vlgmr.msrb.gmra.mxu3 %v6235_v60  ;;  %1635 = vmatpush.bf16.msra.mxu2 %v4229_v24  ;;  %v4556_v60 = vld [vmem:[%s8772_s3 + $0x80] sm:$0xf]  ;;  %v5681_v24 = vld [vmem:[%s8772_s3 + $0xe4] sm:$0xf]  ;;  %v1358_v26 = vadd.f32 %v1357_v56, %v1344_v16 }
  0xc7   :  { %2452 = vmatpush.bf16.msra.mxu3 %v4605_v18  ;;  %v4557_v48 = vor.u32 %v5671_v45, %v4556_v60  ;;  %v4509_v18 = vor.u32 %v5659_v13, %v4508_v12  ;;  %v4609_v31 = vor.u32 %v5681_v24, %v4606_v25  ;;  %v5669_v56 = vld [vmem:[%s8772_s3 + $0x84] sm:$0xf]  ;;  %v4813_v13 = vor.u32 %v5735_v10, %v4812_v5  ;;  %v4780_v33 = vld [vmem:[%s8772_s3 + $0x240] sm:$0xf] }
  0xc8   :  { %1649 = vmatpush.bf16.msrb.mxu0 %v4357_v32  ;;  %v1345_v11 = vpop.f32.mrf.mxu0  ;;  %v5677_v32 = vld [vmem:[%s8772_s3 + $0xc4] sm:$0xf]  ;;  %v1372_v40 = vadd.f32 %v1371_v57, %v1358_v26  ;;  %v4561_v3 = vor.u32 %v5669_v56, %v4558_v59 }
  0xc9   :  { %2466 = vmatpush.bf16.msrb.mxu1 %v4733_v27  ;;  %1636 = vmatmul.bf16.vlgmr.msra.gmra.mxu2 %v6448_v37  ;;  %v4684_v37 = vld [vmem:[%s8772_s3 + $0x180] sm:$0xf]  ;;  %v1346_v14 = vadd.f32 %v1345_v11, %v1332_v6  ;;  %v1359_v15 = vpop.f32.mrf.mxu1  ;;  %v1373_v20 = vpop.f32.mrf.mxu2  ;;  %v4593_v45 = vor.u32 %v5677_v32, %v4590_v36  ;;  %v5705_v57 = vld [vmem:[%s8772_s3 + $0x1a4] sm:$0xf]  ;;  %v4510_v32 = vld [vmem:[%s8772_s3 + $0x30] sm:$0xf0]  ;;  %v4781_v36 = vor.u32 %v5727_v34, %v4780_v33 }
  0xca   :  { %v4685_v58 = vor.u32 %v5703_v49, %v4684_v37  ;;  %v1385_v35 = vpop.f32.mrf.mxu3  ;;  %v4574_v37 = vld [vmem:[%s8772_s3 + $0xb0] sm:$0xf0]  ;;  %v4844_v49 = vld [vmem:[%s8772_s3 + $0x2c0] sm:$0xf]  ;;  %v5701_v6 = vld [vmem:[%s8772_s3 + $0x184] sm:$0xf] }
  0xcb   :  { %2453 = vmatpush.bf16.msra.mxu3 %v4589_v8  ;;  %1650 = vmatmul.bf16.vlgmr.msrb.gmra.mxu0 %v6459_v42  ;;  %v5667_v42 = vld [vmem:[%s8772_s3 + $0x6c] sm:$0xf0]  ;;  %v1360_v19 = vadd.f32 %v1359_v15, %v1346_v14  ;;  %v4493_v8 = vor.u32 %v5655_v22, %v4492_v21  ;;  %v4845_v52 = vor.u32 %v5743_v51, %v4844_v49  ;;  %v4796_v21 = vld [vmem:[%s8772_s3 + $0x260] sm:$0xf]  ;;  %v4612_v49 = vld [vmem:[%s8772_s3 + $0xe8] sm:$0xf] }
  0xcc   :  { %v4541_v61 = vor.u32 %v5667_v42, %v4540_v53  ;;  %v1386_v14 = vadd.f32 %v1385_v35, %v252_v0  ;;  %v5731_v22 = vld [vmem:[%s8772_s3 + $0x26c] sm:$0xf0]  ;;  %v5684_v51 = vld [vmem:[%s8772_s3 + $0xf4] sm:$0xf0]  ;;  %v4724_v33 = vld [vmem:[%s8772_s3 + $0x1c8] sm:$0xf] }
  0xcd   :  { %2467 = vmatpush.bf16.msrb.mxu1 %v4717_v39  ;;  %v1374_v30 = vadd.f32 %v1373_v20, %v1360_v19  ;;  %v5747_v39 = vld [vmem:[%s8772_s3 + $0x2ec] sm:$0xf0]  ;;  %v4526_v20 = vld [vmem:[%s8772_s3 + $0x50] sm:$0xf0]  ;;  %v4797_v24 = vor.u32 %v5731_v22, %v4796_v21  ;;  %v5716_v21 = vld [vmem:[%s8772_s3 + $0x1f4] sm:$0xf0] }
  0xce   :  { %v4861_v41 = vor.u32 %v5747_v39, %v4860_v38  ;;  %v4564_v22 = vld [vmem:[%s8772_s3 + $0x88] sm:$0xf] }
  0xcf   :  { %2454 = vmatpush.bf16.msra.mxu3 %v4573_v54  ;;  %v4621_v54 = vor.u32 %v5687_v29, %v4620_v28  ;;  %v7372_v44 = vpack.c.bf16 %v1374_v30, %v1372_v40  ;;  %v5693_v28 = vld [vmem:[%s8772_s3 + $0x144] sm:$0xf]  ;;  %v4654_v29 = vld [vmem:[%s8772_s3 + $0x150] sm:$0xf0] }
  0xd0   :  { %2480 = vmatpush.bf16.msrb.mxu2 %v4861_v41  ;;  %v4657_v39 = vor.u32 %v5693_v28, %v4654_v29  ;;  %v5653_v41 = vld [vmem:[%s8772_s3 + $0x4] sm:$0xf] }
  0xd1   :  { %2468 = vmatpush.bf16.msrb.mxu1 %v4701_v46  ;;  %v1399_v60 = vpop.f32.mrf.mxu2  ;;  %v5673_v46 = vld [vmem:[%s8772_s3 + $0xa4] sm:$0xf] }
  0xd2   :  { %v4577_v42 = vor.u32 %v5673_v46, %v4574_v37  ;;  %v1387_v1 = vpop.f32.mrf.mxu3  ;;  %v1400_v25 = vadd.f32 %v1399_v60, %v1386_v14  ;;  %v4638_v60 = vld [vmem:[%s8772_s3 + $0x130] sm:$0xf0] }
  0xd3   :  { %2455 = vmatpush.bf16.msra.mxu3 %v4557_v48  ;;  %v4718_v48 = vld [vmem:[%s8772_s3 + $0x1d0] sm:$0xf0] }
  0xd4   :  { %4489 = vmatmul.msk.bf16.vlgmr.msra.gmra.mxu1 %vm1274_vm0, %v6351_v50  ;;  %v4636_v50 = vld [vmem:[%s8772_s3 + $0x120] sm:$0xf]  ;;  %v4721_v53 = vor.u32 %v5709_v47, %v4718_v48  ;;  %2481 = vmatpush.bf16.msrb.mxu2 %v4845_v52  ;;  %v4494_v46 = vld [vmem:[%s8772_s3 + $0x10] sm:$0xf0]  ;;  %v5723_v48 = vld [vmem:[%s8772_s3 + $0x22c] sm:$0xf0] }
  0xd5   :  { %2469 = vmatpush.bf16.msrb.mxu1 %v4685_v58  ;;  %v4637_v27 = vor.u32 %v5691_v55, %v4636_v50  ;;  %v4702_v58 = vld [vmem:[%s8772_s3 + $0x1b0] sm:$0xf0]  ;;  %v1388_v55 = vadd.f32 %v1387_v1, %v252_v0  ;;  %v4764_v47 = vld [vmem:[%s8772_s3 + $0x220] sm:$0xf]  ;;  %v4497_v56 = vor.u32 %v5653_v41, %v4494_v46  ;;  %v5719_v0 = vld [vmem:[%s8772_s3 + $0x20c] sm:$0xf0] }
  0xd6   :  { %v4705_v2 = vor.u32 %v5705_v57, %v4702_v58  ;;  %v4670_v50 = vld [vmem:[%s8772_s3 + $0x170] sm:$0xf0]  ;;  %v4765_v52 = vor.u32 %v5723_v48, %v4764_v47  ;;  %v5685_v57 = vld [vmem:[%s8772_s3 + $0x104] sm:$0xf]  ;;  %v5775_v41 = vld [vmem:[%s8772_s3 + $0x3cc] sm:$0xf0] }
  0xd7   :  { %2456 = vmatpush.bf16.msra.mxu3 %v4541_v61  ;;  %v4828_v61 = vld [vmem:[%s8772_s3 + $0x2a0] sm:$0xf]  ;;  %v4622_v58 = vld [vmem:[%s8772_s3 + $0x110] sm:$0xf0]  ;;  %v4708_v47 = vld [vmem:[%s8772_s3 + $0x1a8] sm:$0xf] }
  0xd8   :  { %v4829_v63 = vor.u32 %v5739_v62, %v4828_v61  ;;  %v4613_v61 = vor.u32 %v5684_v51, %v4612_v49  ;;  %v4596_v62 = vld [vmem:[%s8772_s3 + $0xc8] sm:$0xf]  ;;  %v4625_v5 = vor.u32 %v5685_v57, %v4622_v58  ;;  %v5708_v49 = vld [vmem:[%s8772_s3 + $0x1b4] sm:$0xf0]  ;;  %v4798_v58 = vld [vmem:[%s8772_s3 + $0x270] sm:$0xf0] }
  0xd9   :  { %2470 = vmatpush.bf16.msrb.mxu1 %v4669_v4  ;;  %v5665_v4 = vld [vmem:[%s8772_s3 + $0x64] sm:$0xf]  ;;  %v1401_v12 = vpop.f32.mrf.mxu2  ;;  %v4532_v51 = vld [vmem:[%s8772_s3 + $0x48] sm:$0xf] }
  0xda   :  { %2482 = vmatpush.bf16.msrb.mxu2 %v4829_v63  ;;  %v4545_v16 = vor.u32 %v5665_v4, %v4542_v9  ;;  %v1402_v30 = vadd.f32 %v1401_v12, %v1388_v55  ;;  %v4748_v63 = vld [vmem:[%s8772_s3 + $0x200] sm:$0xf]  ;;  %v4740_v55 = vld [vmem:[%s8772_s3 + $0x1e8] sm:$0xf] }
  0xdb   :  { %2457 = vmatpush.bf16.msra.mxu3 %v4525_v7  ;;  %v4686_v7 = vld [vmem:[%s8772_s3 + $0x190] sm:$0xf0]  ;;  %v4749_v4 = vor.u32 %v5719_v0, %v4748_v63  ;;  %v5704_v0 = vld [vmem:[%s8772_s3 + $0x194] sm:$0xf0] }
  0xdc   :  { %v4689_v15 = vor.u32 %v5701_v6, %v4686_v7  ;;  %v5745_v6 = vld [vmem:[%s8772_s3 + $0x2e4] sm:$0xf]  ;;  %v4862_v7 = vld [vmem:[%s8772_s3 + $0x2f0] sm:$0xf0] }
  0xdd   :  { %2471 = vmatpush.bf16.msrb.mxu1 %v4653_v17  ;;  %v5661_v17 = vld [vmem:[%s8772_s3 + $0x44] sm:$0xf]  ;;  %v4865_v10 = vor.u32 %v5745_v6, %v4862_v7 }
  0xde   :  { %2483 = vmatpush.bf16.msrb.mxu2 %v4813_v13  ;;  %v4580_v13 = vld [vmem:[%s8772_s3 + $0xa8] sm:$0xf]  ;;  %v5725_v6 = vld [vmem:[%s8772_s3 + $0x244] sm:$0xf] }
  0xdf   :  { %2458 = vmatpush.bf16.msra.mxu3 %v4509_v18  ;;  %v5697_v18 = vld [vmem:[%s8772_s3 + $0x164] sm:$0xf] }
  0xe0   :  { %v1413_v11 = vpop.f32.mrf.mxu0  ;;  %v4673_v26 = vor.u32 %v5697_v18, %v4670_v50 }
  0xe1   :  { %2472 = vmatpush.bf16.msrb.mxu1 %v4637_v27  ;;  %v1427_v19 = vpop.f32.mrf.mxu1  ;;  %v4529_v27 = vor.u32 %v5661_v17, %v4526_v20  ;;  %v1414_v38 = vadd.f32 %v1413_v11, %v1400_v25  ;;  %v4846_v17 = vld [vmem:[%s8772_s3 + $0x2d0] sm:$0xf0] }
  0xe2   :  { %2484 = vmatpush.bf16.msrb.mxu2 %v4797_v24  ;;  %v5672_v24 = vld [vmem:[%s8772_s3 + $0x94] sm:$0xf0] }
  0xe3   :  { %2459 = vmatpush.bf16.msra.mxu3 %v4493_v8  ;;  %v5657_v8 = vld [vmem:[%s8772_s3 + $0x24] sm:$0xf] }
  0xe5   :  { %2473 = vmatpush.bf16.msrb.mxu1 %v4621_v54  ;;  %v4513_v54 = vor.u32 %v5657_v8, %v4510_v32  ;;  %v5737_v8 = vld [vmem:[%s8772_s3 + $0x2a4] sm:$0xf]  ;;  %v4741_v32 = vor.u32 %v5716_v21, %v4740_v55 }
  0xe6   :  { %2460 = vmatmul.bf16.vlgmr.msra.gmra.mxu3 %v7372_v44  ;;  %2485 = vmatpush.bf16.msrb.mxu2 %v4781_v36  ;;  %v4565_v36 = vor.u32 %v5672_v24, %v4564_v22  ;;  %v4766_v22 = vld [vmem:[%s8772_s3 + $0x230] sm:$0xf0] }
  0xe7   :  { %2508 = vmatpush.bf16.msrb.mxu3 %v4609_v31 }
  0xe8   :  { %v1415_v35 = vpop.f32.mrf.mxu0 }
  0xe9   :  { %2522 = vmatpush.bf16.msra.mxu1 %v4737_v43  ;;  %v1441_v31 = vpop.f32.mrf.mxu3  ;;  %v5689_v43 = vld [vmem:[%s8772_s3 + $0x124] sm:$0xf]  ;;  %v1429_v37 = vpop.f32.mrf.mxu1 }
  0xea   :  { %2486 = vmatpush.bf16.msrb.mxu2 %v4765_v52  ;;  %v5664_v52 = vld [vmem:[%s8772_s3 + $0x54] sm:$0xf0] }
  0xeb   :  { %2509 = vmatpush.bf16.msrb.mxu3 %v4593_v45  ;;  %v1416_v45 = vadd.f32 %v1415_v35, %v1402_v30  ;;  %v4533_v63 = vor.u32 %v5664_v52, %v4532_v51 }
  0xec   :  { %v1455_v40 = vpop.f32.mrf.mxu2 }
  0xed   :  { %2523 = vmatpush.bf16.msra.mxu1 %v4721_v53  ;;  %v1428_v53 = vadd.f32 %v1427_v19, %v1414_v38  ;;  %v1430_v59 = vadd.f32 %v1429_v37, %v1416_v45  ;;  %v5712_v38 = vld [vmem:[%s8772_s3 + $0x1d4] sm:$0xf0]  ;;  %v4814_v45 = vld [vmem:[%s8772_s3 + $0x290] sm:$0xf0] }
  0xee   :  { %2487 = vmatpush.bf16.msrb.mxu2 %v4749_v4  ;;  %v4725_v46 = vor.u32 %v5712_v38, %v4724_v33  ;;  %v5767_v4 = vld [vmem:[%s8772_s3 + $0x38c] sm:$0xf0]  ;;  %v4598_v33 = vld [vmem:[%s8772_s3 + $0xd8] sm:$0xf0] }
  0xef   :  { %2510 = vmatpush.bf16.msrb.mxu3 %v4577_v42  ;;  %v4641_v42 = vor.u32 %v5689_v43, %v4638_v60  ;;  %v1442_v9 = vadd.f32 %v1441_v31, %v1428_v53  ;;  %v4830_v31 = vld [vmem:[%s8772_s3 + $0x2b0] sm:$0xf0]  ;;  %v5733_v43 = vld [vmem:[%s8772_s3 + $0x284] sm:$0xf]  ;;  %v4956_v53 = vld [vmem:[%s8772_s3 + $0x3a0] sm:$0xf] }
  0xf0   :  { %v4833_v34 = vor.u32 %v5737_v8, %v4830_v31  ;;  %v4817_v48 = vor.u32 %v5733_v43, %v4814_v45  ;;  %v5696_v8 = vld [vmem:[%s8772_s3 + $0x154] sm:$0xf0]  ;;  %v5717_v31 = vld [vmem:[%s8772_s3 + $0x204] sm:$0xf]  ;;  %v4582_v45 = vld [vmem:[%s8772_s3 + $0xb8] sm:$0xf0] }
  0xf1   :  { %2524 = vmatpush.bf16.msra.mxu1 %v4705_v2  ;;  %v1443_v1 = vpop.f32.mrf.mxu3  ;;  %v1469_v2 = vpop.f32.mrf.mxu0  ;;  %v1456_v18 = vadd.f32 %v1455_v40, %v1442_v9  ;;  %v5668_v40 = vld [vmem:[%s8772_s3 + $0x74] sm:$0xf0]  ;;  %v4782_v9 = vld [vmem:[%s8772_s3 + $0x250] sm:$0xf0] }
  0xf2   :  { %v1444_v11 = vadd.f32 %v1443_v1, %v1430_v59  ;;  %2536 = vmatpush.bf16.msra.mxu2 %v4865_v10  ;;  %v4709_v59 = vor.u32 %v5708_v49, %v4708_v47  ;;  %v4516_v1 = vld [vmem:[%s8772_s3 + $0x28] sm:$0xf]  ;;  %v5755_v47 = vld [vmem:[%s8772_s3 + $0x32c] sm:$0xf0]  ;;  %v253_v49 = vperm.slane %v7252_v23, 2 }
  0xf3   :  { %2511 = vmatpush.bf16.msrb.mxu3 %v4561_v3  ;;  %v5680_v3 = vld [vmem:[%s8772_s3 + $0xd4] sm:$0xf0]  ;;  %v1470_v28 = vadd.f32 %v1469_v2, %v1456_v18  ;;  %v4676_v10 = vld [vmem:[%s8772_s3 + $0x168] sm:$0xf]  ;;  %v5721_v18 = vld [vmem:[%s8772_s3 + $0x224] sm:$0xf] }
  0xf4   :  { %v4597_v12 = vor.u32 %v5680_v3, %v4596_v62  ;;  %v1457_v14 = vpop.f32.mrf.mxu2  ;;  %v5660_v2 = vld [vmem:[%s8772_s3 + $0x34] sm:$0xf0]  ;;  %v4940_v3 = vld [vmem:[%s8772_s3 + $0x380] sm:$0xf] }
  0xf5   :  { %2525 = vmatpush.bf16.msra.mxu1 %v4689_v15  ;;  %v5676_v15 = vld [vmem:[%s8772_s3 + $0xb4] sm:$0xf0]  ;;  %v1458_v19 = vadd.f32 %v1457_v14, %v1444_v11  ;;  %v4941_v7 = vor.u32 %v5767_v4, %v4940_v3  ;;  %v4785_v11 = vor.u32 %v5725_v6, %v4782_v9  ;;  %v4500_v14 = vld [vmem:[%s8772_s3 + $0x8] sm:$0xf]  ;;  %v4990_v3 = vld [vmem:[%s8772_s3 + $0x3f0] sm:$0xf0] }
  0xf6   :  { %v4581_v20 = vor.u32 %v5676_v15, %v4580_v13  ;;  %v5700_v13 = vld [vmem:[%s8772_s3 + $0x174] sm:$0xf0] }
  0xf7   :  { %2512 = vmatpush.bf16.msrb.mxu3 %v4545_v16  ;;  %v5741_v16 = vld [vmem:[%s8772_s3 + $0x2c4] sm:$0xf]  ;;  %v5656_v15 = vld [vmem:[%s8772_s3 + $0x14] sm:$0xf0]  ;;  %v4677_v24 = vor.u32 %v5700_v13, %v4676_v10  ;;  %v4726_v10 = vld [vmem:[%s8772_s3 + $0x1d8] sm:$0xf0] }
  0xf8   :  { %v4849_v50 = vor.u32 %v5741_v16, %v4846_v17  ;;  %v4924_v16 = vld [vmem:[%s8772_s3 + $0x360] sm:$0xf]  ;;  %v5763_v17 = vld [vmem:[%s8772_s3 + $0x36c] sm:$0xf0]  ;;  %v5666_v13 = vld [vmem:[%s8772_s3 + $0x6c] sm:$0xf] }
  0xf9   :  { %2526 = vmatpush.bf16.msra.mxu1 %v4673_v26  ;;  %v1471_v25 = vpop.f32.mrf.mxu0  ;;  %v4988_v26 = vld [vmem:[%s8772_s3 + $0x3e0] sm:$0xf]  ;;  %v4925_v21 = vor.u32 %v5763_v17, %v4924_v16  ;;  %v5773_v16 = vld [vmem:[%s8772_s3 + $0x3c4] sm:$0xf]  ;;  %v4974_v17 = vld [vmem:[%s8772_s3 + $0x3d0] sm:$0xf0] }
  0xfa   :  { %2537 = vmatpush.bf16.msra.mxu2 %v4849_v50  ;;  %v1472_v29 = vadd.f32 %v1471_v25, %v1458_v19  ;;  %v5682_v19 = vld [vmem:[%s8772_s3 + $0xec] sm:$0xf]  ;;  %v4769_v25 = vor.u32 %v5721_v18, %v4766_v22 }
  0xfb   :  { %2513 = vmatpush.bf16.msrb.mxu3 %v4529_v27  ;;  %v5779_v27 = vld [vmem:[%s8772_s3 + $0x3ec] sm:$0xf0] }
  0xfc   :  { %v4989_v30 = vor.u32 %v5779_v27, %v4988_v26  ;;  %v7554_v35 = vpack.c.bf16 %v1472_v29, %v1470_v28  ;;  %v4501_v26 = vor.u32 %v5656_v15, %v4500_v14  ;;  %v4660_v27 = vld [vmem:[%s8772_s3 + $0x148] sm:$0xf]  ;;  %v4908_v29 = vld [vmem:[%s8772_s3 + $0x340] sm:$0xf]  ;;  %v4550_v14 = vld [vmem:[%s8772_s3 + $0x78] sm:$0xf0] }
  0xfd   :  { %2527 = vmatpush.bf16.msra.mxu1 %v4657_v39  ;;  %v4548_v39 = vld [vmem:[%s8772_s3 + $0x68] sm:$0xf]  ;;  %v4661_v38 = vor.u32 %v5696_v8, %v4660_v27  ;;  %v4553_v22 = vor.u32 %v5666_v13, %v4550_v14  ;;  %v4534_v27 = vld [vmem:[%s8772_s3 + $0x58] sm:$0xf0]  ;;  %v5690_v14 = vld [vmem:[%s8772_s3 + $0x12c] sm:$0xf] }
  0xfe   :  { %2494 = vmatpush.bf16.msra.mxu0 %v4989_v30  ;;  %2538 = vmatpush.bf16.msra.mxu2 %v4833_v34  ;;  %v4549_v37 = vor.u32 %v5668_v40, %v4548_v39  ;;  %v5759_v30 = vld [vmem:[%s8772_s3 + $0x34c] sm:$0xf0] }
  0xff   :  { %2514 = vmatpush.bf16.msrb.mxu3 %v4513_v54  ;;  %v4972_v54 = vld [vmem:[%s8772_s3 + $0x3c0] sm:$0xf]  ;;  %2474 = vmatmul.bf16.vlgmr.msrb.gmra.mxu1 %v7554_v35  ;;  %v4909_v34 = vor.u32 %v5759_v30, %v4908_v29  ;;  %v4958_v29 = vld [vmem:[%s8772_s3 + $0x3b0] sm:$0xf0] }
 0x100   :  { %v4973_v60 = vor.u32 %v5775_v41, %v4972_v54  ;;  %v4644_v54 = vld [vmem:[%s8772_s3 + $0x128] sm:$0xf]  ;;  %v5692_v41 = vld [vmem:[%s8772_s3 + $0x134] sm:$0xf0] }
 0x101   :  { %2528 = vmatpush.bf16.msra.mxu1 %v4641_v42  ;;  %v5771_v42 = vld [vmem:[%s8772_s3 + $0x3ac] sm:$0xf0]  ;;  %v7647_v50 = vpop.f32.mrf.mxu1 }
 0x102   :  { %2495 = vmatpush.bf16.msra.mxu0 %v4973_v60  ;;  %2539 = vmatpush.bf16.msra.mxu2 %v4817_v48  ;;  %v4957_v57 = vor.u32 %v5771_v42, %v4956_v53  ;;  %v5674_v60 = vld [vmem:[%s8772_s3 + $0xac] sm:$0xf]  ;;  %v4645_v48 = vor.u32 %v5692_v41, %v4644_v54  ;;  %v4628_v53 = vld [vmem:[%s8772_s3 + $0x108] sm:$0xf]  ;;  %v5688_v42 = vld [vmem:[%s8772_s3 + $0x114] sm:$0xf0] }
 0x103   :  { %2515 = vmatpush.bf16.msrb.mxu3 %v4497_v56  ;;  %v5729_v56 = vld [vmem:[%s8772_s3 + $0x264] sm:$0xf]  ;;  %v4942_v41 = vld [vmem:[%s8772_s3 + $0x390] sm:$0xf0] }
 0x104   :  { %v4801_v62 = vor.u32 %v5729_v56, %v4798_v58  ;;  %v7649_v55 = vpop.f32.mrf.mxu0  ;;  %v4585_v56 = vor.u32 %v5674_v60, %v4582_v45  ;;  %v4742_v58 = vld [vmem:[%s8772_s3 + $0x1f8] sm:$0xf0]  ;;  %v5765_v54 = vld [vmem:[%s8772_s3 + $0x384] sm:$0xf] }
 0x105   :  { %2529 = vmatpush.bf16.msra.mxu1 %v4625_v5  ;;  %v4945_v45 = vor.u32 %v5765_v54, %v4942_v41  ;;  %v4804_v41 = vld [vmem:[%s8772_s3 + $0x268] sm:$0xf] }
 0x106   :  { %2516 = vmatmul.bf16.vlgmr.msrb.gmra.mxu3 %v7372_v44  ;;  %2496 = vmatpush.bf16.msra.mxu0 %v4957_v57  ;;  %v5714_v57 = vld [vmem:[%s8772_s3 + $0x1ec] sm:$0xf] }
 0x107   :  { %2564 = vmatpush.bf16.msra.mxu3 %v4613_v61  ;;  %v4692_v61 = vld [vmem:[%s8772_s3 + $0x188] sm:$0xf]  ;;  %2540 = vmatpush.bf16.msra.mxu2 %v4801_v62  ;;  %v4876_v62 = vld [vmem:[%s8772_s3 + $0x300] sm:$0xf]  ;;  %v4745_v4 = vor.u32 %v5714_v57, %v4742_v58  ;;  %v5761_v57 = vld [vmem:[%s8772_s3 + $0x364] sm:$0xf] }
 0x108   :  { %v4693_v5 = vor.u32 %v5704_v0, %v4692_v61  ;;  %v4566_v61 = vld [vmem:[%s8772_s3 + $0x98] sm:$0xf0]  ;;  %v4629_v0 = vor.u32 %v5688_v42, %v4628_v53  ;;  %v4926_v58 = vld [vmem:[%s8772_s3 + $0x370] sm:$0xf0] }
 0x109   :  { %2578 = vmatpush.bf16.msrb.mxu1 %v4741_v32  ;;  %v5678_v32 = vld [vmem:[%s8772_s3 + $0xcc] sm:$0xf]  ;;  %v1497_v40 = vpop.f32.mrf.mxu3  ;;  %v1485_v51 = vpop.f32.mrf.mxu1  ;;  %v4502_v53 = vld [vmem:[%s8772_s3 + $0x18] sm:$0xf0] }
 0x10a   :  { %2497 = vmatpush.bf16.msra.mxu0 %v4941_v7  ;;  %v4601_v43 = vor.u32 %v5678_v32, %v4598_v33  ;;  %v1484_v7 = vadd.f32 %v7647_v50, %v253_v49  ;;  %v1486_v15 = vadd.f32 %v1485_v51, %v253_v49 }
 0x10b   :  { %2565 = vmatpush.bf16.msra.mxu3 %v4597_v12  ;;  %v4517_v12 = vor.u32 %v5660_v2, %v4516_v1  ;;  %2541 = vmatpush.bf16.msra.mxu2 %v4785_v11  ;;  %v5777_v2 = vld [vmem:[%s8772_s3 + $0x3e4] sm:$0xf] }
 0x10c   :  { %v7705_v52 = vpop.f32.mrf.mxu0  ;;  %v4993_v6 = vor.u32 %v5777_v2, %v4990_v3  ;;  %v1525_v11 = vpop.f32.mrf.mxu2  ;;  %v4662_v2 = vld [vmem:[%s8772_s3 + $0x158] sm:$0xf0] }
 0x10d   :  { %2579 = vmatpush.bf16.msrb.mxu1 %v4725_v46  ;;  %v4892_v46 = vld [vmem:[%s8772_s3 + $0x320] sm:$0xf] }
 0x10e   :  { %2498 = vmatpush.bf16.msra.mxu0 %v4925_v21  ;;  %v1498_v21 = vadd.f32 %v1497_v40, %v1484_v7  ;;  %v4518_v40 = vld [vmem:[%s8772_s3 + $0x38] sm:$0xf0]  ;;  %v5748_v7 = vld [vmem:[%s8772_s3 + $0x2f4] sm:$0xf0] }
 0x10f   :  { %2566 = vmatpush.bf16.msra.mxu3 %v4581_v20  ;;  %v4614_v20 = vld [vmem:[%s8772_s3 + $0xf8] sm:$0xf0]  ;;  %2542 = vmatpush.bf16.msra.mxu2 %v4769_v25 }
 0x110   :  { %v4617_v28 = vor.u32 %v5682_v19, %v4614_v20  ;;  %2530 = vmatmul.bf16.vlgmr.msra.gmra.mxu1 %v7554_v35  ;;  %v4977_v20 = vor.u32 %v5773_v16, %v4974_v17  ;;  %v4710_v25 = vld [vmem:[%s8772_s3 + $0x1b8] sm:$0xf0]  ;;  %v1512_v32 = vadd.f32 %v7649_v55, %v1498_v21  ;;  %v4852_v17 = vld [vmem:[%s8772_s3 + $0x2c8] sm:$0xf] }
 0x111   :  { %2580 = vmatpush.bf16.msrb.mxu1 %v4709_v59  ;;  %v5670_v59 = vld [vmem:[%s8772_s3 + $0x8c] sm:$0xf] }
 0x112   :  { %2499 = vmatpush.bf16.msra.mxu0 %v4909_v34  ;;  %v4569_v9 = vor.u32 %v5670_v59, %v4566_v61  ;;  %v5702_v34 = vld [vmem:[%s8772_s3 + $0x18c] sm:$0xf]  ;;  %v4929_v61 = vor.u32 %v5761_v57, %v4926_v58 }
 0x113   :  { %2567 = vmatpush.bf16.msra.mxu3 %v4565_v36  ;;  %v4750_v36 = vld [vmem:[%s8772_s3 + $0x210] sm:$0xf0] }
 0x114   :  { %v4753_v39 = vor.u32 %v5717_v31, %v4750_v36  ;;  %v7756_v50 = vpop.f32.mrf.mxu0  ;;  %v4694_v36 = vld [vmem:[%s8772_s3 + $0x198] sm:$0xf0] }
 0x115   :  { %2581 = vmatpush.bf16.msrb.mxu1 %v4693_v5  ;;  %v5710_v5 = vld [vmem:[%s8772_s3 + $0x1cc] sm:$0xf]  ;;  %v4697_v60 = vor.u32 %v5702_v34, %v4694_v36  ;;  %v4820_v34 = vld [vmem:[%s8772_s3 + $0x288] sm:$0xf]  ;;  %v5736_v36 = vld [vmem:[%s8772_s3 + $0x294] sm:$0xf0] }
 0x116   :  { %2543 = vmatpush.bf16.msra.mxu2 %v4753_v39  ;;  %v4729_v19 = vor.u32 %v5710_v5, %v4726_v10  ;;  %v5658_v39 = vld [vmem:[%s8772_s3 + $0x2c] sm:$0xf]  ;;  %v4910_v5 = vld [vmem:[%s8772_s3 + $0x350] sm:$0xf0]  ;;  %v4821_v54 = vor.u32 %v5736_v36, %v4820_v34  ;;  %v4806_v36 = vld [vmem:[%s8772_s3 + $0x278] sm:$0xf0] }
 0x117   :  { %2568 = vmatpush.bf16.msra.mxu3 %v4549_v37  ;;  %v4893_v37 = vor.u32 %v5755_v47, %v4892_v46  ;;  %v1526_v46 = vadd.f32 %v1525_v11, %v1512_v32  ;;  %v4521_v47 = vor.u32 %v5658_v39, %v4518_v40  ;;  %v254_v39 = vperm.slane %v7252_v23, 3  ;;  %v4788_v23 = vld [vmem:[%s8772_s3 + $0x248] sm:$0xf]  ;;  %v5730_v34 = vld [vmem:[%s8772_s3 + $0x26c] sm:$0xf] }
 0x119   :  { %2582 = vmatpush.bf16.msrb.mxu1 %v4677_v24  ;;  %2500 = vmatpush.bf16.msra.mxu0 %v4893_v37  ;;  %v5706_v24 = vld [vmem:[%s8772_s3 + $0x1ac] sm:$0xf]  ;;  %v4678_v37 = vld [vmem:[%s8772_s3 + $0x178] sm:$0xf0] }
 0x11a   :  { %v4713_v30 = vor.u32 %v5706_v24, %v4710_v25 }
 0x11b   :  { %2569 = vmatpush.bf16.msra.mxu3 %v4533_v63  ;;  %v5751_v63 = vld [vmem:[%s8772_s3 + $0x30c] sm:$0xf0] }
 0x11c   :  { %v4877_v1 = vor.u32 %v5751_v63, %v4876_v62  ;;  %v1569_v51 = vpop.f32.mrf.mxu0 }
 0x11d   :  { %2583 = vmatpush.bf16.msrb.mxu1 %v4661_v38 }
 0x11e   :  { %2501 = vmatpush.bf16.msra.mxu0 %v4877_v1  ;;  %v5694_v1 = vld [vmem:[%s8772_s3 + $0x14c] sm:$0xf] }
 0x11f   :  { %2570 = vmatpush.bf16.msra.mxu3 %v4517_v12  ;;  %v1499_v12 = vpop.f32.mrf.mxu3  ;;  %v4665_v10 = vor.u32 %v5694_v1, %v4662_v2 }
 0x120   :  { %v1500_v8 = vadd.f32 %v1499_v12, %v1486_v15  ;;  %v4646_v15 = vld [vmem:[%s8772_s3 + $0x138] sm:$0xf0] }
 0x121   :  { %2584 = vmatpush.bf16.msrb.mxu1 %v4645_v48  ;;  %v1539_v18 = vpop.f32.mrf.mxu1  ;;  %v5698_v48 = vld [vmem:[%s8772_s3 + $0x16c] sm:$0xf]  ;;  %v4649_v24 = vor.u32 %v5690_v14, %v4646_v15 }
 0x122   :  { %2550 = vmatpush.bf16.msrb.mxu0 %v4993_v6  ;;  %v1514_v55 = vadd.f32 %v7705_v52, %v1500_v8  ;;  %v5654_v52 = vld [vmem:[%s8772_s3 + $0xc] sm:$0xf]  ;;  %v4681_v59 = vor.u32 %v5698_v48, %v4678_v37 }
 0x123   :  { %2571 = vmatpush.bf16.msra.mxu3 %v4501_v26  ;;  %v5662_v26 = vld [vmem:[%s8772_s3 + $0x4c] sm:$0xf] }
 0x124   :  { %v4537_v33 = vor.u32 %v5662_v26, %v4534_v27  ;;  %v5686_v26 = vld [vmem:[%s8772_s3 + $0x10c] sm:$0xf]  ;;  %v4630_v27 = vld [vmem:[%s8772_s3 + $0x118] sm:$0xf0] }
 0x125   :  { %2585 = vmatpush.bf16.msrb.mxu1 %v4629_v0  ;;  %v4505_v0 = vor.u32 %v5654_v52, %v4502_v53  ;;  %v4772_v52 = vld [vmem:[%s8772_s3 + $0x228] sm:$0xf]  ;;  %v5724_v53 = vld [vmem:[%s8772_s3 + $0x234] sm:$0xf0] }
 0x126   :  { %2572 = vmatmul.bf16.vlgmr.msra.gmra.mxu3 %v7372_v44  ;;  %2551 = vmatpush.bf16.msrb.mxu0 %v4977_v20  ;;  %v4894_v20 = vld [vmem:[%s8772_s3 + $0x330] sm:$0xf0] }
 0x127   :  { %2620 = vmatpush.bf16.msrb.mxu3 %v4617_v28  ;;  %v5769_v28 = vld [vmem:[%s8772_s3 + $0x3a4] sm:$0xf] }
 0x128   :  { %2586 = vmatmul.bf16.vlgmr.msrb.gmra.mxu1 %v7554_v35  ;;  %v4961_v31 = vor.u32 %v5769_v28, %v4958_v29  ;;  %v4836_v28 = vld [vmem:[%s8772_s3 + $0x2a8] sm:$0xf]  ;;  %v5749_v29 = vld [vmem:[%s8772_s3 + $0x304] sm:$0xf] }
 0x129   :  { %2634 = vmatpush.bf16.msra.mxu1 %v4745_v4  ;;  %v1553_v38 = vpop.f32.mrf.mxu3  ;;  %v1541_v49 = vpop.f32.mrf.mxu1  ;;  %v4868_v4 = vld [vmem:[%s8772_s3 + $0x2e8] sm:$0xf] }
 0x12a   :  { %2552 = vmatpush.bf16.msrb.mxu0 %v4961_v31  ;;  %v4869_v16 = vor.u32 %v5748_v7, %v4868_v4  ;;  %v4633_v31 = vor.u32 %v5686_v26, %v4630_v27  ;;  %v4870_v4 = vld [vmem:[%s8772_s3 + $0x2f8] sm:$0xf0] }
 0x12b   :  { %2621 = vmatpush.bf16.msrb.mxu3 %v4601_v43  ;;  %v1527_v43 = vpop.f32.mrf.mxu2 }
 0x12c   :  { %v1528_v42 = vadd.f32 %v1527_v43, %v1514_v55  ;;  %v5732_v43 = vld [vmem:[%s8772_s3 + $0x274] sm:$0xf0] }
 0x12d   :  { %2635 = vmatpush.bf16.msra.mxu1 %v4729_v19  ;;  %v5753_v19 = vld [vmem:[%s8772_s3 + $0x324] sm:$0xf] }
 0x12e   :  { %2553 = vmatpush.bf16.msrb.mxu0 %v4945_v45  ;;  %v1542_v63 = vadd.f32 %v1541_v49, %v1528_v42  ;;  %v4897_v25 = vor.u32 %v5753_v19, %v4894_v20  ;;  %v4805_v45 = vor.u32 %v5732_v43, %v4804_v41  ;;  %v5738_v20 = vld [vmem:[%s8772_s3 + $0x2ac] sm:$0xf]  ;;  %v4790_v41 = vld [vmem:[%s8772_s3 + $0x258] sm:$0xf0] }
 0x12f   :  { %2622 = vmatpush.bf16.msrb.mxu3 %v4585_v56  ;;  %v1540_v56 = vadd.f32 %v1539_v18, %v1526_v46 }
 0x131   :  { %2636 = vmatpush.bf16.msra.mxu1 %v4713_v30  ;;  %v1554_v62 = vadd.f32 %v1553_v38, %v1540_v56  ;;  %v1555_v3 = vpop.f32.mrf.mxu3  ;;  %v4878_v30 = vld [vmem:[%s8772_s3 + $0x310] sm:$0xf0] }
 0x132   :  { %2554 = vmatpush.bf16.msrb.mxu0 %v4929_v61  ;;  %v1556_v6 = vadd.f32 %v1555_v3, %v1542_v63  ;;  %v4881_v32 = vor.u32 %v5749_v29, %v4878_v30  ;;  %v4756_v63 = vld [vmem:[%s8772_s3 + $0x208] sm:$0xf]  ;;  %v5746_v3 = vld [vmem:[%s8772_s3 + $0x2ec] sm:$0xf]  ;;  %v4822_v29 = vld [vmem:[%s8772_s3 + $0x298] sm:$0xf0] }
 0x133   :  { %2623 = vmatpush.bf16.msrb.mxu3 %v4569_v9  ;;  %v5757_v9 = vld [vmem:[%s8772_s3 + $0x344] sm:$0xf]  ;;  %v1568_v12 = vadd.f32 %v7756_v50, %v1554_v62  ;;  %v5744_v50 = vld [vmem:[%s8772_s3 + $0x2d4] sm:$0xf0]  ;;  %v1581_v21 = vpop.f32.mrf.mxu2 }
 0x134   :  { %v4913_v11 = vor.u32 %v5757_v9, %v4910_v5  ;;  %v1570_v13 = vadd.f32 %v1569_v51, %v1556_v6  ;;  %v4853_v8 = vor.u32 %v5744_v50, %v4852_v17  ;;  %v4996_v17 = vld [vmem:[%s8772_s3 + $0x3e8] sm:$0xf]  ;;  %v5780_v50 = vld [vmem:[%s8772_s3 + $0x3f4] sm:$0xf0] }
 0x135   :  { %2637 = vmatpush.bf16.msra.mxu1 %v4697_v60  ;;  %v1582_v60 = vadd.f32 %v1581_v21, %v254_v39  ;;  %v4838_v21 = vld [vmem:[%s8772_s3 + $0x2b8] sm:$0xf0] }
 0x136   :  { %2555 = vmatpush.bf16.msrb.mxu0 %v4913_v11  ;;  %v7843_v18 = vpack.c.bf16 %v1570_v13, %v1568_v12  ;;  %v5742_v11 = vld [vmem:[%s8772_s3 + $0x2cc] sm:$0xf]  ;;  %v4854_v12 = vld [vmem:[%s8772_s3 + $0x2d8] sm:$0xf0]  ;;  %v4841_v27 = vor.u32 %v5738_v20, %v4838_v21 }
 0x137   :  { %2624 = vmatpush.bf16.msrb.mxu3 %v4553_v22  ;;  %v1595_v22 = vpop.f32.mrf.mxu0  ;;  %v5750_v20 = vld [vmem:[%s8772_s3 + $0x30c] sm:$0xf]  ;;  %v4886_v21 = vld [vmem:[%s8772_s3 + $0x318] sm:$0xf0] }
 0x138   :  { %2488 = vmatmul.bf16.vlgmr.msrb.gmra.mxu2 %v7843_v18  ;;  %v1596_v37 = vadd.f32 %v1595_v22, %v1582_v60 }
 0x139   :  { %2638 = vmatpush.bf16.msra.mxu1 %v4681_v59  ;;  %2592 = vmatpush.bf16.msrb.mxu2 %v4869_v16  ;;  %v4773_v59 = vor.u32 %v5724_v53, %v4772_v52  ;;  %v4857_v16 = vor.u32 %v5742_v11, %v4854_v12  ;;  %v4758_v52 = vld [vmem:[%s8772_s3 + $0x218] sm:$0xf0]  ;;  %v5762_v11 = vld [vmem:[%s8772_s3 + $0x36c] sm:$0xf] }
 0x13a   :  { %2556 = vmatpush.bf16.msrb.mxu0 %v4897_v25  ;;  %v4997_v25 = vor.u32 %v5780_v50, %v4996_v17  ;;  %v4934_v12 = vld [vmem:[%s8772_s3 + $0x378] sm:$0xf0]  ;;  %v5754_v17 = vld [vmem:[%s8772_s3 + $0x32c] sm:$0xf] }
 0x13b   :  { %2625 = vmatpush.bf16.msrb.mxu3 %v4537_v33  ;;  %v1583_v40 = vpop.f32.mrf.mxu2  ;;  %v4902_v50 = vld [vmem:[%s8772_s3 + $0x338] sm:$0xf0] }
 0x13d   :  { %2639 = vmatpush.bf16.msra.mxu1 %v4665_v10  ;;  %2593 = vmatpush.bf16.msrb.mxu2 %v4853_v8  ;;  %v4873_v10 = vor.u32 %v5746_v3, %v4870_v4  ;;  %v4980_v8 = vld [vmem:[%s8772_s3 + $0x3c8] sm:$0xf]  ;;  %v4982_v3 = vld [vmem:[%s8772_s3 + $0x3d8] sm:$0xf0] }
 0x13e   :  { %2557 = vmatpush.bf16.msrb.mxu0 %v4881_v32  ;;  %v4964_v32 = vld [vmem:[%s8772_s3 + $0x3a8] sm:$0xf] }
 0x13f   :  { %2626 = vmatpush.bf16.msrb.mxu3 %v4521_v47  ;;  %v1597_v55 = vpop.f32.mrf.mxu0  ;;  %v1584_v47 = vadd.f32 %v1583_v40, %v254_v39  ;;  %v4809_v39 = vor.u32 %v5730_v34, %v4806_v36  ;;  %v4948_v40 = vld [vmem:[%s8772_s3 + $0x388] sm:$0xf]  ;;  %v5028_v34 = vld [vmem:[%s8774_s5 + $0x30] sm:$0xf]  ;;  %v5788_v36 = vld [vmem:[%s8774_s5 + $0x34] sm:$0xf0] }
 0x141   :  { %2640 = vmatpush.bf16.msra.mxu1 %v4649_v24  ;;  %v1609_v38 = vpop.f32.mrf.mxu1  ;;  %v1598_v42 = vadd.f32 %v1597_v55, %v1584_v47  ;;  %v5768_v55 = vld [vmem:[%s8772_s3 + $0x394] sm:$0xf0] }
 0x142   :  { %v1610_v57 = vadd.f32 %v1609_v38, %v1596_v37  ;;  %v4949_v43 = vor.u32 %v5768_v55, %v4948_v40  ;;  %v4916_v37 = vld [vmem:[%s8772_s3 + $0x348] sm:$0xf]  ;;  %v5812_v40 = vld [vmem:[%s8774_s5 + $0xf4] sm:$0xf0] }
 0x143   :  { %2627 = vmatpush.bf16.msrb.mxu3 %v4505_v0  ;;  %v5720_v0 = vld [vmem:[%s8772_s3 + $0x214] sm:$0xf0] }
 0x144   :  { %v4757_v7 = vor.u32 %v5720_v0, %v4756_v63  ;;  %v4998_v63 = vld [vmem:[%s8772_s3 + $0x3f8] sm:$0xf0] }
 0x145   :  { %2641 = vmatpush.bf16.msra.mxu1 %v4633_v31 }
 0x146   :  { %2628 = vmatmul.bf16.vlgmr.msrb.gmra.mxu3 %v7372_v44  ;;  %v5740_v44 = vld [vmem:[%s8772_s3 + $0x2b4] sm:$0xf0] }
 0x147   :  { %v4837_v33 = vor.u32 %v5740_v44, %v4836_v28  ;;  %v5776_v28 = vld [vmem:[%s8772_s3 + $0x3d4] sm:$0xf0]  ;;  %v5734_v44 = vld [vmem:[%s8772_s3 + $0x28c] sm:$0xf] }
 0x148   :  { %2642 = vmatmul.bf16.vlgmr.msra.gmra.mxu1 %v7554_v35  ;;  %v5728_v35 = vld [vmem:[%s8772_s3 + $0x254] sm:$0xf0]  ;;  %2544 = vmatmul.bf16.vlgmr.msra.gmra.mxu2 %v7843_v18  ;;  %v1651_v56 = vpop.f32.mrf.mxu0  ;;  %v4981_v30 = vor.u32 %v5776_v28, %v4980_v8  ;;  %v4825_v31 = vor.u32 %v5734_v44, %v4822_v29  ;;  %v5052_v8 = vld [vmem:[%s8774_s5 + $0x60] sm:$0xf]  ;;  %v5794_v28 = vld [vmem:[%s8774_s5 + $0x64] sm:$0xf0] }
 0x149   :  { %2594 = vmatpush.bf16.msrb.mxu2 %v4837_v33  ;;  %v1623_v46 = vpop.f32.mrf.mxu3  ;;  %v1611_v48 = vpop.f32.mrf.mxu1  ;;  %v4789_v51 = vor.u32 %v5728_v35, %v4788_v23  ;;  %v5772_v33 = vld [vmem:[%s8772_s3 + $0x3b4] sm:$0xf0]  ;;  %v5722_v23 = vld [vmem:[%s8772_s3 + $0x22c] sm:$0xf]  ;;  %v4774_v35 = vld [vmem:[%s8772_s3 + $0x238] sm:$0xf0]  ;;  %v5053_v44 = vor.u32 %v5794_v28, %v5052_v8 }
 0x14a   :  { %v1612_v58 = vadd.f32 %v1611_v48, %v1598_v42  ;;  %v1624_v61 = vadd.f32 %v1623_v46, %v1610_v57  ;;  %v4965_v38 = vor.u32 %v5772_v33, %v4964_v32  ;;  %v5764_v46 = vld [vmem:[%s8772_s3 + $0x374] sm:$0xf0]  ;;  %v4777_v48 = vor.u32 %v5722_v23, %v4774_v35  ;;  %v5790_v32 = vld [vmem:[%s8774_s5 + $0x44] sm:$0xf0]  ;;  %v5012_v23 = vld [vmem:[%s8774_s5 + $0x10] sm:$0xf] }
 0x14b   :  { %v5756_v57 = vld [vmem:[%s8772_s3 + $0x334] sm:$0xf0]  ;;  %v5798_v8 = vld [vmem:[%s8774_s5 + $0x84] sm:$0xf0]  ;;  %v5164_v28 = vld [vmem:[%s8774_s5 + $0x140] sm:$0xf] }
 0x14c   :  { %v1637_v49 = vpop.f32.mrf.mxu2  ;;  %v5792_v29 = vld [vmem:[%s8774_s5 + $0x54] sm:$0xf0] }
 0x14d   :  { %2595 = vmatpush.bf16.msrb.mxu2 %v4821_v54  ;;  %v1638_v9 = vadd.f32 %v1637_v49, %v1624_v61  ;;  %v5726_v54 = vld [vmem:[%s8772_s3 + $0x24c] sm:$0xf]  ;;  %v5760_v49 = vld [vmem:[%s8772_s3 + $0x354] sm:$0xf0] }
 0x14e   :  { %v4793_v60 = vor.u32 %v5726_v54, %v4790_v41  ;;  %v4917_v53 = vor.u32 %v5760_v49, %v4916_v37  ;;  %v5752_v61 = vld [vmem:[%s8772_s3 + $0x314] sm:$0xf0]  ;;  %v5020_v54 = vld [vmem:[%s8774_s5 + $0x20] sm:$0xf]  ;;  %v5786_v41 = vld [vmem:[%s8774_s5 + $0x24] sm:$0xf0] }
 0x14f   :  { %v1652_v14 = vadd.f32 %v1651_v56, %v1638_v9  ;;  %v4900_v56 = vld [vmem:[%s8772_s3 + $0x328] sm:$0xf]  ;;  %v5766_v9 = vld [vmem:[%s8772_s3 + $0x38c] sm:$0xf]  ;;  %v5784_v35 = vld [vmem:[%s8774_s5 + $0x14] sm:$0xf0] }
 0x150   :  { %v1653_v13 = vpop.f32.mrf.mxu0  ;;  %v5808_v37 = vld [vmem:[%s8774_s5 + $0xd4] sm:$0xf0] }
 0x151   :  { %2596 = vmatpush.bf16.msrb.mxu2 %v4805_v45  ;;  %v1625_v62 = vpop.f32.mrf.mxu3  ;;  %v1665_v2 = vpop.f32.mrf.mxu1  ;;  %v4932_v45 = vld [vmem:[%s8772_s3 + $0x368] sm:$0xf] }
 0x152   :  { %v1626_v1 = vadd.f32 %v1625_v62, %v1612_v58  ;;  %v1666_v22 = vadd.f32 %v1665_v2, %v1652_v14  ;;  %v4933_v47 = vor.u32 %v5764_v46, %v4932_v45  ;;  %v4901_v58 = vor.u32 %v5756_v57, %v4900_v56  ;;  %v5778_v62 = vld [vmem:[%s8772_s3 + $0x3ec] sm:$0xf]  ;;  %v5810_v45 = vld [vmem:[%s8774_s5 + $0xe4] sm:$0xf0]  ;;  %v5795_v57 = vld [vmem:[%s8774_s5 + $0x74] sm:$0xf] }
 0x153   :  { %v5774_v2 = vld [vmem:[%s8772_s3 + $0x3cc] sm:$0xf]  ;;  %v5806_v56 = vld [vmem:[%s8774_s5 + $0xc4] sm:$0xf0] }
 0x154   :  { %v1639_v6 = vpop.f32.mrf.mxu2  ;;  %v4985_v4 = vor.u32 %v5774_v2, %v4982_v3  ;;  %v5758_v14 = vld [vmem:[%s8772_s3 + $0x34c] sm:$0xf]  ;;  %v5828_v2 = vld [vmem:[%s8774_s5 + $0x174] sm:$0xf0]  ;;  %v5793_v3 = vld [vmem:[%s8774_s5 + $0x64] sm:$0xf] }
 0x155   :  { %2597 = vmatpush.bf16.msrb.mxu2 %v4789_v51  ;;  %v1640_v5 = vadd.f32 %v1639_v6, %v1626_v1  ;;  %v5718_v51 = vld [vmem:[%s8772_s3 + $0x20c] sm:$0xf]  ;;  %v5001_v1 = vor.u32 %v5778_v62, %v4998_v63  ;;  %v5092_v62 = vld [vmem:[%s8774_s5 + $0xb0] sm:$0xf]  ;;  %v5804_v63 = vld [vmem:[%s8774_s5 + $0xb4] sm:$0xf0] }
 0x156   :  { %v4761_v42 = vor.u32 %v5718_v51, %v4758_v52  ;;  %v5770_v6 = vld [vmem:[%s8772_s3 + $0x3ac] sm:$0xf]  ;;  %v5004_v51 = vld [vmem:[%s8774_s5] sm:$0xf]  ;;  %v5782_v52 = vld [vmem:[%s8774_s5 + $0x4] sm:$0xf0] }
 0x157   :  { %v1654_v15 = vadd.f32 %v1653_v13, %v1640_v5  ;;  %v4950_v5 = vld [vmem:[%s8772_s3 + $0x398] sm:$0xf0]  ;;  %v4937_v13 = vor.u32 %v5762_v11, %v4934_v12  ;;  %v5826_v11 = vld [vmem:[%s8774_s5 + $0x164] sm:$0xf0]  ;;  %v5791_v12 = vld [vmem:[%s8774_s5 + $0x54] sm:$0xf] }
 0x159   :  { %2598 = vmatpush.bf16.msrb.mxu2 %v4773_v59  ;;  %v1667_v19 = vpop.f32.mrf.mxu1  ;;  %v4884_v59 = vld [vmem:[%s8772_s3 + $0x308] sm:$0xf] }
 0x15a   :  { %v1668_v24 = vadd.f32 %v1667_v19, %v1654_v15  ;;  %v4885_v0 = vor.u32 %v5752_v61, %v4884_v59  ;;  %v4918_v15 = vld [vmem:[%s8772_s3 + $0x358] sm:$0xf0]  ;;  %v4905_v19 = vor.u32 %v5754_v17, %v4902_v50  ;;  %v5800_v17 = vld [vmem:[%s8774_s5 + $0x94] sm:$0xf0]  ;;  %v5172_v50 = vld [vmem:[%s8774_s5 + $0x150] sm:$0xf] }
 0x15c   :  { %v7932_v26 = vpack.c.bf16 %v1668_v24, %v1666_v22  ;;  %v4889_v22 = vor.u32 %v5750_v20, %v4886_v21  ;;  %v5060_v24 = vld [vmem:[%s8774_s5 + $0x70] sm:$0xf]  ;;  %v5824_v20 = vld [vmem:[%s8774_s5 + $0x154] sm:$0xf0]  ;;  %v5789_v21 = vld [vmem:[%s8774_s5 + $0x44] sm:$0xf] }
 0x15d   :  { %2599 = vmatpush.bf16.msrb.mxu2 %v4757_v7 }
 0x15e   :  { %2502 = vmatmul.bf16.vlgmr.msra.gmra.mxu0 %v7932_v26 }
 0x15f   :  { %2606 = vmatpush.bf16.msra.mxu0 %v4997_v25  ;;  %v5796_v25 = vld [vmem:[%s8774_s5 + $0x74] sm:$0xf0] }
 0x160   :  { %2600 = vmatmul.bf16.vlgmr.msrb.gmra.mxu2 %v7843_v18 }
 0x161   :  { %2648 = vmatpush.bf16.msra.mxu2 %v4873_v10  ;;  %v4953_v10 = vor.u32 %v5766_v9, %v4950_v5  ;;  %v5802_v9 = vld [vmem:[%s8774_s5 + $0xa4] sm:$0xf0]  ;;  %v5180_v5 = vld [vmem:[%s8774_s5 + $0x160] sm:$0xf] }
 0x163   :  { %2607 = vmatpush.bf16.msra.mxu0 %v4981_v30 }
 0x165   :  { %2649 = vmatpush.bf16.msra.mxu2 %v4857_v16  ;;  %v4921_v16 = vor.u32 %v5758_v14, %v4918_v15  ;;  %v5181_v14 = vor.u32 %v5826_v11, %v5180_v5  ;;  %v5252_v5 = vld [vmem:[%s8774_s5 + $0x1f0] sm:$0xf]  ;;  %v5844_v11 = vld [vmem:[%s8774_s5 + $0x1f4] sm:$0xf0] }
 0x167   :  { %2608 = vmatpush.bf16.msra.mxu0 %v4965_v38  ;;  %v5124_v38 = vld [vmem:[%s8774_s5 + $0xf0] sm:$0xf] }
 0x168   :  { %v5125_v55 = vor.u32 %v5812_v40, %v5124_v38  ;;  %v5820_v40 = vld [vmem:[%s8774_s5 + $0x134] sm:$0xf0] }
 0x169   :  { %2650 = vmatpush.bf16.msra.mxu2 %v4841_v27  ;;  %v5061_v27 = vor.u32 %v5796_v25, %v5060_v24  ;;  %v5173_v24 = vor.u32 %v5824_v20, %v5172_v50 }
 0x16a   :  { %3084 = vmatpush.bf16.msrb.mxu1 %v5125_v55 }
 0x16b   :  { %2609 = vmatpush.bf16.msra.mxu0 %v4949_v43  ;;  %3070 = vmatpush.bf16.msra.mxu3 %v5061_v27  ;;  %v5116_v43 = vld [vmem:[%s8774_s5 + $0xe0] sm:$0xf] }
 0x16c   :  { %v5117_v46 = vor.u32 %v5810_v45, %v5116_v43  ;;  %v5068_v27 = vld [vmem:[%s8774_s5 + $0x80] sm:$0xf]  ;;  %v5809_v43 = vld [vmem:[%s8774_s5 + $0xe4] sm:$0xf] }
 0x16d   :  { %2651 = vmatpush.bf16.msra.mxu2 %v4825_v31  ;;  %v5036_v31 = vld [vmem:[%s8774_s5 + $0x40] sm:$0xf] }
 0x16e   :  { %2558 = vmatmul.bf16.vlgmr.msrb.gmra.mxu0 %v7932_v26  ;;  %v5037_v33 = vor.u32 %v5790_v32, %v5036_v31  ;;  %3085 = vmatpush.bf16.msrb.mxu1 %v5117_v46 }
 0x16f   :  { %2610 = vmatpush.bf16.msra.mxu0 %v4933_v47  ;;  %3071 = vmatpush.bf16.msra.mxu3 %v5053_v44  ;;  %v5108_v47 = vld [vmem:[%s8774_s5 + $0xd0] sm:$0xf]  ;;  %v5069_v44 = vor.u32 %v5798_v8, %v5068_v27  ;;  %v5086_v27 = vld [vmem:[%s8774_s5 + $0xa8] sm:$0xf0]  ;;  %v5825_v8 = vld [vmem:[%s8774_s5 + $0x164] sm:$0xf] }
 0x170   :  { %v5109_v49 = vor.u32 %v5808_v37, %v5108_v47  ;;  %v5818_v47 = vld [vmem:[%s8774_s5 + $0x124] sm:$0xf0]  ;;  %v5783_v37 = vld [vmem:[%s8774_s5 + $0x14] sm:$0xf] }
 0x171   :  { %2652 = vmatpush.bf16.msra.mxu2 %v4809_v39  ;;  %v5029_v39 = vor.u32 %v5788_v36, %v5028_v34  ;;  %v5126_v34 = vld [vmem:[%s8774_s5 + $0xf8] sm:$0xf0] }
 0x172   :  { %3086 = vmatpush.bf16.msrb.mxu1 %v5109_v49  ;;  %v5014_v49 = vld [vmem:[%s8774_s5 + $0x18] sm:$0xf0] }
 0x173   :  { %2611 = vmatpush.bf16.msra.mxu0 %v4917_v53  ;;  %v5100_v53 = vld [vmem:[%s8774_s5 + $0xc0] sm:$0xf] }
 0x174   :  { %v5101_v59 = vor.u32 %v5806_v56, %v5100_v53  ;;  %v5110_v53 = vld [vmem:[%s8774_s5 + $0xd8] sm:$0xf0] }
 0x175   :  { %2653 = vmatpush.bf16.msra.mxu2 %v4793_v60  ;;  %v5021_v60 = vor.u32 %v5786_v41, %v5020_v54  ;;  %v5785_v54 = vld [vmem:[%s8774_s5 + $0x24] sm:$0xf]  ;;  %v5022_v41 = vld [vmem:[%s8774_s5 + $0x28] sm:$0xf0] }
 0x176   :  { %3087 = vmatpush.bf16.msrb.mxu1 %v5101_v59  ;;  %v5025_v46 = vor.u32 %v5785_v54, %v5022_v41  ;;  %v5078_v54 = vld [vmem:[%s8774_s5 + $0x98] sm:$0xf0]  ;;  %v5823_v41 = vld [vmem:[%s8774_s5 + $0x154] sm:$0xf] }
 0x177   :  { %2612 = vmatpush.bf16.msra.mxu0 %v4901_v58  ;;  %v5062_v58 = vld [vmem:[%s8774_s5 + $0x78] sm:$0xf0] }
 0x178   :  { %v5065_v61 = vor.u32 %v5795_v57, %v5062_v58  ;;  %v5140_v57 = vld [vmem:[%s8774_s5 + $0x110] sm:$0xf]  ;;  %v5816_v58 = vld [vmem:[%s8774_s5 + $0x114] sm:$0xf0] }
 0x179   :  { %2654 = vmatpush.bf16.msra.mxu2 %v4777_v48  ;;  %v5013_v48 = vor.u32 %v5784_v35, %v5012_v23  ;;  %v5118_v23 = vld [vmem:[%s8774_s5 + $0xe8] sm:$0xf0]  ;;  %v5148_v35 = vld [vmem:[%s8774_s5 + $0x120] sm:$0xf]  ;;  %v5141_v59 = vor.u32 %v5816_v58, %v5140_v57 }
 0x17a   :  { %v5166_v57 = vld [vmem:[%s8774_s5 + $0x148] sm:$0xf0] }
 0x17b   :  { %2613 = vmatpush.bf16.msra.mxu0 %v4885_v0  ;;  %v5188_v0 = vld [vmem:[%s8774_s5 + $0x170] sm:$0xf] }
 0x17c   :  { %v8215_v38 = vpop.f32.mrf.mxu1 }
 0x17d   :  { %2655 = vmatpush.bf16.msra.mxu2 %v4761_v42  ;;  %v5005_v42 = vor.u32 %v5782_v52, %v5004_v51  ;;  %v5807_v51 = vld [vmem:[%s8774_s5 + $0xd4] sm:$0xf]  ;;  %v5149_v52 = vor.u32 %v5818_v47, %v5148_v35 }
 0x17e   :  { %2614 = vmatmul.bf16.vlgmr.msra.gmra.mxu0 %v7932_v26  ;;  %v5113_v56 = vor.u32 %v5807_v51, %v5110_v53  ;;  %v5070_v53 = vld [vmem:[%s8774_s5 + $0x88] sm:$0xf0] }
 0x17f   :  { %2662 = vmatpush.bf16.msrb.mxu0 %v5001_v1  ;;  %v5093_v1 = vor.u32 %v5804_v63, %v5092_v62  ;;  %v5006_v62 = vld [vmem:[%s8774_s5 + $0x8] sm:$0xf0]  ;;  %v5805_v63 = vld [vmem:[%s8774_s5 + $0xc4] sm:$0xf] }
 0x180   :  { %2656 = vmatmul.bf16.vlgmr.msra.gmra.mxu2 %v7843_v18  ;;  %v4966_v18 = vld [vmem:[%s8772_s3 + $0x3b8] sm:$0xf0] }
 0x181   :  { %v4969_v7 = vor.u32 %v5770_v6, %v4966_v18  ;;  %v5189_v6 = vor.u32 %v5828_v2, %v5188_v0  ;;  %3088 = vmatpush.bf16.msrb.mxu1 %v5093_v1  ;;  %v5102_v2 = vld [vmem:[%s8774_s5 + $0xc8] sm:$0xf0] }
 0x183   :  { %2663 = vmatpush.bf16.msrb.mxu0 %v4985_v4  ;;  %v5054_v4 = vld [vmem:[%s8774_s5 + $0x68] sm:$0xf0]  ;;  %3098 = vmatpush.bf16.msrb.mxu2 %v5189_v6 }
 0x184   :  { %v5057_v18 = vor.u32 %v5793_v3, %v5054_v4  ;;  %v2477_v0 = vpop.f32.mrf.mxu1  ;;  %v8278_v3 = vld [vmem:[%s8775_s4] sm:$0xf]  ;;  %v5105_v4 = vor.u32 %v5805_v63, %v5102_v2 }
 0x185   :  { %v1804_v50 = vperm.slane %v8278_v3, 0  ;;  %v5212_v2 = vld [vmem:[%s8774_s5 + $0x1a0] sm:$0xf] }
 0x187   :  { %2664 = vmatpush.bf16.msrb.mxu0 %v4969_v7  ;;  %v5084_v7 = vld [vmem:[%s8774_s5 + $0xa0] sm:$0xf]  ;;  %3099 = vmatpush.bf16.msrb.mxu2 %v5181_v14  ;;  %v5253_v14 = vor.u32 %v5844_v11, %v5252_v5  ;;  %v5817_v5 = vld [vmem:[%s8774_s5 + $0x124] sm:$0xf] }
 0x18b   :  { %2665 = vmatpush.bf16.msrb.mxu0 %v4953_v10  ;;  %v5085_v10 = vor.u32 %v5802_v9, %v5084_v7  ;;  %3100 = vmatpush.bf16.msrb.mxu2 %v5173_v24  ;;  %v5132_v7 = vld [vmem:[%s8774_s5 + $0x100] sm:$0xf]  ;;  %v5814_v9 = vld [vmem:[%s8774_s5 + $0x104] sm:$0xf0] }
 0x18d   :  { %3089 = vmatpush.bf16.msrb.mxu1 %v5085_v10  ;;  %v5133_v10 = vor.u32 %v5814_v9, %v5132_v7  ;;  %v5834_v7 = vld [vmem:[%s8774_s5 + $0x1a4] sm:$0xf0]  ;;  %v1805_v9 = vperm.slane %v8278_v3, 1 }
 0x18f   :  { %2666 = vmatpush.bf16.msrb.mxu0 %v4937_v13  ;;  %v5046_v13 = vld [vmem:[%s8774_s5 + $0x58] sm:$0xf0] }
 0x190   :  { %v5049_v15 = vor.u32 %v5791_v12, %v5046_v13  ;;  %v5803_v12 = vld [vmem:[%s8774_s5 + $0xb4] sm:$0xf]  ;;  %v5094_v13 = vld [vmem:[%s8774_s5 + $0xb8] sm:$0xf0] }
 0x193   :  { %2667 = vmatpush.bf16.msrb.mxu0 %v4921_v16  ;;  %v5076_v16 = vld [vmem:[%s8774_s5 + $0x90] sm:$0xf] }
 0x197   :  { %2668 = vmatpush.bf16.msrb.mxu0 %v4905_v19  ;;  %v5077_v19 = vor.u32 %v5800_v17, %v5076_v16  ;;  %v5827_v16 = vld [vmem:[%s8774_s5 + $0x174] sm:$0xf]  ;;  %v5190_v17 = vld [vmem:[%s8774_s5 + $0x178] sm:$0xf0] }
 0x199   :  { %3090 = vmatpush.bf16.msrb.mxu1 %v5077_v19  ;;  %v5193_v19 = vor.u32 %v5827_v16, %v5190_v17 }
 0x19b   :  { %2669 = vmatpush.bf16.msrb.mxu0 %v4889_v22  ;;  %v5038_v22 = vld [vmem:[%s8774_s5 + $0x48] sm:$0xf0] }
 0x19c   :  { %v5041_v25 = vor.u32 %v5789_v21, %v5038_v22  ;;  %v5244_v21 = vld [vmem:[%s8774_s5 + $0x1e0] sm:$0xf]  ;;  %v5842_v22 = vld [vmem:[%s8774_s5 + $0x1e4] sm:$0xf0] }
 0x19d   :  { %3091 = vmatpush.bf16.msrb.mxu1 %v5069_v44  ;;  %v5245_v24 = vor.u32 %v5842_v22, %v5244_v21  ;;  %v5182_v44 = vld [vmem:[%s8774_s5 + $0x168] sm:$0xf0] }
 0x19e   :  { %2670 = vmatmul.bf16.vlgmr.msrb.gmra.mxu0 %v7932_v26  ;;  %v5044_v26 = vld [vmem:[%s8774_s5 + $0x50] sm:$0xf] }
 0x19f   :  { %v5045_v30 = vor.u32 %v5792_v29, %v5044_v26  ;;  %v5822_v26 = vld [vmem:[%s8774_s5 + $0x144] sm:$0xf0]  ;;  %v5787_v29 = vld [vmem:[%s8774_s5 + $0x34] sm:$0xf]  ;;  %3112 = vmatpush.bf16.msra.mxu0 %v5253_v14  ;;  %v5204_v14 = vld [vmem:[%s8774_s5 + $0x190] sm:$0xf] }
 0x1a0   :  { %v5165_v31 = vor.u32 %v5822_v26, %v5164_v28 }
 0x1a1   :  { %3072 = vmatpush.bf16.msra.mxu3 %v5045_v30  ;;  %v5030_v30 = vld [vmem:[%s8774_s5 + $0x38] sm:$0xf0] }
 0x1a2   :  { %v5033_v32 = vor.u32 %v5787_v29, %v5030_v30  ;;  %3101 = vmatpush.bf16.msrb.mxu2 %v5165_v31  ;;  %v5185_v30 = vor.u32 %v5825_v8, %v5182_v44  ;;  %v5813_v44 = vld [vmem:[%s8774_s5 + $0x104] sm:$0xf] }
 0x1a3   :  { %3113 = vmatpush.bf16.msra.mxu0 %v5245_v24 }
 0x1a5   :  { %3073 = vmatpush.bf16.msra.mxu3 %v5037_v33  ;;  %v5811_v33 = vld [vmem:[%s8774_s5 + $0xf4] sm:$0xf] }
 0x1a6   :  { %v5129_v36 = vor.u32 %v5811_v33, %v5126_v34  ;;  %v5236_v33 = vld [vmem:[%s8774_s5 + $0x1d0] sm:$0xf]  ;;  %v5840_v34 = vld [vmem:[%s8774_s5 + $0x1d4] sm:$0xf0] }
 0x1a8   :  { %3140 = vmatpush.bf16.msra.mxu1 %v5129_v36 }
 0x1a9   :  { %3074 = vmatpush.bf16.msra.mxu3 %v5029_v39  ;;  %v5156_v39 = vld [vmem:[%s8774_s5 + $0x130] sm:$0xf] }
 0x1aa   :  { %v5157_v55 = vor.u32 %v5820_v40, %v5156_v39  ;;  %v5237_v40 = vor.u32 %v5840_v34, %v5236_v33 }
 0x1ac   :  { %3102 = vmatpush.bf16.msrb.mxu2 %v5157_v55  ;;  %v5799_v55 = vld [vmem:[%s8774_s5 + $0x94] sm:$0xf]  ;;  %3114 = vmatpush.bf16.msra.mxu0 %v5237_v40 }
 0x1ad   :  { %3075 = vmatpush.bf16.msra.mxu3 %v5021_v60  ;;  %v8232_v60 = vpop.f32.mrf.mxu3 }
 0x1ae   :  { %v2462_v26 = vadd.f32 %v8232_v60, %v1804_v50  ;;  %v5081_v60 = vor.u32 %v5799_v55, %v5078_v54 }
 0x1b0   :  { %3103 = vmatpush.bf16.msrb.mxu2 %v5149_v52  ;;  %v2476_v36 = vadd.f32 %v8215_v38, %v2462_v26  ;;  %v5174_v38 = vld [vmem:[%s8774_s5 + $0x158] sm:$0xf0] }
 0x1b1   :  { %3076 = vmatpush.bf16.msra.mxu3 %v5013_v48  ;;  %v5121_v48 = vor.u32 %v5809_v43, %v5118_v23  ;;  %v5177_v35 = vor.u32 %v5823_v41, %v5174_v38  ;;  %v5246_v38 = vld [vmem:[%s8774_s5 + $0x1e8] sm:$0xf0] }
 0x1b3   :  { %3141 = vmatpush.bf16.msra.mxu1 %v5121_v48  ;;  %v5228_v48 = vld [vmem:[%s8774_s5 + $0x1c0] sm:$0xf] }
 0x1b4   :  { %3104 = vmatpush.bf16.msrb.mxu2 %v5141_v59 }
 0x1b5   :  { %3077 = vmatpush.bf16.msra.mxu3 %v5005_v42  ;;  %v5017_v42 = vor.u32 %v5783_v37, %v5014_v49  ;;  %v2463_v6 = vpop.f32.mrf.mxu3  ;;  %v5838_v37 = vld [vmem:[%s8774_s5 + $0x1c4] sm:$0xf0] }
 0x1b6   :  { %v2464_v29 = vadd.f32 %v2463_v6, %v1804_v50  ;;  %v5229_v52 = vor.u32 %v5838_v37, %v5228_v48 }
 0x1b7   :  { %3142 = vmatpush.bf16.msra.mxu1 %v5113_v56 }
 0x1b8   :  { %3105 = vmatpush.bf16.msrb.mxu2 %v5133_v10  ;;  %v2478_v39 = vadd.f32 %v2477_v0, %v2464_v29  ;;  %3115 = vmatpush.bf16.msra.mxu0 %v5229_v52  ;;  %v5819_v0 = vld [vmem:[%s8774_s5 + $0x134] sm:$0xf]  ;;  %v5150_v10 = vld [vmem:[%s8774_s5 + $0x128] sm:$0xf0] }
 0x1b9   :  { %3126 = vmatpush.bf16.msrb.mxu3 %v5065_v61  ;;  %v5781_v61 = vld [vmem:[%s8774_s5 + $0x4] sm:$0xf]  ;;  %v5153_v16 = vor.u32 %v5817_v5, %v5150_v10  ;;  %v5831_v10 = vld [vmem:[%s8774_s5 + $0x194] sm:$0xf] }
 0x1ba   :  { %v5009_v1 = vor.u32 %v5781_v61, %v5006_v62  ;;  %v5220_v61 = vld [vmem:[%s8774_s5 + $0x1b0] sm:$0xf]  ;;  %v5836_v62 = vld [vmem:[%s8774_s5 + $0x1b4] sm:$0xf0] }
 0x1bb   :  { %v8234_v45 = vpop.f32.mrf.mxu2  ;;  %3143 = vmatpush.bf16.msra.mxu1 %v5105_v4  ;;  %v5221_v63 = vor.u32 %v5836_v62, %v5220_v61 }
 0x1bc   :  { %3154 = vmatpush.bf16.msra.mxu2 %v5193_v19  ;;  %v5815_v19 = vld [vmem:[%s8774_s5 + $0x114] sm:$0xf] }
 0x1bd   :  { %3127 = vmatpush.bf16.msrb.mxu3 %v5057_v18  ;;  %v2517_v31 = vpop.f32.mrf.mxu3  ;;  %3116 = vmatpush.bf16.msra.mxu0 %v5221_v63 }
 0x1be   :  { %v2518_v17 = vadd.f32 %v2517_v31, %v1805_v9  ;;  %v5843_v31 = vld [vmem:[%s8774_s5 + $0x1f4] sm:$0xf] }
 0x1c0   :  { %3155 = vmatpush.bf16.msra.mxu2 %v5185_v30  ;;  %v5134_v30 = vld [vmem:[%s8774_s5 + $0x108] sm:$0xf0] }
 0x1c1   :  { %3128 = vmatpush.bf16.msrb.mxu3 %v5049_v15  ;;  %v5097_v15 = vor.u32 %v5803_v12, %v5094_v13  ;;  %v5213_v13 = vor.u32 %v5834_v7, %v5212_v2  ;;  %v5137_v54 = vor.u32 %v5813_v44, %v5134_v30  ;;  %v5835_v2 = vld [vmem:[%s8774_s5 + $0x1b4] sm:$0xf]  ;;  %v5833_v7 = vld [vmem:[%s8774_s5 + $0x1a4] sm:$0xf] }
 0x1c3   :  { %v2491_v18 = vpop.f32.mrf.mxu2  ;;  %3144 = vmatpush.bf16.msra.mxu1 %v5097_v15  ;;  %v5832_v15 = vld [vmem:[%s8774_s5 + $0x194] sm:$0xf0]  ;;  %3117 = vmatpush.bf16.msra.mxu0 %v5213_v13 }
 0x1c4   :  { %v2492_v23 = vadd.f32 %v2491_v18, %v2478_v39  ;;  %3156 = vmatpush.bf16.msra.mxu2 %v5177_v35  ;;  %v5205_v21 = vor.u32 %v5832_v15, %v5204_v14  ;;  %v5839_v35 = vld [vmem:[%s8774_s5 + $0x1d4] sm:$0xf]  ;;  %v5829_v14 = vld [vmem:[%s8774_s5 + $0x184] sm:$0xf]  ;;  %v5198_v15 = vld [vmem:[%s8774_s5 + $0x188] sm:$0xf0] }
 0x1c5   :  { %3129 = vmatpush.bf16.msrb.mxu3 %v5041_v25  ;;  %v5801_v25 = vld [vmem:[%s8774_s5 + $0xa4] sm:$0xf]  ;;  %v2519_v4 = vpop.f32.mrf.mxu3 }
 0x1c6   :  { %v5089_v28 = vor.u32 %v5801_v25, %v5086_v27  ;;  %v2520_v50 = vadd.f32 %v2519_v4, %v1805_v9  ;;  %v5196_v25 = vld [vmem:[%s8774_s5 + $0x180] sm:$0xf]  ;;  %v5830_v27 = vld [vmem:[%s8774_s5 + $0x184] sm:$0xf0]  ;;  %v5222_v4 = vld [vmem:[%s8774_s5 + $0x1b8] sm:$0xf0] }
 0x1c7   :  { %3118 = vmatpush.bf16.msra.mxu0 %v5205_v21  ;;  %v5214_v9 = vld [vmem:[%s8774_s5 + $0x1a8] sm:$0xf0] }
 0x1c8   :  { %3145 = vmatpush.bf16.msra.mxu1 %v5089_v28  ;;  %v5217_v5 = vor.u32 %v5833_v7, %v5214_v9  ;;  %v5850_v7 = vld [vmem:[%s8776_s7 + $0x24] sm:$0xf0]  ;;  %v5372_v9 = vld [vmem:[%s8776_s7 + $0xe0] sm:$0xf] }
 0x1c9   :  { %3130 = vmatpush.bf16.msrb.mxu3 %v5033_v32  ;;  %v8324_v32 = vpop.f32.mrf.mxu1 }
 0x1ca   :  { %v2532_v22 = vadd.f32 %v8324_v32, %v2518_v17  ;;  %v5254_v32 = vld [vmem:[%s8774_s5 + $0x1f8] sm:$0xf0]  ;;  %v5201_v17 = vor.u32 %v5829_v14, %v5198_v15  ;;  %v5873_v15 = vld [vmem:[%s8776_s7 + $0xe4] sm:$0xf] }
 0x1cb   :  { %v2545_v43 = vpop.f32.mrf.mxu2  ;;  %v5257_v41 = vor.u32 %v5843_v31, %v5254_v32 }
 0x1cc   :  { %3146 = vmatpush.bf16.msra.mxu1 %v5081_v60  ;;  %v2546_v26 = vadd.f32 %v2545_v43, %v2532_v22  ;;  %v5841_v60 = vld [vmem:[%s8774_s5 + $0x1e4] sm:$0xf] }
 0x1cd   :  { %3131 = vmatpush.bf16.msrb.mxu3 %v5025_v46  ;;  %v2490_v46 = vadd.f32 %v8234_v45, %v2476_v36  ;;  %v5797_v45 = vld [vmem:[%s8774_s5 + $0x84] sm:$0xf]  ;;  %v2573_v8 = vpop.f32.mrf.mxu3  ;;  %v5197_v36 = vor.u32 %v5830_v27, %v5196_v25 }
 0x1ce   :  { %v5073_v56 = vor.u32 %v5797_v45, %v5070_v53 }
 0x1cf   :  { %3119 = vmatpush.bf16.msra.mxu0 %v5197_v36 }
 0x1d0   :  { %3147 = vmatpush.bf16.msra.mxu1 %v5073_v56 }
 0x1d1   :  { %3132 = vmatpush.bf16.msrb.mxu3 %v5017_v42  ;;  %v5821_v42 = vld [vmem:[%s8774_s5 + $0x144] sm:$0xf]  ;;  %v2533_v6 = vpop.f32.mrf.mxu1 }
 0x1d2   :  { %v5169_v59 = vor.u32 %v5821_v42, %v5166_v57  ;;  %v2534_v24 = vadd.f32 %v2533_v6, %v2520_v50  ;;  %v5837_v57 = vld [vmem:[%s8774_s5 + $0x1c4] sm:$0xf]  ;;  %v5225_v6 = vor.u32 %v5835_v2, %v5222_v4  ;;  %v5875_v2 = vld [vmem:[%s8776_s7 + $0xf4] sm:$0xf]  ;;  %v5382_v4 = vld [vmem:[%s8776_s7 + $0xf8] sm:$0xf0] }
 0x1d3   :  { %v2547_v11 = vpop.f32.mrf.mxu2  ;;  %3168 = vmatpush.bf16.msrb.mxu0 %v5257_v41  ;;  %v5857_v41 = vld [vmem:[%s8776_s7 + $0x64] sm:$0xf] }
 0x1d4   :  { %3157 = vmatpush.bf16.msra.mxu2 %v5169_v59  ;;  %v2548_v29 = vadd.f32 %v2547_v11, %v2534_v24  ;;  %v5206_v11 = vld [vmem:[%s8774_s5 + $0x198] sm:$0xf0] }
 0x1d5   :  { %3133 = vmatpush.bf16.msrb.mxu3 %v5009_v1  ;;  %v5158_v1 = vld [vmem:[%s8774_s5 + $0x138] sm:$0xf0]  ;;  %v2575_v48 = vpop.f32.mrf.mxu3 }
 0x1d6   :  { %v5161_v18 = vor.u32 %v5819_v0, %v5158_v1 }
 0x1d8   :  { %3158 = vmatpush.bf16.msra.mxu2 %v5161_v18 }
 0x1d9   :  { %v2587_v33 = vpop.f32.mrf.mxu1 }
 0x1db   :  { %v2503_v20 = vpop.f32.mrf.mxu0 }
 0x1dc   :  { %v2504_v49 = vadd.f32 %v2503_v20, %v2490_v46  ;;  %v5142_v20 = vld [vmem:[%s8774_s5 + $0x118] sm:$0xf0]  ;;  %3159 = vmatpush.bf16.msra.mxu2 %v5153_v16  ;;  %v5249_v46 = vor.u32 %v5841_v60, %v5246_v38  ;;  %v5310_v60 = vld [vmem:[%s8776_s7 + $0x68] sm:$0xf0] }
 0x1dd   :  { %v5145_v28 = vor.u32 %v5815_v19, %v5142_v20  ;;  %v2629_v13 = vpop.f32.mrf.mxu3  ;;  %v1807_v19 = vperm.slane %v8278_v3, 3  ;;  %v5313_v38 = vor.u32 %v5857_v41, %v5310_v60  ;;  %v5348_v41 = vld [vmem:[%s8776_s7 + $0xb0] sm:$0xf]  ;;  %v5867_v60 = vld [vmem:[%s8776_s7 + $0xb4] sm:$0xf] }
 0x1de   :  { %3169 = vmatpush.bf16.msrb.mxu0 %v5249_v46  ;;  %v5300_v46 = vld [vmem:[%s8776_s7 + $0x50] sm:$0xf] }
 0x1df   :  { %v2630_v24 = vadd.f32 %v2629_v13, %v1807_v19 }
 0x1e0   :  { %3160 = vmatpush.bf16.msra.mxu2 %v5145_v28 }
 0x1e3   :  { %v2505_v47 = vpop.f32.mrf.mxu0  ;;  %v2601_v55 = vpop.f32.mrf.mxu2 }
 0x1e4   :  { %v2506_v51 = vadd.f32 %v2505_v47, %v2492_v23  ;;  %3161 = vmatpush.bf16.msra.mxu2 %v5137_v54  ;;  %v1806_v23 = vperm.slane %v8278_v3, 2  ;;  %v5238_v47 = vld [vmem:[%s8774_s5 + $0x1d8] sm:$0xf0]  ;;  %v5316_v3 = vld [vmem:[%s8776_s7 + $0x70] sm:$0xf] }
 0x1e5   :  { %v2631_v20 = vpop.f32.mrf.mxu3  ;;  %v5858_v54 = vld [vmem:[%s8776_s7 + $0x64] sm:$0xf0] }
 0x1e6   :  { %v2676_v58 = vpack.c.bf16 %v2506_v51, %v2504_v49  ;;  %v2589_v49 = vpop.f32.mrf.mxu1  ;;  %v5241_v51 = vor.u32 %v5839_v35, %v5238_v47  ;;  %v2574_v52 = vadd.f32 %v2573_v8, %v1806_v23  ;;  %v2576_v45 = vadd.f32 %v2575_v48, %v1806_v23  ;;  %v5856_v23 = vld [vmem:[%s8776_s7 + $0x54] sm:$0xf0]  ;;  %v5855_v35 = vld [vmem:[%s8776_s7 + $0x54] sm:$0xf]  ;;  %v5302_v48 = vld [vmem:[%s8776_s7 + $0x58] sm:$0xf0] }
 0x1e7   :  { %v2632_v25 = vadd.f32 %v2631_v20, %v1807_v19  ;;  %v5301_v47 = vor.u32 %v5856_v23, %v5300_v46  ;;  %v5848_v19 = vld [vmem:[%s8776_s7 + $0x14] sm:$0xf0]  ;;  %v5364_v20 = vld [vmem:[%s8776_s7 + $0xd0] sm:$0xf]  ;;  %v5350_v46 = vld [vmem:[%s8776_s7 + $0xb8] sm:$0xf0] }
 0x1e8   :  { %3078 = vmatmul.bf16.vlgmr.msra.gmra.mxu3 %v2676_v58  ;;  %v2588_v42 = vadd.f32 %v2587_v33, %v2574_v52  ;;  %v2590_v56 = vadd.f32 %v2589_v49, %v2576_v45  ;;  %3170 = vmatpush.bf16.msrb.mxu0 %v5241_v51  ;;  %v5860_v33 = vld [vmem:[%s8776_s7 + $0x74] sm:$0xf0]  ;;  %v5292_v49 = vld [vmem:[%s8776_s7 + $0x40] sm:$0xf]  ;;  %v5854_v51 = vld [vmem:[%s8776_s7 + $0x44] sm:$0xf0]  ;;  %v5353_v23 = vor.u32 %v5867_v60, %v5350_v46 }
 0x1e9   :  { %v5317_v36 = vor.u32 %v5860_v33, %v5316_v3  ;;  %v5853_v52 = vld [vmem:[%s8776_s7 + $0x44] sm:$0xf]  ;;  %v5293_v45 = vor.u32 %v5854_v51, %v5292_v49  ;;  %v5870_v3 = vld [vmem:[%s8776_s7 + $0xc4] sm:$0xf0]  ;;  %v5342_v49 = vld [vmem:[%s8776_s7 + $0xa8] sm:$0xf0] }
 0x1ea   :  { %v2602_v61 = vadd.f32 %v2601_v55, %v2588_v42  ;;  %v5308_v55 = vld [vmem:[%s8776_s7 + $0x60] sm:$0xf]  ;;  %v5845_v33 = vld [vmem:[%s8776_s7 + $0x4] sm:$0xf]  ;;  %v5332_v51 = vld [vmem:[%s8776_s7 + $0x90] sm:$0xf] }
 0x1eb   :  { %v2559_v12 = vpop.f32.mrf.mxu0  ;;  %v2603_v53 = vpop.f32.mrf.mxu2  ;;  %3382 = vmatpush.bf16.msra.mxu3 %v5317_v36  ;;  %v5890_v60 = vld [vmem:[%s8778_s9 + $0x68] sm:$0xff]  ;;  %v5889_v46 = vld [vmem:[%s8778_s9 + $0x60] sm:$0xff] }
 0x1ec   :  { %v2560_v39 = vadd.f32 %v2559_v12, %v2546_v26  ;;  %v2604_v62 = vadd.f32 %v2603_v53, %v2590_v56  ;;  %v5209_v12 = vor.u32 %v5831_v10, %v5206_v11  ;;  %v5294_v53 = vld [vmem:[%s8776_s7 + $0x48] sm:$0xf0]  ;;  %v5284_v56 = vld [vmem:[%s8776_s7 + $0x30] sm:$0xf]  ;;  %v5874_v10 = vld [vmem:[%s8776_s7 + $0xe4] sm:$0xf0] }
 0x1ed   :  { %v5297_v42 = vor.u32 %v5853_v52, %v5294_v53  ;;  %v5849_v11 = vld [vmem:[%s8776_s7 + $0x24] sm:$0xf]  ;;  %v5373_v13 = vor.u32 %v5874_v10, %v5372_v9  ;;  %v5864_v52 = vld [vmem:[%s8776_s7 + $0x94] sm:$0xf0] }
 0x1ee   :  { %v2643_v16 = vpop.f32.mrf.mxu1  ;;  %v5892_v9 = vld [vmem:[%s8778_s9 + $0x78] sm:$0xff] }
 0x1ef   :  { %v2644_v8 = vadd.f32 %v2643_v16, %v2630_v24  ;;  %v5374_v16 = vld [vmem:[%s8776_s7 + $0xe8] sm:$0xf0] }
 0x1f3   :  { %v2561_v34 = vpop.f32.mrf.mxu0 }
 0x1f4   :  { %v2562_v40 = vadd.f32 %v2561_v34, %v2548_v29  ;;  %v5859_v34 = vld [vmem:[%s8776_s7 + $0x74] sm:$0xf] }
 0x1f6   :  { %v2677_v43 = vpack.c.bf16 %v2562_v40, %v2560_v39  ;;  %v2645_v22 = vpop.f32.mrf.mxu1  ;;  %v5318_v39 = vld [vmem:[%s8776_s7 + $0x78] sm:$0xf0] }
 0x1f7   :  { %v2646_v28 = vadd.f32 %v2645_v22, %v2632_v25  ;;  %v5321_v40 = vor.u32 %v5859_v34, %v5318_v39  ;;  %v5847_v25 = vld [vmem:[%s8776_s7 + $0x14] sm:$0xf]  ;;  %v5262_v34 = vld [vmem:[%s8776_s7 + $0x8] sm:$0xf0] }
 0x1f8   :  { %3092 = vmatmul.bf16.vlgmr.msrb.gmra.mxu1 %v2677_v43  ;;  %3134 = vmatmul.bf16.vlgmr.msrb.gmra.mxu3 %v2676_v58  ;;  %v5230_v58 = vld [vmem:[%s8774_s5 + $0x1c8] sm:$0xf0]  ;;  %v5265_v39 = vor.u32 %v5845_v33, %v5262_v34 }
 0x1f9   :  { %v5233_v59 = vor.u32 %v5837_v57, %v5230_v58  ;;  %v5852_v57 = vld [vmem:[%s8776_s7 + $0x34] sm:$0xf0]  ;;  %v5380_v58 = vld [vmem:[%s8776_s7 + $0xf0] sm:$0xf] }
 0x1fb   :  { %v2615_v37 = vpop.f32.mrf.mxu0  ;;  %3171 = vmatpush.bf16.msrb.mxu0 %v5233_v59  ;;  %v5285_v59 = vor.u32 %v5852_v57, %v5284_v56  ;;  %v5334_v56 = vld [vmem:[%s8776_s7 + $0x98] sm:$0xf0] }
 0x1fc   :  { %v2616_v0 = vadd.f32 %v2615_v37, %v2602_v61  ;;  %v5305_v37 = vor.u32 %v5855_v35, %v5302_v48  ;;  %v5876_v61 = vld [vmem:[%s8776_s7 + $0xf4] sm:$0xf0]  ;;  %v5340_v35 = vld [vmem:[%s8776_s7 + $0xa0] sm:$0xf]  ;;  %v5865_v48 = vld [vmem:[%s8776_s7 + $0xa4] sm:$0xf] }
 0x1fd   :  { %v5345_v53 = vor.u32 %v5865_v48, %v5342_v49  ;;  %v5887_v48 = vld [vmem:[%s8778_s9 + $0x50] sm:$0xff]  ;;  %v5886_v49 = vld [vmem:[%s8778_s9 + $0x48] sm:$0xff] }
 0x1ff   :  { %3172 = vmatpush.bf16.msrb.mxu0 %v5225_v6  ;;  %v5385_v6 = vor.u32 %v5875_v2, %v5382_v4  ;;  %v5326_v2 = vld [vmem:[%s8776_s7 + $0x88] sm:$0xf0] }
 0x203   :  { %v2617_v63 = vpop.f32.mrf.mxu0  ;;  %3173 = vmatpush.bf16.msrb.mxu0 %v5217_v5  ;;  %v2657_v50 = vpop.f32.mrf.mxu2 }
 0x204   :  { %v2618_v1 = vadd.f32 %v2617_v63, %v2604_v62  ;;  %v2658_v44 = vadd.f32 %v2657_v50, %v2644_v8  ;;  %v5851_v62 = vld [vmem:[%s8776_s7 + $0x34] sm:$0xf]  ;;  %v5286_v63 = vld [vmem:[%s8776_s7 + $0x38] sm:$0xf0]  ;;  %v5377_v50 = vor.u32 %v5873_v15, %v5374_v16 }
 0x205   :  { %v5871_v8 = vld [vmem:[%s8776_s7 + $0xd4] sm:$0xf] }
 0x206   :  { %v2678_v18 = vpack.c.bf16 %v2618_v1, %v2616_v0  ;;  %v5381_v0 = vor.u32 %v5876_v61, %v5380_v58  ;;  %v5289_v1 = vor.u32 %v5851_v62, %v5286_v63  ;;  %v5333_v58 = vor.u32 %v5864_v52, %v5332_v51  ;;  %v5324_v62 = vld [vmem:[%s8776_s7 + $0x80] sm:$0xf]  ;;  %v5862_v63 = vld [vmem:[%s8776_s7 + $0x84] sm:$0xf0] }
 0x207   :  { %3174 = vmatpush.bf16.msrb.mxu0 %v5209_v12  ;;  %v5278_v12 = vld [vmem:[%s8776_s7 + $0x28] sm:$0xf0]  ;;  %v5877_v51 = vld [vmem:[%s8778_s9] sm:$0xff] }
 0x208   :  { %3106 = vmatmul.bf16.vlgmr.msrb.gmra.mxu2 %v2678_v18  ;;  %3148 = vmatmul.bf16.vlgmr.msra.gmra.mxu1 %v2677_v43  ;;  %v5309_v43 = vor.u32 %v5858_v54, %v5308_v55  ;;  %v5281_v14 = vor.u32 %v5849_v11, %v5278_v12  ;;  %v5358_v55 = vld [vmem:[%s8776_s7 + $0xc8] sm:$0xf0]  ;;  %v5883_v11 = vld [vmem:[%s8778_s9 + $0x30] sm:$0xff]  ;;  %v5885_v52 = vld [vmem:[%s8778_s9 + $0x40] sm:$0xff] }
 0x209   :  { %3410 = vmatpush.bf16.msrb.mxu2 %v5321_v40  ;;  %3396 = vmatpush.bf16.msrb.mxu1 %v5381_v0  ;;  %v5869_v40 = vld [vmem:[%s8776_s7 + $0xc4] sm:$0xf]  ;;  %v5891_v12 = vld [vmem:[%s8778_s9 + $0x70] sm:$0xff] }
 0x20a   :  { %3383 = vmatpush.bf16.msra.mxu3 %v5309_v43  ;;  %v5361_v54 = vor.u32 %v5869_v40, %v5358_v55  ;;  %v5868_v43 = vld [vmem:[%s8776_s7 + $0xb4] sm:$0xf0]  ;;  %v5861_v0 = vld [vmem:[%s8776_s7 + $0x84] sm:$0xf] }
 0x20b   :  { %3175 = vmatpush.bf16.msrb.mxu0 %v5201_v17  ;;  %v2659_v27 = vpop.f32.mrf.mxu2  ;;  %v5268_v17 = vld [vmem:[%s8776_s7 + $0x10] sm:$0xf]  ;;  %v5329_v4 = vor.u32 %v5861_v0, %v5326_v2  ;;  %v3607_v0 = vld [vmem:[%s8779_s11 + $0x38] sm:$0xff]  ;;  %v3216_v2 = vld [vmem:[%s8780_s8] sm:$0x3] }
 0x20c   :  { %v2660_v26 = vadd.f32 %v2659_v27, %v2646_v28  ;;  %v5269_v22 = vor.u32 %v5848_v19, %v5268_v17  ;;  %v5270_v27 = vld [vmem:[%s8776_s7 + $0x18] sm:$0xf0] }
 0x20d   :  { %3411 = vmatpush.bf16.msrb.mxu2 %v5313_v38  ;;  %3397 = vmatpush.bf16.msrb.mxu1 %v5373_v13  ;;  %v5273_v28 = vor.u32 %v5847_v25, %v5270_v27  ;;  %v5349_v38 = vor.u32 %v5868_v43, %v5348_v41  ;;  %v5882_v43 = vld [vmem:[%s8778_s9 + $0x28] sm:$0xff] }
 0x20e   :  { %3384 = vmatpush.bf16.msra.mxu3 %v5301_v47  ;;  %v5866_v47 = vld [vmem:[%s8776_s7 + $0xa4] sm:$0xf0] }
 0x211   :  { %3412 = vmatpush.bf16.msrb.mxu2 %v5305_v37  ;;  %v5341_v37 = vor.u32 %v5866_v47, %v5340_v35  ;;  %v5888_v35 = vld [vmem:[%s8778_s9 + $0x58] sm:$0xff]  ;;  %v5879_v47 = vld [vmem:[%s8778_s9 + $0x10] sm:$0xff] }
 0x212   :  { %3385 = vmatpush.bf16.msra.mxu3 %v5293_v45 }
 0x215   :  { %3413 = vmatpush.bf16.msrb.mxu2 %v5297_v42  ;;  %v5863_v42 = vld [vmem:[%s8776_s7 + $0x94] sm:$0xf] }
 0x216   :  { %3386 = vmatpush.bf16.msra.mxu3 %v5285_v59  ;;  %v5337_v59 = vor.u32 %v5863_v42, %v5334_v56  ;;  %v3613_v42 = vld [vmem:[%s8779_s11 + $0x68] sm:$0xff]  ;;  %v3612_v56 = vld [vmem:[%s8779_s11 + $0x60] sm:$0xff] }
 0x218   :  { %3162 = vmatmul.bf16.vlgmr.msra.gmra.mxu2 %v2678_v18  ;;  %v5276_v18 = vld [vmem:[%s8776_s7 + $0x20] sm:$0xf] }
 0x219   :  { %3414 = vmatpush.bf16.msrb.mxu2 %v5289_v1  ;;  %v5277_v5 = vor.u32 %v5850_v7, %v5276_v18  ;;  %v5325_v1 = vor.u32 %v5862_v63, %v5324_v62  ;;  %v5884_v7 = vld [vmem:[%s8778_s9 + $0x38] sm:$0xff] }
 0x21b   :  { %v2671_v21 = vpop.f32.mrf.mxu0  ;;  %3387 = vmatpush.bf16.msra.mxu3 %v5277_v5 }
 0x21c   :  { %v2672_v30 = vadd.f32 %v2671_v21, %v2658_v44  ;;  %v5872_v21 = vld [vmem:[%s8776_s7 + $0xd4] sm:$0xf0]  ;;  %v5366_v44 = vld [vmem:[%s8776_s7 + $0xd8] sm:$0xf0] }
 0x21d   :  { %3415 = vmatpush.bf16.msrb.mxu2 %v5281_v14  ;;  %v5365_v24 = vor.u32 %v5872_v21, %v5364_v20 }
 0x21f   :  { %3388 = vmatpush.bf16.msra.mxu3 %v5269_v22  ;;  %3398 = vmatpush.bf16.msrb.mxu1 %v5365_v24 }
 0x221   :  { %3416 = vmatpush.bf16.msrb.mxu2 %v5273_v28 }
 0x223   :  { %v2673_v29 = vpop.f32.mrf.mxu0 }
 0x224   :  { %v2674_v31 = vadd.f32 %v2673_v29, %v2660_v26  ;;  %v5369_v26 = vor.u32 %v5871_v8, %v5366_v44  ;;  %v5260_v29 = vld [vmem:[%s8776_s7] sm:$0xf] }
 0x225   :  { %3417 = vmatpush.bf16.msrb.mxu2 %v5265_v39 }
 0x226   :  { %v2679_v32 = vpack.c.bf16 %v2674_v31, %v2672_v30  ;;  %v5846_v30 = vld [vmem:[%s8776_s7 + $0x4] sm:$0xf0]  ;;  %v5356_v31 = vld [vmem:[%s8776_s7 + $0xc0] sm:$0xf] }
 0x227   :  { %v5357_v36 = vor.u32 %v5870_v3, %v5356_v31 }
 0x228   :  { %3120 = vmatmul.bf16.vlgmr.msra.gmra.mxu0 %v2679_v32 }
 0x229   :  { %3424 = vmatpush.bf16.msra.mxu0 %v5385_v6  ;;  %3399 = vmatpush.bf16.msrb.mxu1 %v5357_v36  ;;  %v2744_v6 = vld [vmem:[%s8777_s6] sm:$0x3] }
 0x22a   :  { %v2746_v10 = vperm.slane %v2744_v6, 0  ;;  %v2747_v44 = vperm.slane %v2744_v6, 1 }
 0x22d   :  { %3425 = vmatpush.bf16.msra.mxu0 %v5377_v50  ;;  %3400 = vmatpush.bf16.msrb.mxu1 %v5349_v38  ;;  %v5881_v38 = vld [vmem:[%s8778_s9 + $0x20] sm:$0xff] }
 0x231   :  { %3426 = vmatpush.bf16.msra.mxu0 %v5369_v26  ;;  %3401 = vmatpush.bf16.msrb.mxu1 %v5341_v37  ;;  %v5878_v37 = vld [vmem:[%s8778_s9 + $0x8] sm:$0xff] }
 0x235   :  { %3427 = vmatpush.bf16.msra.mxu0 %v5361_v54  ;;  %3402 = vmatpush.bf16.msrb.mxu1 %v5333_v58  ;;  %v3610_v58 = vld [vmem:[%s8779_s11 + $0x50] sm:$0xff] }
 0x238   :  { %3176 = vmatmul.bf16.vlgmr.msrb.gmra.mxu0 %v2679_v32  ;;  %v5261_v32 = vor.u32 %v5846_v30, %v5260_v29 }
 0x239   :  { %3428 = vmatpush.bf16.msra.mxu0 %v5353_v23  ;;  %3403 = vmatpush.bf16.msrb.mxu1 %v5325_v1  ;;  %v5880_v23 = vld [vmem:[%s8778_s9 + $0x18] sm:$0xff]  ;;  %v3606_v1 = vld [vmem:[%s8779_s11 + $0x30] sm:$0xff] }
 0x23a   :  { %3389 = vmatpush.bf16.msra.mxu3 %v5261_v32 }
 0x23d   :  { %3429 = vmatpush.bf16.msra.mxu0 %v5345_v53  ;;  %3586 = vmatpush.bf16.msra.mxu1 %v5892_v9  ;;  %v3614_v53 = vld [vmem:[%s8779_s11 + $0x70] sm:$0xff] }
 0x23e   :  { %3572 = vmatpush.bf16.msrb.mxu3 %v5884_v7  ;;  %v3219_v7 = vperm.slane %v3216_v2, 1 }
 0x241   :  { %3430 = vmatpush.bf16.msra.mxu0 %v5337_v59  ;;  %3587 = vmatpush.bf16.msra.mxu1 %v5891_v12  ;;  %v3609_v59 = vld [vmem:[%s8779_s11 + $0x48] sm:$0xff] }
 0x242   :  { %3573 = vmatpush.bf16.msrb.mxu3 %v5883_v11 }
 0x245   :  { %3431 = vmatpush.bf16.msra.mxu0 %v5329_v4  ;;  %3588 = vmatpush.bf16.msra.mxu1 %v5890_v60 }
 0x246   :  { %3574 = vmatpush.bf16.msrb.mxu3 %v5882_v43 }
 0x249   :  { %3589 = vmatpush.bf16.msra.mxu1 %v5889_v46 }
 0x24a   :  { %3575 = vmatpush.bf16.msrb.mxu3 %v5881_v38 }
 0x24d   :  { %3590 = vmatpush.bf16.msra.mxu1 %v5888_v35 }
 0x24e   :  { %3576 = vmatpush.bf16.msrb.mxu3 %v5880_v23 }
 0x251   :  { %3591 = vmatpush.bf16.msra.mxu1 %v5887_v48 }
 0x252   :  { %3577 = vmatpush.bf16.msrb.mxu3 %v5879_v47 }
 0x255   :  { %3592 = vmatpush.bf16.msra.mxu1 %v5886_v49 }
 0x256   :  { %3578 = vmatpush.bf16.msrb.mxu3 %v5878_v37 }
 0x259   :  { %3593 = vmatpush.bf16.msra.mxu1 %v5885_v52 }
 0x25a   :  { %3579 = vmatpush.bf16.msrb.mxu3 %v5877_v51 }
 0x26b   :  { %v3079_v45 = vpop.f32.mrf.mxu3 }
 0x26c   :  { %v3080_v15 = vadd.f32 %v3079_v45, %v2746_v10  ;;  %v3615_v45 = vld [vmem:[%s8779_s11 + $0x78] sm:$0xff] }
 0x26d   :  { %3620 = vmatpush.msra.mxu2 %v3615_v45 }
 0x26f   :  { %3621 = vmatpush.msra.mxu2 %v3614_v53 }
 0x271   :  { %3622 = vmatpush.msra.mxu2 %v3613_v42 }
 0x273   :  { %v3081_v18 = vpop.f32.mrf.mxu3  ;;  %3623 = vmatpush.msra.mxu2 %v3612_v56 }
 0x274   :  { %v3082_v16 = vadd.f32 %v3081_v18, %v2746_v10  ;;  %v3218_v18 = vperm.slane %v3216_v2, 0 }
 0x275   :  { %v3093_v57 = vpop.f32.mrf.mxu1 }
 0x276   :  { %v3094_v17 = vadd.f32 %v3093_v57, %v3080_v15  ;;  %v3611_v57 = vld [vmem:[%s8779_s11 + $0x58] sm:$0xff] }
 0x277   :  { %3624 = vmatpush.msra.mxu2 %v3611_v57 }
 0x279   :  { %3625 = vmatpush.msra.mxu2 %v3610_v58 }
 0x27b   :  { %v3135_v19 = vpop.f32.mrf.mxu3  ;;  %3626 = vmatpush.msra.mxu2 %v3609_v59 }
 0x27c   :  { %v3136_v31 = vadd.f32 %v3135_v19, %v2747_v44 }
 0x27d   :  { %v3095_v5 = vpop.f32.mrf.mxu1 }
 0x27e   :  { %v3096_v50 = vadd.f32 %v3095_v5, %v3082_v16 }
 0x283   :  { %v3137_v26 = vpop.f32.mrf.mxu3 }
 0x284   :  { %v3138_v32 = vadd.f32 %v3137_v26, %v2747_v44  ;;  %v5893_v44 = vld [vmem:[%s8781_s10] ss:$0 sm:$0xff] }
 0x285   :  { %v3149_v22 = vpop.f32.mrf.mxu1 }
 0x286   :  { %v3150_v33 = vadd.f32 %v3149_v22, %v3136_v31  ;;  %v3605_v22 = vld [vmem:[%s8779_s11 + $0x28] sm:$0xff] }
 0x28b   :  { %v3107_v61 = vpop.f32.mrf.mxu2 }
 0x28c   :  { %v3108_v20 = vadd.f32 %v3107_v61, %v3094_v17  ;;  %v3608_v61 = vld [vmem:[%s8779_s11 + $0x40] sm:$0xff] }
 0x28d   :  { %v3151_v30 = vpop.f32.mrf.mxu1  ;;  %3627 = vmatpush.msra.mxu2 %v3608_v61 }
 0x28e   :  { %v3152_v34 = vadd.f32 %v3151_v30, %v3138_v32 }
 0x28f   :  { %3628 = vmatpush.msra.mxu2 %v3607_v0 }
 0x291   :  { %3629 = vmatpush.msra.mxu2 %v3606_v1 }
 0x293   :  { %v3109_v13 = vpop.f32.mrf.mxu2  ;;  %3630 = vmatpush.msra.mxu2 %v3605_v22 }
 0x294   :  { %v3110_v21 = vadd.f32 %v3109_v13, %v3096_v50 }
 0x29b   :  { %v3163_v8 = vpop.f32.mrf.mxu2 }
 0x29c   :  { %v3164_v36 = vadd.f32 %v3163_v8, %v3150_v33  ;;  %v3601_v8 = vld [vmem:[%s8779_s11 + $0x8] sm:$0xff] }
 0x2a3   :  { %v3165_v3 = vpop.f32.mrf.mxu2 }
 0x2a4   :  { %v3166_v39 = vadd.f32 %v3165_v3, %v3152_v34 }
 0x2a5   :  { %v3121_v14 = vpop.f32.mrf.mxu0 }
 0x2a6   :  { %v3122_v25 = vadd.f32 %v3121_v14, %v3108_v20 }
 0x2ad   :  { %v3123_v24 = vpop.f32.mrf.mxu0 }
 0x2ae   :  { %v3124_v27 = vadd.f32 %v3123_v24, %v3110_v21  ;;  %v3604_v24 = vld [vmem:[%s8779_s11 + $0x20] sm:$0xff] }
 0x2af   :  { %3631 = vmatpush.msra.mxu2 %v3604_v24 }
 0x2b0   :  { %v3182_v28 = vpack.c.bf16 %v3124_v27, %v3122_v25  ;;  %v3603_v25 = vld [vmem:[%s8779_s11 + $0x18] sm:$0xff]  ;;  %v3602_v27 = vld [vmem:[%s8779_s11 + $0x10] sm:$0xff] }
 0x2b1   :  { %3632 = vmatpush.msra.mxu2 %v3603_v25 }
 0x2b2   :  { %3390 = vmatmul.bf16.vlgmr.msra.gmra.mxu3 %v3182_v28  ;;  %3418 = vmatmul.bf16.vlgmr.msrb.gmra.mxu2 %v3182_v28  ;;  %v3600_v28 = vld [vmem:[%s8779_s11] sm:$0xff] }
 0x2b3   :  { %3633 = vmatpush.msra.mxu2 %v3602_v27 }
 0x2b5   :  { %v3177_v29 = vpop.f32.mrf.mxu0  ;;  %3634 = vmatpush.msra.mxu2 %v3601_v8 }
 0x2b6   :  { %v3178_v55 = vadd.f32 %v3177_v29, %v3164_v36  ;;  %v3643_v36 = vlaneseq }
 0x2b7   :  { %3635 = vmatpush.msra.mxu2 %v3600_v28 }
 0x2bd   :  { %v3179_v40 = vpop.f32.mrf.mxu0 }
 0x2be   :  { %v3180_v54 = vadd.f32 %v3179_v40, %v3166_v39  ;;  %v3644_v39 = vand.u32 127, %v3643_v36  ;;  %v5894_v40 = vld [vmem:[%s8782_s12] ss:$0 sm:$0xff] }
 0x2c0   :  { %v3183_v41 = vpack.c.bf16 %v3180_v54, %v3178_v55  ;;  %vm3645_vm1 = vcmp.lt.s32.totalorder %v3644_v39, 10 }
 0x2c2   :  { %3404 = vmatmul.bf16.vlgmr.msrb.gmra.mxu1 %v3183_v41  ;;  %3432 = vmatmul.bf16.vlgmr.msra.gmra.mxu0 %v3183_v41 }
 0x335   :  { %v3391_v62 = vpop.f32.mrf.mxu3  ;;  %v3419_v63 = vpop.f32.mrf.mxu2 }
 0x336   :  { %v3392_v10 = vadd.f32 %v3391_v62, %v3218_v18  ;;  %v3420_v11 = vadd.f32 %v3419_v63, %v3219_v7 }
 0x33d   :  { %v3393_v9 = vpop.f32.mrf.mxu3  ;;  %v3421_v5 = vpop.f32.mrf.mxu2 }
 0x33e   :  { %v3394_v12 = vadd.f32 %v3393_v9, %v3218_v18  ;;  %v3422_v13 = vadd.f32 %v3421_v5, %v3219_v7 }
 0x33f   :  { %v3405_v4 = vpop.f32.mrf.mxu1  ;;  %v3433_v6 = vpop.f32.mrf.mxu0 }
 0x340   :  { %v3406_v16 = vadd.f32 %v3405_v4, %v3392_v10  ;;  %v3434_v17 = vadd.f32 %v3433_v6, %v3420_v11 }
 0x347   :  { %v3407_v14 = vpop.f32.mrf.mxu1  ;;  %v3435_v15 = vpop.f32.mrf.mxu0 }
 0x348   :  { %v3408_v50 = vadd.f32 %v3407_v14, %v3394_v12  ;;  %v3436_v19 = vadd.f32 %v3435_v15, %v3422_v13 }
 0x34a   :  { %v3438_v20 = vpack.c.bf16 %v3408_v50, %v3406_v16  ;;  %v3439_v21 = vpack.c.bf16 %v3436_v19, %v3434_v17 }
 0x34c   :  { %3580 = vmatmul.bf16.vlgmr.msrb.gmra.mxu3 %v3438_v20  ;;  %3594 = vmatmul.bf16.vlgmr.msra.gmra.mxu1 %v3439_v21 }
 0x3c9   :  { %v3595_v26 = vpop.f32.mrf.mxu1 }
 0x3cf   :  { %v3581_v29 = vpop.f32.mrf.mxu3 }
 0x3d0   :  { %v3582_v30 = vadd.f32 %v5893_v44, %v3581_v29 }
 0x3d1   :  { %v3597_v33 = vpop.f32.mrf.mxu1 }
 0x3d2   :  { %v3596_v31 = vadd.f32 %v3595_v26, %v3582_v30 }
 0x3d4   :  { %3636 = vmatmul.f32.vlgmr.msra.gmra.mxu2 %v3596_v31 }
 0x3d7   :  { %v3583_v32 = vpop.f32.mrf.mxu3 }
 0x3d8   :  { %v3584_v3 = vadd.f32 %v5893_v44, %v3583_v32 }
 0x3da   :  { %v3598_v34 = vadd.f32 %v3597_v33, %v3584_v3 }
 0x3dc   :  { %3639 = vmatmul.f32.gmra.mxu2 %v3598_v34 }
 0x457   :  { %v3637_v55 = vpop.f32.mrf.mxu2 }
 0x458   :  { %v3638_v54 = vadd.f32 %v5894_v40, %v3637_v55 }
 0x45a   :  { %v3646_v41 = vsel %vm3645_vm1, %v3638_v54, -1e+30 }
 0x45b   :  { %3648 = vmax.xlane.f32.xlu0 %v3646_v41 }
 0x45f   :  { %v3640_v43 = vpop.f32.mrf.mxu2 }
 0x460   :  { %v3641_v60 = vadd.f32 %v5894_v40, %v3640_v43 }
 0x462   :  { %v3647_v38 = vsel %vm3645_vm1, %v3641_v60, -1e+30 }
 0x463   :  { %3650 = vmax.xlane.f32.xlu0 %v3647_v38 }
 0x4ce   :  { %v3649_v46 = vpop.xlane.xlu0 %3648 }
 0x4cf   :  { %v3652_v23 = vsub.f32 %v3646_v41, %v3649_v46 }
 0x4d1   :  { %v3654_v35 = vmul.f32 1.442695, %v3652_v23 }
 0x4d3   :  { %5895 = vpow2.f32 %v3654_v35 }
 0x4d6   :  { %v3651_v47 = vpop.xlane.xlu0 %3650 }
 0x4d7   :  { %v3653_v48 = vsub.f32 %v3647_v38, %v3651_v47 }
 0x4d9   :  { %v5896_v37 = vpop.eup %5895  ;;  %v3656_v49 = vmul.f32 1.442695, %v3653_v48 }
 0x4da   :  { %3658 = vadd.xlane.f32.xlu1 %v5896_v37 }
 0x4db   :  { %5897 = vpow2.f32 %v3656_v49 }
 0x4e1   :  { %v5898_v51 = vpop.eup %5897 }
 0x4e2   :  { %3660 = vadd.xlane.f32.xlu1 %v5898_v51 }
 0x54d   :  { %v3659_v52 = vpop.xlane.xlu1 %3658 }
 0x54e   :  { %5899 = vlog2.f32 %v3659_v52 }
 0x554   :  { %v5900_v45 = vpop.eup %5899 }
 0x555   :  { %v3663_v53 = vmul.f32 0.6931472, %v5900_v45  ;;  %v3661_v42 = vpop.xlane.xlu1 %3660 }
 0x556   :  { %5901 = vlog2.f32 %v3661_v42 }
 0x557   :  { %v3666_v56 = vsub.f32 %v3652_v23, %v3663_v53 }
 0x559   :  { %3668 = vst [vmem:[%s8783_s13] sm:$0xff] %v3666_v56 }
 0x55c   :  { %v5902_v57 = vpop.eup %5901 }
 0x55d   :  { %v3665_v58 = vmul.f32 0.6931472, %v5902_v57 }
 0x55f   :  { %v3667_v59 = vsub.f32 %v3653_v48, %v3665_v58 }
 0x561   :  { %3669 = vst [vmem:[%s8783_s13 + $0x8] sm:$0xff] %v3667_v59 }

</bundles_post_ra>
